<compile_context>
chip_gen: v6e
topology: v6e:2x2x1
jax: 0.10.0
libtpu: 0.0.40
codegen_flags: <defaults>
</compile_context>

<pallas_src>
import functools

import jax
import jax.numpy as jnp
from jax import lax
from jax.experimental import pallas as pl
from jax.experimental.pallas import tpu as pltpu


def _round_up(n, m):
    return ((n + m - 1) // m) * m


def _pick_t_tile(T, requested, max_tile=32):
    # TODO(synk): for awkward/prime T, pad T up to a tile multiple (with output
    # masking for the backward direction) instead of degrading toward tt=1.
    if requested is not None:
        assert T % requested == 0, "t_tile must divide T"
        return requested
    tt = min(T, max_tile)
    while T % tt:
        tt -= 1
    return tt


_VMEM_CAP_FALLBACK = 64 << 20   # v7x per-TensorCore VMEM (the most restrictive)


def _vmem_capacity_bytes():
    try:
        cap = getattr(pltpu.get_tpu_info(), "vmem_capacity_bytes", None)
        if cap:
            return int(cap)
    except Exception:
        pass
    return _VMEM_CAP_FALLBACK


def _vmem_limit(n_streams, tt, B, d_in, H, last_layer):
    """Explicit VMEM budget for one layer call, capped below physical VMEM."""
    H4 = 4 * H
    D = n_streams * d_in
    est = (2 * 2 * n_streams * tt * B * d_in * 2              # bf16 streams, fwd+rev, dbl-buffered
           + 2 * (2 * (D + H) * H4 * 2 + 2 * H4 * 4)          # bf16 weights + f32 bias, dbl-buffered
           + (2 * B * 2 * H * 4 if last_layer
              else 2 * 2 * tt * B * H * 2)                    # outputs
           + 4 * B * H * 4 + 2 * tt * B * H4 * 4)             # scratch: h/c + gate slabs
    cap = (3 * _vmem_capacity_bytes()) // 4                   # <= ~48 MiB on v7x, 96 MiB on v5e/v6e
    return int(min(cap, max(est + est // 4 + (4 << 20), 32 << 20)))


# --------------------------------------------------------------------------
# Pallas kernel: one fused bidirectional LSTM layer (time-tiled grid).
# --------------------------------------------------------------------------
def _bilstm_layer_kernel(*refs, n_streams, emit_pool):
    # ref layout:
    #   inputs : x_fwd[0..n-1] (tt,B,d_in) bf16 fwd tile,
    #            x_rev[0..n-1] (tt,B,d_in) bf16 mirrored tile,
    #            wih_f, wih_b (D,4H) bf16, whh_f, whh_b (H,4H) bf16,
    #            b_f, b_b (1,4H) f32            gate order [i, f, g, o]
    #   outputs: pool (B,2H) f32                      (last layer) OR
    #            seq_f, seq_b (tt,B,H) bf16 blocks    (intermediate layer)
    #   scratch: hf, cf, hb, cb (B,H) f32;  gxf, gxb (tt,B,4H) f32
    nin = 2 * n_streams
    x_fwd = refs[:n_streams]
    x_rev = refs[n_streams:nin]
    wih_f, wih_b, whh_f, whh_b, b_f, b_b = refs[nin:nin + 6]
    rest = refs[nin + 6:]
    if emit_pool:
        pool_ref = rest[0]
        hf, cf, hb, cb, gxf, gxb = rest[1:]
    else:
        sf_ref, sb_ref = rest[0], rest[1]
        hf, cf, hb, cb, gxf, gxb = rest[2:]

    tt, B, d_in = x_fwd[0].shape
    H = whh_f.shape[0]
    i = pl.program_id(0)

    @pl.when(i == 0)
    def _init():
        hf[...] = jnp.zeros_like(hf)
        cf[...] = jnp.zeros_like(cf)
        hb[...] = jnp.zeros_like(hb)
        cb[...] = jnp.zeros_like(cb)
        if emit_pool:
            pool_ref[...] = jnp.full_like(pool_ref, -jnp.inf)

    # ---- hoisted input projection: one bf16 MXU GEMM per stream & direction.
    # TODO(synk): software-pipeline this GEMM one tile ahead of the recurrence
    # (skewed grid) so the MXU slot overlaps the latency-bound recurrence.
    def proj(x_tiles, wih_ref, b_ref):
        acc = None
        for k, xr in enumerate(x_tiles):
            x2 = xr[...].reshape(tt * B, d_in)                    # bf16 operand
            w = wih_ref[k * d_in:(k + 1) * d_in, :]               # bf16 operand
            p = jnp.dot(x2, w, preferred_element_type=jnp.float32)
            acc = p if acc is None else acc + p
        return (acc + b_ref[...]).reshape(tt, B, 4 * H)

    gxf[...] = proj(x_fwd, wih_f, b_f)
    gxb[...] = proj(x_rev, wih_b, b_b)

    w_hh_f = whh_f[...]
    w_hh_b = whh_b[...]

    def cell(gx, h, c, whh):
        # small recurrent matmul is the only thing left on the serial chain
        g = gx + jnp.dot(h.astype(whh.dtype), whh,
                         preferred_element_type=jnp.float32)
        i_g = jax.nn.sigmoid(g[:, 0 * H:1 * H])
        f_g = jax.nn.sigmoid(g[:, 1 * H:2 * H])
        g_g = jnp.tanh(g[:, 2 * H:3 * H])
        o_g = jax.nn.sigmoid(g[:, 3 * H:4 * H])
        c_new = f_g * c + i_g * g_g
        h_new = o_g * jnp.tanh(c_new)
        return h_new, c_new

    # ---- recurrence over the tile; state stays in vregs within the tile -----
    h_f, c_f = hf[...], cf[...]
    h_b, c_b = hb[...], cb[...]
    m_f = m_b = None
    for s in range(tt):                       # tt is small & static -> unrolled
        tb = tt - 1 - s                       # bwd walks the mirrored tile
        h_f, c_f = cell(gxf[s], h_f, c_f, w_hh_f)
        h_b, c_b = cell(gxb[tb], h_b, c_b, w_hh_b)
        if emit_pool:
            m_f = h_f if m_f is None else jnp.maximum(m_f, h_f)
            m_b = h_b if m_b is None else jnp.maximum(m_b, h_b)
        else:
            sf_ref[s] = h_f.astype(sf_ref.dtype)
            sb_ref[tb] = h_b.astype(sb_ref.dtype)
    hf[...] = h_f
    cf[...] = c_f
    hb[...] = h_b
    cb[...] = c_b

    if emit_pool:
        pool_ref[:, 0:H] = jnp.maximum(pool_ref[:, 0:H], m_f)
        pool_ref[:, H:2 * H] = jnp.maximum(pool_ref[:, H:2 * H], m_b)


def bilstm_layer(x_streams, fwd_w, bwd_w, *, last_layer, t_tile=None,
                 max_tile=32):
    """One fused bidirectional LSTM layer.

    x_streams: tuple of 1 or 2 bf16 (T, B, d_in) time-major arrays (the fwd /
    bwd halves of the previous layer -- no HBM concat between layers).
    Returns (seq_fwd, seq_bwd) bf16 (T, B, H) for intermediate layers, or the
    f32 max-over-time pooled (B, 2H) tensor for the last layer.
    """
    wih_f, whh_f, b_f = fwd_w
    wih_b, whh_b, b_b = bwd_w
    n_streams = len(x_streams)
    T, B, d_in = x_streams[0].shape
    H, H4 = whh_f.shape
    D = wih_f.shape[0]
    assert H4 == 4 * H and D == n_streams * d_in
    assert B % 8 == 0 and d_in % 128 == 0 and H % 128 == 0
    tt = _pick_t_tile(T, t_tile, max_tile)
    nT = T // tt

    seq_f_spec = pl.BlockSpec((tt, B, d_in), lambda i: (i, 0, 0))
    seq_r_spec = pl.BlockSpec((tt, B, d_in), lambda i: (nT - 1 - i, 0, 0))
    const2 = lambda i: (0, 0)
    # TODO(synk): the six weight/bias specs have constant index maps; mark them
    # single-buffered (pipeline_mode=pl.Buffered(1)) once that kwarg is safe on
    # the target JAX to reclaim their second VMEM buffer.
    # TODO(synk): the mirrored stream reads x twice from HBM; for short T it can
    # be passed once with a full-T block, or on v7x split per direction across
    # the two TensorCores (parallel direction grid axis).
    in_specs = ([seq_f_spec] * n_streams + [seq_r_spec] * n_streams
                + [pl.BlockSpec((D, H4), const2), pl.BlockSpec((D, H4), const2),
                   pl.BlockSpec((H, H4), const2), pl.BlockSpec((H, H4), const2),
                   pl.BlockSpec((1, H4), const2), pl.BlockSpec((1, H4), const2)])

    scratch = ([pltpu.VMEM((B, H), jnp.float32)] * 4            # hf, cf, hb, cb
               + [pltpu.VMEM((tt, B, H4), jnp.float32)] * 2)    # gxf, gxb

    if last_layer:
        out_shape = jax.ShapeDtypeStruct((B, 2 * H), jnp.float32)
        out_specs = pl.BlockSpec((B, 2 * H), const2)            # resident accumulator
    else:
        out_shape = (jax.ShapeDtypeStruct((T, B, H), jnp.bfloat16),
                     jax.ShapeDtypeStruct((T, B, H), jnp.bfloat16))
        out_specs = (pl.BlockSpec((tt, B, H), lambda i: (i, 0, 0)),
                     pl.BlockSpec((tt, B, H), lambda i: (nT - 1 - i, 0, 0)))

    kernel = functools.partial(_bilstm_layer_kernel,
                               n_streams=n_streams, emit_pool=last_layer)
    return pl.pallas_call(
        kernel,
        out_shape=out_shape,
        grid=(nT,),
        in_specs=in_specs,
        out_specs=out_specs,
        scratch_shapes=scratch,
        compiler_params=pltpu.CompilerParams(
            dimension_semantics=("arbitrary",),   # (h, c) carried across tiles
            vmem_limit_bytes=_vmem_limit(n_streams, tt, B, d_in, H, last_layer)),
    )(*x_streams, *x_streams, wih_f, wih_b, whh_f, whh_b, b_f, b_b)


# --------------------------------------------------------------------------
# Pallas kernel: FC + softmax head on the pooled (B, 2H) tensor.
# --------------------------------------------------------------------------
def _head_kernel(pool_ref, w_ref, b_ref, y_ref, *, n_classes):
    logits = (jnp.dot(pool_ref[...], w_ref[...],
                      preferred_element_type=jnp.float32) + b_ref[...])
    col = lax.broadcasted_iota(jnp.int32, logits.shape, 1)
    logits = jnp.where(col < n_classes, logits, -1e30)   # mask padded classes
    m = jnp.max(logits, axis=1, keepdims=True)
    e = jnp.exp(logits - m)
    denom = jnp.sum(e, axis=1, keepdims=True)
    # EUP approximate reciprocal + one Newton step keeps full f32 accuracy.
    r = pl.reciprocal(denom, approx=True)
    r = r * (2.0 - denom * r)
    y_ref[...] = e * r


def classifier_head(pooled, fc_w, fc_b, *, n_classes):
    B, H2 = pooled.shape
    C = fc_w.shape[1]
    cap = (3 * _vmem_capacity_bytes()) // 4
    return pl.pallas_call(
        functools.partial(_head_kernel, n_classes=n_classes),
        out_shape=jax.ShapeDtypeStruct((B, C), jnp.float32),
        grid=(1,),
        in_specs=[pl.BlockSpec((B, H2), lambda i: (0, 0)),
                  pl.BlockSpec((H2, C), lambda i: (0, 0)),
                  pl.BlockSpec((1, C), lambda i: (0, 0))],
        out_specs=pl.BlockSpec((B, C), lambda i: (0, 0)),
        compiler_params=pltpu.CompilerParams(
            dimension_semantics=("arbitrary",),
            vmem_limit_bytes=int(min(32 << 20, cap))),
    )(pooled, fc_w, fc_b)


# --------------------------------------------------------------------------
# Full forward pass (glue in plain JAX, hot paths in the kernels above).
# --------------------------------------------------------------------------
@functools.partial(jax.jit, static_argnames=("num_classes", "t_tile"))
def bilstm_forward(params, tokens, *, num_classes, t_tile=None):
    """tokens: (B, T) int32 -> class probabilities (B, num_classes)."""
    B, _ = tokens.shape
    # Time-major gather straight from the frozen bf16 table: no (B,T,D)->(T,B,D)
    # transpose of the big activation slab.
    x = params["embedding"][tokens.T]                      # (T, B, E_pad) bf16
    B_pad = _round_up(B, 8)
    if B_pad != B:
        x = jnp.pad(x, ((0, 0), (0, B_pad - B), (0, 0)))

    streams = (x,)
    n_layers = len(params["lstm"])
    pooled = None
    for li, layer in enumerate(params["lstm"]):
        last = li == n_layers - 1
        out = bilstm_layer(streams, layer["fwd"], layer["bwd"],
                           last_layer=last, t_tile=t_tile)
        if last:
            pooled = out                                    # (B_pad, 2*H_pad) f32
        else:
            streams = out                                   # bf16 halves, no HBM concat

    # TODO(synk): dropout is the identity here (inference / eval-mode semantics).
    probs = classifier_head(pooled, params["fc_w"], params["fc_b"],
                            n_classes=num_classes)
    return probs[:B, :num_classes]


# --------------------------------------------------------------------------
# Parameter initialization (logical shapes) + TPU padding / dtype prep.
# --------------------------------------------------------------------------
def init_params(key, vocab_size, embed_dim, input_size, hidden_size,
                num_classes, num_layers):
    """Logical (unpadded, f32) parameters mirroring the PyTorch module."""
    assert input_size == embed_dim, "LSTM input_size must match embedding dim"
    keys = jax.random.split(key, 3 + num_layers * 8)
    k_it = iter(keys)
    bound = 1.0 / jnp.sqrt(hidden_size)

    def u(k, shape, b):
        return jax.random.uniform(k, shape, jnp.float32, -b, b)

    # stands in for the frozen embed_model.vectors
    embedding = jax.random.normal(next(k_it), (vocab_size, embed_dim), jnp.float32)

    lstm = []
    for layer in range(num_layers):
        d_in = input_size if layer == 0 else 2 * hidden_size
        dirs = {}
        for name in ("fwd", "bwd"):
            w_ih = u(next(k_it), (d_in, 4 * hidden_size), bound)          # (D, 4H)
            w_hh = u(next(k_it), (hidden_size, 4 * hidden_size), bound)   # (H, 4H)
            b_ih = u(next(k_it), (4 * hidden_size,), bound)
            b_hh = u(next(k_it), (4 * hidden_size,), bound)
            dirs[name] = (w_ih, w_hh,
                          (b_ih + b_hh).reshape(1, 4 * hidden_size))
        lstm.append(dirs)

    fcb = 1.0 / jnp.sqrt(2 * hidden_size)
    fc_w = u(next(k_it), (2 * hidden_size, num_classes), fcb)
    fc_b = u(next(k_it), (1, num_classes), fcb)
    return {"embedding": embedding, "lstm": lstm, "fc_w": fc_w, "fc_b": fc_b}


def _pad_gates_in(w, n_chunks, chunk, chunk_pad, h, h_pad):
    # (n_chunks*chunk, 4h) -> (n_chunks*chunk_pad, 4*h_pad), per-gate padding.
    w = w.reshape(n_chunks, chunk, 4, h)
    w = jnp.pad(w, ((0, 0), (0, chunk_pad - chunk), (0, 0), (0, h_pad - h)))
    return w.reshape(n_chunks * chunk_pad, 4 * h_pad)


def _pad_gate_bias(b, h, h_pad):
    b = b.reshape(4, h)
    b = jnp.pad(b, ((0, 0), (0, h_pad - h)))
    return b.reshape(1, 4 * h_pad)


def prepare_params(params, hidden_size, embed_dim, num_classes):
    """Pad lane dims (H, D, C) to multiples of 128 and cast the matmul weights
    (embedding, W_ih, W_hh) to bf16.  Padding is zero-filled per gate block, so
    padded hidden/input channels stay exactly zero through the recurrence."""
    h, hp = hidden_size, _round_up(hidden_size, 128)
    e, ep = embed_dim, _round_up(embed_dim, 128)
    c, cp = num_classes, _round_up(num_classes, 128)

    out = {"embedding": jnp.pad(params["embedding"],
                                ((0, 0), (0, ep - e))).astype(jnp.bfloat16),
           "fc_w": jnp.pad(params["fc_w"].reshape(2, h, c),
                           ((0, 0), (0, hp - h), (0, cp - c))).reshape(2 * hp, cp),
           "fc_b": jnp.pad(params["fc_b"], ((0, 0), (0, cp - c))),
           "lstm": []}
    for li, layer in enumerate(params["lstm"]):
        n_chunks, chunk, chunk_pad = (1, e, ep) if li == 0 else (2, h, hp)
        dirs = {}
        for name in ("fwd", "bwd"):
            w_ih, w_hh, bias = layer[name]
            dirs[name] = (
                _pad_gates_in(w_ih, n_chunks, chunk, chunk_pad, h, hp)
                .astype(jnp.bfloat16),                                   # (D, 4H) bf16
                _pad_gates_in(w_hh, 1, h, hp, h, hp).astype(jnp.bfloat16),  # (H, 4H) bf16
                _pad_gate_bias(bias, h, hp))                             # (1, 4H) f32
        out["lstm"].append(dirs)
    return out


# --------------------------------------------------------------------------
# Pure-JAX reference (lax.scan, f32) for correctness checking.
# --------------------------------------------------------------------------
def reference_forward(params, tokens, hidden_size):
    H = hidden_size
    x = params["embedding"][tokens].astype(jnp.float32)          # (B, T, E)
    B = x.shape[0]
    hi = lax.Precision.HIGHEST

    def run_dir(seq, w_ih, w_hh, b, reverse):
        def step(carry, x_t):
            h, c = carry
            g = (jnp.dot(x_t, w_ih, precision=hi)
                 + jnp.dot(h, w_hh, precision=hi) + b)
            i_g = jax.nn.sigmoid(g[:, :H])
            f_g = jax.nn.sigmoid(g[:, H:2 * H])
            g_g = jnp.tanh(g[:, 2 * H:3 * H])
            o_g = jax.nn.sigmoid(g[:, 3 * H:])
            c = f_g * c + i_g * g_g
            h = o_g * jnp.tanh(c)
            return (h, c), h
        init = (jnp.zeros((B, H), jnp.float32), jnp.zeros((B, H), jnp.float32))
        _, hs = lax.scan(step, init, jnp.transpose(seq, (1, 0, 2)),
                         reverse=reverse)
        return jnp.transpose(hs, (1, 0, 2))                      # (B, T, H)

    out = x
    for layer in params["lstm"]:
        f = run_dir(out, *layer["fwd"], reverse=False)
        bwd = run_dir(out, *layer["bwd"], reverse=True)
        out = jnp.concatenate([f, bwd], axis=-1)
    pooled = jnp.max(out, axis=1)
    logits = jnp.dot(pooled, params["fc_w"], precision=hi) + params["fc_b"]
    return jax.nn.softmax(logits, axis=1)


if __name__ == "__main__":
    # Small, self-consistent config (exercises 2 layers and 2 time tiles).
    B, T = 2, 8
    vocab_size, embed_dim = 50, 16
    hidden_size = 32
    num_classes = 4
    num_layers = 2

    key = jax.random.PRNGKey(0)
    k_param, k_tok = jax.random.split(key)
    logical = init_params(k_param, vocab_size, embed_dim, embed_dim,
                          hidden_size, num_classes, num_layers)
    padded = prepare_params(logical, hidden_size, embed_dim, num_classes)
    tokens = jax.random.randint(k_tok, (B, T), 0, vocab_size, dtype=jnp.int32)

    probs = jax.block_until_ready(
        bilstm_forward(padded, tokens, num_classes=num_classes, t_tile=4))

    assert probs.shape == (B, num_classes)
    assert bool(jnp.all(jnp.isfinite(probs)))
    assert bool(jnp.allclose(jnp.sum(probs, axis=1), 1.0, atol=1e-2))

    ref = reference_forward(logical, tokens, hidden_size)
    err = float(jnp.max(jnp.abs(probs - ref)))
    # bf16 matmul operands + bf16 inter-layer activations -> looser tolerance
    # than the pure-f32 variant (review correctness concern #2).
    assert err < 2.5e-2, "max abs diff %.3e" % err

    print("KERNEL_OK")
</pallas_src>

<mosaic_0001>
module attributes {stable_mosaic.version = 11 : i64} {
  func.func @_head_kernel(%arg0: i32, %arg1: memref<8x256xf32, #tpu.memory_space<vmem>>, %arg2: memref<256x128xf32, #tpu.memory_space<vmem>>, %arg3: memref<1x128xf32, #tpu.memory_space<vmem>>, %arg4: memref<8x128xf32, #tpu.memory_space<vmem>>) attributes {dimension_semantics = [#tpu.dimension_semantics<arbitrary>], iteration_bounds = array<i64: 1>, scalar_prefetch = 0 : i64, scratch_operands = 0 : i64, tpu.core_type = #tpu.core_type<tc>, window_params = [{pipeline_mode = #tpu.pipeline_mode<synchronous>, transform_indices = @transform_0, window_bounds = array<i64: 8, 256>}, {pipeline_mode = #tpu.pipeline_mode<synchronous>, transform_indices = @transform_1, window_bounds = array<i64: 256, 128>}, {pipeline_mode = #tpu.pipeline_mode<synchronous>, transform_indices = @transform_2, window_bounds = array<i64: 1, 128>}, {pipeline_mode = #tpu.pipeline_mode<synchronous>, transform_indices = @transform_3, window_bounds = array<i64: 8, 128>}]} {
    %c0 = arith.constant 0 : index
    %c0_0 = arith.constant 0 : index
    %0 = vector.load %arg1[%c0, %c0_0] : memref<8x256xf32, #tpu.memory_space<vmem>>, vector<8x256xf32>
    %c0_1 = arith.constant 0 : index
    %c0_2 = arith.constant 0 : index
    %1 = vector.load %arg2[%c0_1, %c0_2] : memref<256x128xf32, #tpu.memory_space<vmem>>, vector<256x128xf32>
    %cst = arith.constant dense<0.000000e+00> : vector<8x128xf32>
    %2 = tpu.matmul %0, %1, %cst {dimension_numbers = #tpu.dot_dimension_numbers<[1], [0], [0], [1], [0, 0, 1, 1], [], []>} : vector<8x256xf32>, vector<256x128xf32>, vector<8x128xf32> -> vector<8x128xf32>
    %c0_3 = arith.constant 0 : index
    %c0_4 = arith.constant 0 : index
    %3 = vector.load %arg3[%c0_3, %c0_4] : memref<1x128xf32, #tpu.memory_space<vmem>>, vector<1x128xf32>
    %4 = vector.broadcast %3 : vector<1x128xf32> to vector<8x128xf32>
    %5 = arith.addf %2, %4 : vector<8x128xf32>
    %6 = tpu.iota {dimensions = array<i32: 1>} : vector<8x128xi32>
    %c4_i32 = arith.constant 4 : i32
    %7 = vector.broadcast %c4_i32 : i32 to vector<8x128xi32>
    %8 = arith.cmpi slt, %6, %7 : vector<8x128xi32>
    %cst_5 = arith.constant -1.000000e+30 : f32
    %9 = vector.broadcast %cst_5 : f32 to vector<8x128xf32>
    %10 = arith.select %8, %5, %9 : vector<8x128xi1>, vector<8x128xf32>
    %cst_6 = arith.constant dense<0xFF800000> : vector<8xf32>
    %11 = vector.multi_reduction <maximumf>, %10, %cst_6 [1] : vector<8x128xf32> to vector<8xf32>
    %12 = vector.shape_cast %11 : vector<8xf32> to vector<8x1xf32>
    %13 = vector.broadcast %12 : vector<8x1xf32> to vector<8x128xf32>
    %14 = arith.subf %10, %13 : vector<8x128xf32>
    %15 = math.exp %14 : vector<8x128xf32>
    %cst_7 = arith.constant dense<0.000000e+00> : vector<8xf32>
    %16 = vector.multi_reduction <add>, %15, %cst_7 [1] : vector<8x128xf32> to vector<8xf32>
    %17 = vector.shape_cast %16 : vector<8xf32> to vector<8x1xf32>
    %18 = tpu.reciprocal %17 {approx = true} : vector<8x1xf32> -> vector<8x1xf32>
    %19 = arith.mulf %17, %18 : vector<8x1xf32>
    %cst_8 = arith.constant 2.000000e+00 : f32
    %20 = vector.broadcast %cst_8 : f32 to vector<8x1xf32>
    %21 = arith.subf %20, %19 : vector<8x1xf32>
    %22 = arith.mulf %18, %21 : vector<8x1xf32>
    %23 = vector.broadcast %22 : vector<8x1xf32> to vector<8x128xf32>
    %24 = arith.mulf %15, %23 : vector<8x128xf32>
    %c0_9 = arith.constant 0 : index
    %c0_10 = arith.constant 0 : index
    %25 = vector.load %arg4[%c0_9, %c0_10] : memref<8x128xf32, #tpu.memory_space<vmem>>, vector<8x128xf32>
    tpu.vector_store %arg4[%c0_9, %c0_10], %24 {strides = array<i32>} : memref<8x128xf32, #tpu.memory_space<vmem>>, vector<8x128xf32>,
    return
  }
  func.func @transform_0(%arg0: i32) -> (i32, i32) {
    %c0_i32 = arith.constant 0 : i32
    %c0_i32_0 = arith.constant 0 : i32
    %c0_i32_1 = arith.constant 0 : i32
    return %c0_i32, %c0_i32_0 : i32, i32
  }
  func.func @transform_1(%arg0: i32) -> (i32, i32) {
    %c0_i32 = arith.constant 0 : i32
    %c0_i32_0 = arith.constant 0 : i32
    %c0_i32_1 = arith.constant 0 : i32
    return %c0_i32, %c0_i32_0 : i32, i32
  }
  func.func @transform_2(%arg0: i32) -> (i32, i32) {
    %c0_i32 = arith.constant 0 : i32
    %c0_i32_0 = arith.constant 0 : i32
    %c0_i32_1 = arith.constant 0 : i32
    return %c0_i32, %c0_i32_0 : i32, i32
  }
  func.func @transform_3(%arg0: i32) -> (i32, i32) {
    %c0_i32 = arith.constant 0 : i32
    %c0_i32_0 = arith.constant 0 : i32
    %c0_i32_1 = arith.constant 0 : i32
    return %c0_i32, %c0_i32_0 : i32, i32
  }
}

module attributes {stable_mosaic.version = 11 : i64} {
  func.func @_bilstm_layer_kernel(%arg0: i32, %arg1: memref<4x8x128xbf16, #tpu.memory_space<vmem>>, %arg2: memref<4x8x128xbf16, #tpu.memory_space<vmem>>, %arg3: memref<4x8x128xbf16, #tpu.memory_space<vmem>>, %arg4: memref<4x8x128xbf16, #tpu.memory_space<vmem>>, %arg5: memref<256x512xbf16, #tpu.memory_space<vmem>>, %arg6: memref<256x512xbf16, #tpu.memory_space<vmem>>, %arg7: memref<128x512xbf16, #tpu.memory_space<vmem>>, %arg8: memref<128x512xbf16, #tpu.memory_space<vmem>>, %arg9: memref<1x512xf32, #tpu.memory_space<vmem>>, %arg10: memref<1x512xf32, #tpu.memory_space<vmem>>, %arg11: memref<8x256xf32, #tpu.memory_space<vmem>>, %arg12: memref<8x128xf32, #tpu.memory_space<vmem>>, %arg13: memref<8x128xf32, #tpu.memory_space<vmem>>, %arg14: memref<8x128xf32, #tpu.memory_space<vmem>>, %arg15: memref<8x128xf32, #tpu.memory_space<vmem>>, %arg16: memref<4x8x512xf32, #tpu.memory_space<vmem>>, %arg17: memref<4x8x512xf32, #tpu.memory_space<vmem>>) attributes {dimension_semantics = [#tpu.dimension_semantics<arbitrary>], iteration_bounds = array<i64: 2>, scalar_prefetch = 0 : i64, scratch_operands = 6 : i64, tpu.core_type = #tpu.core_type<tc>, window_params = [{transform_indices = @transform_0, window_bounds = array<i64: 4, 8, 128>}, {transform_indices = @transform_1, window_bounds = array<i64: 4, 8, 128>}, {transform_indices = @transform_2, window_bounds = array<i64: 4, 8, 128>}, {transform_indices = @transform_3, window_bounds = array<i64: 4, 8, 128>}, {pipeline_mode = #tpu.pipeline_mode<synchronous>, transform_indices = @transform_4, window_bounds = array<i64: 256, 512>}, {pipeline_mode = #tpu.pipeline_mode<synchronous>, transform_indices = @transform_5, window_bounds = array<i64: 256, 512>}, {pipeline_mode = #tpu.pipeline_mode<synchronous>, transform_indices = @transform_6, window_bounds = array<i64: 128, 512>}, {pipeline_mode = #tpu.pipeline_mode<synchronous>, transform_indices = @transform_7, window_bounds = array<i64: 128, 512>}, {pipeline_mode = #tpu.pipeline_mode<synchronous>, transform_indices = @transform_8, window_bounds = array<i64: 1, 512>}, {pipeline_mode = #tpu.pipeline_mode<synchronous>, transform_indices = @transform_9, window_bounds = array<i64: 1, 512>}, {pipeline_mode = #tpu.pipeline_mode<synchronous>, transform_indices = @transform_10, window_bounds = array<i64: 8, 256>}]} {
    %c0_i32 = arith.constant 0 : i32
    %0 = arith.cmpi eq, %arg0, %c0_i32 : i32
    %1 = arith.extui %0 : i1 to i32
    %c0_i32_0 = arith.constant 0 : i32
    %2 = arith.cmpi ne, %1, %c0_i32_0 : i32
    scf.if %2 {
      %cst_113 = arith.constant 0.000000e+00 : f32
      %293 = vector.broadcast %cst_113 : f32 to vector<8x128xf32>
      %c0_114 = arith.constant 0 : index
      %c0_115 = arith.constant 0 : index
      %294 = vector.load %arg12[%c0_114, %c0_115] : memref<8x128xf32, #tpu.memory_space<vmem>>, vector<8x128xf32>
      tpu.vector_store %arg12[%c0_114, %c0_115], %293 {strides = array<i32>} : memref<8x128xf32, #tpu.memory_space<vmem>>, vector<8x128xf32>,
      %cst_116 = arith.constant 0.000000e+00 : f32
      %295 = vector.broadcast %cst_116 : f32 to vector<8x128xf32>
      %c0_117 = arith.constant 0 : index
      %c0_118 = arith.constant 0 : index
      %296 = vector.load %arg13[%c0_117, %c0_118] : memref<8x128xf32, #tpu.memory_space<vmem>>, vector<8x128xf32>
      tpu.vector_store %arg13[%c0_117, %c0_118], %295 {strides = array<i32>} : memref<8x128xf32, #tpu.memory_space<vmem>>, vector<8x128xf32>,
      %cst_119 = arith.constant 0.000000e+00 : f32
      %297 = vector.broadcast %cst_119 : f32 to vector<8x128xf32>
      %c0_120 = arith.constant 0 : index
      %c0_121 = arith.constant 0 : index
      %298 = vector.load %arg14[%c0_120, %c0_121] : memref<8x128xf32, #tpu.memory_space<vmem>>, vector<8x128xf32>
      tpu.vector_store %arg14[%c0_120, %c0_121], %297 {strides = array<i32>} : memref<8x128xf32, #tpu.memory_space<vmem>>, vector<8x128xf32>,
      %cst_122 = arith.constant 0.000000e+00 : f32
      %299 = vector.broadcast %cst_122 : f32 to vector<8x128xf32>
      %c0_123 = arith.constant 0 : index
      %c0_124 = arith.constant 0 : index
      %300 = vector.load %arg15[%c0_123, %c0_124] : memref<8x128xf32, #tpu.memory_space<vmem>>, vector<8x128xf32>
      tpu.vector_store %arg15[%c0_123, %c0_124], %299 {strides = array<i32>} : memref<8x128xf32, #tpu.memory_space<vmem>>, vector<8x128xf32>,
      %cst_125 = arith.constant 0xFF800000 : f32
      %301 = vector.broadcast %cst_125 : f32 to vector<8x256xf32>
      %c0_126 = arith.constant 0 : index
      %c0_127 = arith.constant 0 : index
      %302 = vector.load %arg11[%c0_126, %c0_127] : memref<8x256xf32, #tpu.memory_space<vmem>>, vector<8x256xf32>
      tpu.vector_store %arg11[%c0_126, %c0_127], %301 {strides = array<i32>} : memref<8x256xf32, #tpu.memory_space<vmem>>, vector<8x256xf32>,
    } else {
    }
    %c0 = arith.constant 0 : index
    %c0_1 = arith.constant 0 : index
    %c0_2 = arith.constant 0 : index
    %3 = vector.load %arg1[%c0, %c0_1, %c0_2] : memref<4x8x128xbf16, #tpu.memory_space<vmem>>, vector<4x8x128xbf16>
    %4 = vector.shape_cast %3 : vector<4x8x128xbf16> to vector<32x128xbf16>
    %c0_3 = arith.constant 0 : index
    %c0_4 = arith.constant 0 : index
    %5 = vector.load %arg5[%c0_3, %c0_4] : memref<256x512xbf16, #tpu.memory_space<vmem>>, vector<128x512xbf16>
    %cst = arith.constant dense<0.000000e+00> : vector<32x512xf32>
    %6 = tpu.matmul %4, %5, %cst {dimension_numbers = #tpu.dot_dimension_numbers<[1], [0], [0], [1], [0, 0, 1, 1], [], []>} : vector<32x128xbf16>, vector<128x512xbf16>, vector<32x512xf32> -> vector<32x512xf32>
    %c0_5 = arith.constant 0 : index
    %c0_6 = arith.constant 0 : index
    %c0_7 = arith.constant 0 : index
    %7 = vector.load %arg2[%c0_5, %c0_6, %c0_7] : memref<4x8x128xbf16, #tpu.memory_space<vmem>>, vector<4x8x128xbf16>
    %8 = vector.shape_cast %7 : vector<4x8x128xbf16> to vector<32x128xbf16>
    %c128 = arith.constant 128 : index
    %c0_8 = arith.constant 0 : index
    %9 = vector.load %arg5[%c128, %c0_8] : memref<256x512xbf16, #tpu.memory_space<vmem>>, vector<128x512xbf16>
    %cst_9 = arith.constant dense<0.000000e+00> : vector<32x512xf32>
    %10 = tpu.matmul %8, %9, %cst_9 {dimension_numbers = #tpu.dot_dimension_numbers<[1], [0], [0], [1], [0, 0, 1, 1], [], []>} : vector<32x128xbf16>, vector<128x512xbf16>, vector<32x512xf32> -> vector<32x512xf32>
    %11 = arith.addf %6, %10 : vector<32x512xf32>
    %c0_10 = arith.constant 0 : index
    %c0_11 = arith.constant 0 : index
    %12 = vector.load %arg9[%c0_10, %c0_11] : memref<1x512xf32, #tpu.memory_space<vmem>>, vector<1x512xf32>
    %13 = vector.broadcast %12 : vector<1x512xf32> to vector<32x512xf32>
    %14 = arith.addf %11, %13 : vector<32x512xf32>
    %15 = vector.shape_cast %14 : vector<32x512xf32> to vector<4x8x512xf32>
    %c0_12 = arith.constant 0 : index
    %c0_13 = arith.constant 0 : index
    %c0_14 = arith.constant 0 : index
    %16 = vector.load %arg16[%c0_12, %c0_13, %c0_14] : memref<4x8x512xf32, #tpu.memory_space<vmem>>, vector<4x8x512xf32>
    tpu.vector_store %arg16[%c0_12, %c0_13, %c0_14], %15 {strides = array<i32>} : memref<4x8x512xf32, #tpu.memory_space<vmem>>, vector<4x8x512xf32>,
    %c0_15 = arith.constant 0 : index
    %c0_16 = arith.constant 0 : index
    %c0_17 = arith.constant 0 : index
    %17 = vector.load %arg3[%c0_15, %c0_16, %c0_17] : memref<4x8x128xbf16, #tpu.memory_space<vmem>>, vector<4x8x128xbf16>
    %18 = vector.shape_cast %17 : vector<4x8x128xbf16> to vector<32x128xbf16>
    %c0_18 = arith.constant 0 : index
    %c0_19 = arith.constant 0 : index
    %19 = vector.load %arg6[%c0_18, %c0_19] : memref<256x512xbf16, #tpu.memory_space<vmem>>, vector<128x512xbf16>
    %cst_20 = arith.constant dense<0.000000e+00> : vector<32x512xf32>
    %20 = tpu.matmul %18, %19, %cst_20 {dimension_numbers = #tpu.dot_dimension_numbers<[1], [0], [0], [1], [0, 0, 1, 1], [], []>} : vector<32x128xbf16>, vector<128x512xbf16>, vector<32x512xf32> -> vector<32x512xf32>
    %c0_21 = arith.constant 0 : index
    %c0_22 = arith.constant 0 : index
    %c0_23 = arith.constant 0 : index
    %21 = vector.load %arg4[%c0_21, %c0_22, %c0_23] : memref<4x8x128xbf16, #tpu.memory_space<vmem>>, vector<4x8x128xbf16>
    %22 = vector.shape_cast %21 : vector<4x8x128xbf16> to vector<32x128xbf16>
    %c128_24 = arith.constant 128 : index
    %c0_25 = arith.constant 0 : index
    %23 = vector.load %arg6[%c128_24, %c0_25] : memref<256x512xbf16, #tpu.memory_space<vmem>>, vector<128x512xbf16>
    %cst_26 = arith.constant dense<0.000000e+00> : vector<32x512xf32>
    %24 = tpu.matmul %22, %23, %cst_26 {dimension_numbers = #tpu.dot_dimension_numbers<[1], [0], [0], [1], [0, 0, 1, 1], [], []>} : vector<32x128xbf16>, vector<128x512xbf16>, vector<32x512xf32> -> vector<32x512xf32>
    %25 = arith.addf %20, %24 : vector<32x512xf32>
    %c0_27 = arith.constant 0 : index
    %c0_28 = arith.constant 0 : index
    %26 = vector.load %arg10[%c0_27, %c0_28] : memref<1x512xf32, #tpu.memory_space<vmem>>, vector<1x512xf32>
    %27 = vector.broadcast %26 : vector<1x512xf32> to vector<32x512xf32>
    %28 = arith.addf %25, %27 : vector<32x512xf32>
    %29 = vector.shape_cast %28 : vector<32x512xf32> to vector<4x8x512xf32>
    %c0_29 = arith.constant 0 : index
    %c0_30 = arith.constant 0 : index
    %c0_31 = arith.constant 0 : index
    %30 = vector.load %arg17[%c0_29, %c0_30, %c0_31] : memref<4x8x512xf32, #tpu.memory_space<vmem>>, vector<4x8x512xf32>
    tpu.vector_store %arg17[%c0_29, %c0_30, %c0_31], %29 {strides = array<i32>} : memref<4x8x512xf32, #tpu.memory_space<vmem>>, vector<4x8x512xf32>,
    %c0_32 = arith.constant 0 : index
    %c0_33 = arith.constant 0 : index
    %31 = vector.load %arg7[%c0_32, %c0_33] : memref<128x512xbf16, #tpu.memory_space<vmem>>, vector<128x512xbf16>
    %c0_34 = arith.constant 0 : index
    %c0_35 = arith.constant 0 : index
    %32 = vector.load %arg8[%c0_34, %c0_35] : memref<128x512xbf16, #tpu.memory_space<vmem>>, vector<128x512xbf16>
    %c0_36 = arith.constant 0 : index
    %c0_37 = arith.constant 0 : index
    %33 = vector.load %arg12[%c0_36, %c0_37] : memref<8x128xf32, #tpu.memory_space<vmem>>, vector<8x128xf32>
    %c0_38 = arith.constant 0 : index
    %c0_39 = arith.constant 0 : index
    %34 = vector.load %arg13[%c0_38, %c0_39] : memref<8x128xf32, #tpu.memory_space<vmem>>, vector<8x128xf32>
    %c0_40 = arith.constant 0 : index
    %c0_41 = arith.constant 0 : index
    %35 = vector.load %arg14[%c0_40, %c0_41] : memref<8x128xf32, #tpu.memory_space<vmem>>, vector<8x128xf32>
    %c0_42 = arith.constant 0 : index
    %c0_43 = arith.constant 0 : index
    %36 = vector.load %arg15[%c0_42, %c0_43] : memref<8x128xf32, #tpu.memory_space<vmem>>, vector<8x128xf32>
    %c0_44 = arith.constant 0 : index
    %c0_45 = arith.constant 0 : index
    %c0_46 = arith.constant 0 : index
    %37 = vector.load %arg16[%c0_44, %c0_45, %c0_46] : memref<4x8x512xf32, #tpu.memory_space<vmem>>, vector<1x8x512xf32>
    %38 = vector.shape_cast %37 : vector<1x8x512xf32> to vector<8x512xf32>
    %39 = arith.truncf %33 : vector<8x128xf32> to vector<8x128xbf16>
    %cst_47 = arith.constant dense<0.000000e+00> : vector<8x512xf32>
    %40 = tpu.matmul %39, %31, %cst_47 {dimension_numbers = #tpu.dot_dimension_numbers<[1], [0], [0], [1], [0, 0, 1, 1], [], []>} : vector<8x128xbf16>, vector<128x512xbf16>, vector<8x512xf32> -> vector<8x512xf32>
    %41 = arith.addf %38, %40 : vector<8x512xf32>
    %42 = vector.extract_strided_slice %41 {offsets = [0, 0], sizes = [8, 128], strides = [1, 1]} : vector<8x512xf32> to vector<8x128xf32>
    %43 = arith.negf %42 : vector<8x128xf32>
    %44 = math.exp %43 : vector<8x128xf32>
    %cst_48 = arith.constant 1.000000e+00 : f32
    %45 = vector.broadcast %cst_48 : f32 to vector<8x128xf32>
    %46 = arith.addf %45, %44 : vector<8x128xf32>
    %47 = arith.divf %45, %46 : vector<8x128xf32>
    %48 = vector.extract_strided_slice %41 {offsets = [0, 128], sizes = [8, 128], strides = [1, 1]} : vector<8x512xf32> to vector<8x128xf32>
    %49 = arith.negf %48 : vector<8x128xf32>
    %50 = math.exp %49 : vector<8x128xf32>
    %cst_49 = arith.constant 1.000000e+00 : f32
    %51 = vector.broadcast %cst_49 : f32 to vector<8x128xf32>
    %52 = arith.addf %51, %50 : vector<8x128xf32>
    %53 = arith.divf %51, %52 : vector<8x128xf32>
    %54 = vector.extract_strided_slice %41 {offsets = [0, 256], sizes = [8, 128], strides = [1, 1]} : vector<8x512xf32> to vector<8x128xf32>
    %55 = math.tanh %54 : vector<8x128xf32>
    %56 = vector.extract_strided_slice %41 {offsets = [0, 384], sizes = [8, 128], strides = [1, 1]} : vector<8x512xf32> to vector<8x128xf32>
    %57 = arith.negf %56 : vector<8x128xf32>
    %58 = math.exp %57 : vector<8x128xf32>
    %cst_50 = arith.constant 1.000000e+00 : f32
    %59 = vector.broadcast %cst_50 : f32 to vector<8x128xf32>
    %60 = arith.addf %59, %58 : vector<8x128xf32>
    %61 = arith.divf %59, %60 : vector<8x128xf32>
    %62 = arith.mulf %53, %34 : vector<8x128xf32>
    %63 = arith.mulf %47, %55 : vector<8x128xf32>
    %64 = arith.addf %62, %63 : vector<8x128xf32>
    %65 = math.tanh %64 : vector<8x128xf32>
    %66 = arith.mulf %61, %65 : vector<8x128xf32>
    %c3 = arith.constant 3 : index
    %c0_51 = arith.constant 0 : index
    %c0_52 = arith.constant 0 : index
    %67 = vector.load %arg17[%c3, %c0_51, %c0_52] : memref<4x8x512xf32, #tpu.memory_space<vmem>>, vector<1x8x512xf32>
    %68 = vector.shape_cast %67 : vector<1x8x512xf32> to vector<8x512xf32>
    %69 = arith.truncf %35 : vector<8x128xf32> to vector<8x128xbf16>
    %cst_53 = arith.constant dense<0.000000e+00> : vector<8x512xf32>
    %70 = tpu.matmul %69, %32, %cst_53 {dimension_numbers = #tpu.dot_dimension_numbers<[1], [0], [0], [1], [0, 0, 1, 1], [], []>} : vector<8x128xbf16>, vector<128x512xbf16>, vector<8x512xf32> -> vector<8x512xf32>
    %71 = arith.addf %68, %70 : vector<8x512xf32>
    %72 = vector.extract_strided_slice %71 {offsets = [0, 0], sizes = [8, 128], strides = [1, 1]} : vector<8x512xf32> to vector<8x128xf32>
    %73 = arith.negf %72 : vector<8x128xf32>
    %74 = math.exp %73 : vector<8x128xf32>
    %cst_54 = arith.constant 1.000000e+00 : f32
    %75 = vector.broadcast %cst_54 : f32 to vector<8x128xf32>
    %76 = arith.addf %75, %74 : vector<8x128xf32>
    %77 = arith.divf %75, %76 : vector<8x128xf32>
    %78 = vector.extract_strided_slice %71 {offsets = [0, 128], sizes = [8, 128], strides = [1, 1]} : vector<8x512xf32> to vector<8x128xf32>
    %79 = arith.negf %78 : vector<8x128xf32>
    %80 = math.exp %79 : vector<8x128xf32>
    %cst_55 = arith.constant 1.000000e+00 : f32
    %81 = vector.broadcast %cst_55 : f32 to vector<8x128xf32>
    %82 = arith.addf %81, %80 : vector<8x128xf32>
    %83 = arith.divf %81, %82 : vector<8x128xf32>
    %84 = vector.extract_strided_slice %71 {offsets = [0, 256], sizes = [8, 128], strides = [1, 1]} : vector<8x512xf32> to vector<8x128xf32>
    %85 = math.tanh %84 : vector<8x128xf32>
    %86 = vector.extract_strided_slice %71 {offsets = [0, 384], sizes = [8, 128], strides = [1, 1]} : vector<8x512xf32> to vector<8x128xf32>
    %87 = arith.negf %86 : vector<8x128xf32>
    %88 = math.exp %87 : vector<8x128xf32>
    %cst_56 = arith.constant 1.000000e+00 : f32
    %89 = vector.broadcast %cst_56 : f32 to vector<8x128xf32>
    %90 = arith.addf %89, %88 : vector<8x128xf32>
    %91 = arith.divf %89, %90 : vector<8x128xf32>
    %92 = arith.mulf %83, %36 : vector<8x128xf32>
    %93 = arith.mulf %77, %85 : vector<8x128xf32>
    %94 = arith.addf %92, %93 : vector<8x128xf32>
    %95 = math.tanh %94 : vector<8x128xf32>
    %96 = arith.mulf %91, %95 : vector<8x128xf32>
    %c1 = arith.constant 1 : index
    %c0_57 = arith.constant 0 : index
    %c0_58 = arith.constant 0 : index
    %97 = vector.load %arg16[%c1, %c0_57, %c0_58] : memref<4x8x512xf32, #tpu.memory_space<vmem>>, vector<1x8x512xf32>
    %98 = vector.shape_cast %97 : vector<1x8x512xf32> to vector<8x512xf32>
    %99 = arith.truncf %66 : vector<8x128xf32> to vector<8x128xbf16>
    %cst_59 = arith.constant dense<0.000000e+00> : vector<8x512xf32>
    %100 = tpu.matmul %99, %31, %cst_59 {dimension_numbers = #tpu.dot_dimension_numbers<[1], [0], [0], [1], [0, 0, 1, 1], [], []>} : vector<8x128xbf16>, vector<128x512xbf16>, vector<8x512xf32> -> vector<8x512xf32>
    %101 = arith.addf %98, %100 : vector<8x512xf32>
    %102 = vector.extract_strided_slice %101 {offsets = [0, 0], sizes = [8, 128], strides = [1, 1]} : vector<8x512xf32> to vector<8x128xf32>
    %103 = arith.negf %102 : vector<8x128xf32>
    %104 = math.exp %103 : vector<8x128xf32>
    %cst_60 = arith.constant 1.000000e+00 : f32
    %105 = vector.broadcast %cst_60 : f32 to vector<8x128xf32>
    %106 = arith.addf %105, %104 : vector<8x128xf32>
    %107 = arith.divf %105, %106 : vector<8x128xf32>
    %108 = vector.extract_strided_slice %101 {offsets = [0, 128], sizes = [8, 128], strides = [1, 1]} : vector<8x512xf32> to vector<8x128xf32>
    %109 = arith.negf %108 : vector<8x128xf32>
    %110 = math.exp %109 : vector<8x128xf32>
    %cst_61 = arith.constant 1.000000e+00 : f32
    %111 = vector.broadcast %cst_61 : f32 to vector<8x128xf32>
    %112 = arith.addf %111, %110 : vector<8x128xf32>
    %113 = arith.divf %111, %112 : vector<8x128xf32>
    %114 = vector.extract_strided_slice %101 {offsets = [0, 256], sizes = [8, 128], strides = [1, 1]} : vector<8x512xf32> to vector<8x128xf32>
    %115 = math.tanh %114 : vector<8x128xf32>
    %116 = vector.extract_strided_slice %101 {offsets = [0, 384], sizes = [8, 128], strides = [1, 1]} : vector<8x512xf32> to vector<8x128xf32>
    %117 = arith.negf %116 : vector<8x128xf32>
    %118 = math.exp %117 : vector<8x128xf32>
    %cst_62 = arith.constant 1.000000e+00 : f32
    %119 = vector.broadcast %cst_62 : f32 to vector<8x128xf32>
    %120 = arith.addf %119, %118 : vector<8x128xf32>
    %121 = arith.divf %119, %120 : vector<8x128xf32>
    %122 = arith.mulf %113, %64 : vector<8x128xf32>
    %123 = arith.mulf %107, %115 : vector<8x128xf32>
    %124 = arith.addf %122, %123 : vector<8x128xf32>
    %125 = math.tanh %124 : vector<8x128xf32>
    %126 = arith.mulf %121, %125 : vector<8x128xf32>
    %c2 = arith.constant 2 : index
    %c0_63 = arith.constant 0 : index
    %c0_64 = arith.constant 0 : index
    %127 = vector.load %arg17[%c2, %c0_63, %c0_64] : memref<4x8x512xf32, #tpu.memory_space<vmem>>, vector<1x8x512xf32>
    %128 = vector.shape_cast %127 : vector<1x8x512xf32> to vector<8x512xf32>
    %129 = arith.truncf %96 : vector<8x128xf32> to vector<8x128xbf16>
    %cst_65 = arith.constant dense<0.000000e+00> : vector<8x512xf32>
    %130 = tpu.matmul %129, %32, %cst_65 {dimension_numbers = #tpu.dot_dimension_numbers<[1], [0], [0], [1], [0, 0, 1, 1], [], []>} : vector<8x128xbf16>, vector<128x512xbf16>, vector<8x512xf32> -> vector<8x512xf32>
    %131 = arith.addf %128, %130 : vector<8x512xf32>
    %132 = vector.extract_strided_slice %131 {offsets = [0, 0], sizes = [8, 128], strides = [1, 1]} : vector<8x512xf32> to vector<8x128xf32>
    %133 = arith.negf %132 : vector<8x128xf32>
    %134 = math.exp %133 : vector<8x128xf32>
    %cst_66 = arith.constant 1.000000e+00 : f32
    %135 = vector.broadcast %cst_66 : f32 to vector<8x128xf32>
    %136 = arith.addf %135, %134 : vector<8x128xf32>
    %137 = arith.divf %135, %136 : vector<8x128xf32>
    %138 = vector.extract_strided_slice %131 {offsets = [0, 128], sizes = [8, 128], strides = [1, 1]} : vector<8x512xf32> to vector<8x128xf32>
    %139 = arith.negf %138 : vector<8x128xf32>
    %140 = math.exp %139 : vector<8x128xf32>
    %cst_67 = arith.constant 1.000000e+00 : f32
    %141 = vector.broadcast %cst_67 : f32 to vector<8x128xf32>
    %142 = arith.addf %141, %140 : vector<8x128xf32>
    %143 = arith.divf %141, %142 : vector<8x128xf32>
    %144 = vector.extract_strided_slice %131 {offsets = [0, 256], sizes = [8, 128], strides = [1, 1]} : vector<8x512xf32> to vector<8x128xf32>
    %145 = math.tanh %144 : vector<8x128xf32>
    %146 = vector.extract_strided_slice %131 {offsets = [0, 384], sizes = [8, 128], strides = [1, 1]} : vector<8x512xf32> to vector<8x128xf32>
    %147 = arith.negf %146 : vector<8x128xf32>
    %148 = math.exp %147 : vector<8x128xf32>
    %cst_68 = arith.constant 1.000000e+00 : f32
    %149 = vector.broadcast %cst_68 : f32 to vector<8x128xf32>
    %150 = arith.addf %149, %148 : vector<8x128xf32>
    %151 = arith.divf %149, %150 : vector<8x128xf32>
    %152 = arith.mulf %143, %94 : vector<8x128xf32>
    %153 = arith.mulf %137, %145 : vector<8x128xf32>
    %154 = arith.addf %152, %153 : vector<8x128xf32>
    %155 = math.tanh %154 : vector<8x128xf32>
    %156 = arith.mulf %151, %155 : vector<8x128xf32>
    %157 = arith.maximumf %66, %126 : vector<8x128xf32>
    %158 = arith.maximumf %96, %156 : vector<8x128xf32>
    %c2_69 = arith.constant 2 : index
    %c0_70 = arith.constant 0 : index
    %c0_71 = arith.constant 0 : index
    %159 = vector.load %arg16[%c2_69, %c0_70, %c0_71] : memref<4x8x512xf32, #tpu.memory_space<vmem>>, vector<1x8x512xf32>
    %160 = vector.shape_cast %159 : vector<1x8x512xf32> to vector<8x512xf32>
    %161 = arith.truncf %126 : vector<8x128xf32> to vector<8x128xbf16>
    %cst_72 = arith.constant dense<0.000000e+00> : vector<8x512xf32>
    %162 = tpu.matmul %161, %31, %cst_72 {dimension_numbers = #tpu.dot_dimension_numbers<[1], [0], [0], [1], [0, 0, 1, 1], [], []>} : vector<8x128xbf16>, vector<128x512xbf16>, vector<8x512xf32> -> vector<8x512xf32>
    %163 = arith.addf %160, %162 : vector<8x512xf32>
    %164 = vector.extract_strided_slice %163 {offsets = [0, 0], sizes = [8, 128], strides = [1, 1]} : vector<8x512xf32> to vector<8x128xf32>
    %165 = arith.negf %164 : vector<8x128xf32>
    %166 = math.exp %165 : vector<8x128xf32>
    %cst_73 = arith.constant 1.000000e+00 : f32
    %167 = vector.broadcast %cst_73 : f32 to vector<8x128xf32>
    %168 = arith.addf %167, %166 : vector<8x128xf32>
    %169 = arith.divf %167, %168 : vector<8x128xf32>
    %170 = vector.extract_strided_slice %163 {offsets = [0, 128], sizes = [8, 128], strides = [1, 1]} : vector<8x512xf32> to vector<8x128xf32>
    %171 = arith.negf %170 : vector<8x128xf32>
    %172 = math.exp %171 : vector<8x128xf32>
    %cst_74 = arith.constant 1.000000e+00 : f32
    %173 = vector.broadcast %cst_74 : f32 to vector<8x128xf32>
    %174 = arith.addf %173, %172 : vector<8x128xf32>
    %175 = arith.divf %173, %174 : vector<8x128xf32>
    %176 = vector.extract_strided_slice %163 {offsets = [0, 256], sizes = [8, 128], strides = [1, 1]} : vector<8x512xf32> to vector<8x128xf32>
    %177 = math.tanh %176 : vector<8x128xf32>
    %178 = vector.extract_strided_slice %163 {offsets = [0, 384], sizes = [8, 128], strides = [1, 1]} : vector<8x512xf32> to vector<8x128xf32>
    %179 = arith.negf %178 : vector<8x128xf32>
    %180 = math.exp %179 : vector<8x128xf32>
    %cst_75 = arith.constant 1.000000e+00 : f32
    %181 = vector.broadcast %cst_75 : f32 to vector<8x128xf32>
    %182 = arith.addf %181, %180 : vector<8x128xf32>
    %183 = arith.divf %181, %182 : vector<8x128xf32>
    %184 = arith.mulf %175, %124 : vector<8x128xf32>
    %185 = arith.mulf %169, %177 : vector<8x128xf32>
    %186 = arith.addf %184, %185 : vector<8x128xf32>
    %187 = math.tanh %186 : vector<8x128xf32>
    %188 = arith.mulf %183, %187 : vector<8x128xf32>
    %c1_76 = arith.constant 1 : index
    %c0_77 = arith.constant 0 : index
    %c0_78 = arith.constant 0 : index
    %189 = vector.load %arg17[%c1_76, %c0_77, %c0_78] : memref<4x8x512xf32, #tpu.memory_space<vmem>>, vector<1x8x512xf32>
    %190 = vector.shape_cast %189 : vector<1x8x512xf32> to vector<8x512xf32>
    %191 = arith.truncf %156 : vector<8x128xf32> to vector<8x128xbf16>
    %cst_79 = arith.constant dense<0.000000e+00> : vector<8x512xf32>
    %192 = tpu.matmul %191, %32, %cst_79 {dimension_numbers = #tpu.dot_dimension_numbers<[1], [0], [0], [1], [0, 0, 1, 1], [], []>} : vector<8x128xbf16>, vector<128x512xbf16>, vector<8x512xf32> -> vector<8x512xf32>
    %193 = arith.addf %190, %192 : vector<8x512xf32>
    %194 = vector.extract_strided_slice %193 {offsets = [0, 0], sizes = [8, 128], strides = [1, 1]} : vector<8x512xf32> to vector<8x128xf32>
    %195 = arith.negf %194 : vector<8x128xf32>
    %196 = math.exp %195 : vector<8x128xf32>
    %cst_80 = arith.constant 1.000000e+00 : f32
    %197 = vector.broadcast %cst_80 : f32 to vector<8x128xf32>
    %198 = arith.addf %197, %196 : vector<8x128xf32>
    %199 = arith.divf %197, %198 : vector<8x128xf32>
    %200 = vector.extract_strided_slice %193 {offsets = [0, 128], sizes = [8, 128], strides = [1, 1]} : vector<8x512xf32> to vector<8x128xf32>
    %201 = arith.negf %200 : vector<8x128xf32>
    %202 = math.exp %201 : vector<8x128xf32>
    %cst_81 = arith.constant 1.000000e+00 : f32
    %203 = vector.broadcast %cst_81 : f32 to vector<8x128xf32>
    %204 = arith.addf %203, %202 : vector<8x128xf32>
    %205 = arith.divf %203, %204 : vector<8x128xf32>
    %206 = vector.extract_strided_slice %193 {offsets = [0, 256], sizes = [8, 128], strides = [1, 1]} : vector<8x512xf32> to vector<8x128xf32>
    %207 = math.tanh %206 : vector<8x128xf32>
    %208 = vector.extract_strided_slice %193 {offsets = [0, 384], sizes = [8, 128], strides = [1, 1]} : vector<8x512xf32> to vector<8x128xf32>
    %209 = arith.negf %208 : vector<8x128xf32>
    %210 = math.exp %209 : vector<8x128xf32>
    %cst_82 = arith.constant 1.000000e+00 : f32
    %211 = vector.broadcast %cst_82 : f32 to vector<8x128xf32>
    %212 = arith.addf %211, %210 : vector<8x128xf32>
    %213 = arith.divf %211, %212 : vector<8x128xf32>
    %214 = arith.mulf %205, %154 : vector<8x128xf32>
    %215 = arith.mulf %199, %207 : vector<8x128xf32>
    %216 = arith.addf %214, %215 : vector<8x128xf32>
    %217 = math.tanh %216 : vector<8x128xf32>
    %218 = arith.mulf %213, %217 : vector<8x128xf32>
    %219 = arith.maximumf %157, %188 : vector<8x128xf32>
    %220 = arith.maximumf %158, %218 : vector<8x128xf32>
    %c3_83 = arith.constant 3 : index
    %c0_84 = arith.constant 0 : index
    %c0_85 = arith.constant 0 : index
    %221 = vector.load %arg16[%c3_83, %c0_84, %c0_85] : memref<4x8x512xf32, #tpu.memory_space<vmem>>, vector<1x8x512xf32>
    %222 = vector.shape_cast %221 : vector<1x8x512xf32> to vector<8x512xf32>
    %223 = arith.truncf %188 : vector<8x128xf32> to vector<8x128xbf16>
    %cst_86 = arith.constant dense<0.000000e+00> : vector<8x512xf32>
    %224 = tpu.matmul %223, %31, %cst_86 {dimension_numbers = #tpu.dot_dimension_numbers<[1], [0], [0], [1], [0, 0, 1, 1], [], []>} : vector<8x128xbf16>, vector<128x512xbf16>, vector<8x512xf32> -> vector<8x512xf32>
    %225 = arith.addf %222, %224 : vector<8x512xf32>
    %226 = vector.extract_strided_slice %225 {offsets = [0, 0], sizes = [8, 128], strides = [1, 1]} : vector<8x512xf32> to vector<8x128xf32>
    %227 = arith.negf %226 : vector<8x128xf32>
    %228 = math.exp %227 : vector<8x128xf32>
    %cst_87 = arith.constant 1.000000e+00 : f32
    %229 = vector.broadcast %cst_87 : f32 to vector<8x128xf32>
    %230 = arith.addf %229, %228 : vector<8x128xf32>
    %231 = arith.divf %229, %230 : vector<8x128xf32>
    %232 = vector.extract_strided_slice %225 {offsets = [0, 128], sizes = [8, 128], strides = [1, 1]} : vector<8x512xf32> to vector<8x128xf32>
    %233 = arith.negf %232 : vector<8x128xf32>
    %234 = math.exp %233 : vector<8x128xf32>
    %cst_88 = arith.constant 1.000000e+00 : f32
    %235 = vector.broadcast %cst_88 : f32 to vector<8x128xf32>
    %236 = arith.addf %235, %234 : vector<8x128xf32>
    %237 = arith.divf %235, %236 : vector<8x128xf32>
    %238 = vector.extract_strided_slice %225 {offsets = [0, 256], sizes = [8, 128], strides = [1, 1]} : vector<8x512xf32> to vector<8x128xf32>
    %239 = math.tanh %238 : vector<8x128xf32>
    %240 = vector.extract_strided_slice %225 {offsets = [0, 384], sizes = [8, 128], strides = [1, 1]} : vector<8x512xf32> to vector<8x128xf32>
    %241 = arith.negf %240 : vector<8x128xf32>
    %242 = math.exp %241 : vector<8x128xf32>
    %cst_89 = arith.constant 1.000000e+00 : f32
    %243 = vector.broadcast %cst_89 : f32 to vector<8x128xf32>
    %244 = arith.addf %243, %242 : vector<8x128xf32>
    %245 = arith.divf %243, %244 : vector<8x128xf32>
    %246 = arith.mulf %237, %186 : vector<8x128xf32>
    %247 = arith.mulf %231, %239 : vector<8x128xf32>
    %248 = arith.addf %246, %247 : vector<8x128xf32>
    %249 = math.tanh %248 : vector<8x128xf32>
    %250 = arith.mulf %245, %249 : vector<8x128xf32>
    %c0_90 = arith.constant 0 : index
    %c0_91 = arith.constant 0 : index
    %c0_92 = arith.constant 0 : index
    %251 = vector.load %arg17[%c0_90, %c0_91, %c0_92] : memref<4x8x512xf32, #tpu.memory_space<vmem>>, vector<1x8x512xf32>
    %252 = vector.shape_cast %251 : vector<1x8x512xf32> to vector<8x512xf32>
    %253 = arith.truncf %218 : vector<8x128xf32> to vector<8x128xbf16>
    %cst_93 = arith.constant dense<0.000000e+00> : vector<8x512xf32>
    %254 = tpu.matmul %253, %32, %cst_93 {dimension_numbers = #tpu.dot_dimension_numbers<[1], [0], [0], [1], [0, 0, 1, 1], [], []>} : vector<8x128xbf16>, vector<128x512xbf16>, vector<8x512xf32> -> vector<8x512xf32>
    %255 = arith.addf %252, %254 : vector<8x512xf32>
    %256 = vector.extract_strided_slice %255 {offsets = [0, 0], sizes = [8, 128], strides = [1, 1]} : vector<8x512xf32> to vector<8x128xf32>
    %257 = arith.negf %256 : vector<8x128xf32>
    %258 = math.exp %257 : vector<8x128xf32>
    %cst_94 = arith.constant 1.000000e+00 : f32
    %259 = vector.broadcast %cst_94 : f32 to vector<8x128xf32>
    %260 = arith.addf %259, %258 : vector<8x128xf32>
    %261 = arith.divf %259, %260 : vector<8x128xf32>
    %262 = vector.extract_strided_slice %255 {offsets = [0, 128], sizes = [8, 128], strides = [1, 1]} : vector<8x512xf32> to vector<8x128xf32>
    %263 = arith.negf %262 : vector<8x128xf32>
    %264 = math.exp %263 : vector<8x128xf32>
    %cst_95 = arith.constant 1.000000e+00 : f32
    %265 = vector.broadcast %cst_95 : f32 to vector<8x128xf32>
    %266 = arith.addf %265, %264 : vector<8x128xf32>
    %267 = arith.divf %265, %266 : vector<8x128xf32>
    %268 = vector.extract_strided_slice %255 {offsets = [0, 256], sizes = [8, 128], strides = [1, 1]} : vector<8x512xf32> to vector<8x128xf32>
    %269 = math.tanh %268 : vector<8x128xf32>
    %270 = vector.extract_strided_slice %255 {offsets = [0, 384], sizes = [8, 128], strides = [1, 1]} : vector<8x512xf32> to vector<8x128xf32>
    %271 = arith.negf %270 : vector<8x128xf32>
    %272 = math.exp %271 : vector<8x128xf32>
    %cst_96 = arith.constant 1.000000e+00 : f32
    %273 = vector.broadcast %cst_96 : f32 to vector<8x128xf32>
    %274 = arith.addf %273, %272 : vector<8x128xf32>
    %275 = arith.divf %273, %274 : vector<8x128xf32>
    %276 = arith.mulf %267, %216 : vector<8x128xf32>
    %277 = arith.mulf %261, %269 : vector<8x128xf32>
    %278 = arith.addf %276, %277 : vector<8x128xf32>
    %279 = math.tanh %278 : vector<8x128xf32>
    %280 = arith.mulf %275, %279 : vector<8x128xf32>
    %281 = arith.maximumf %219, %250 : vector<8x128xf32>
    %282 = arith.maximumf %220, %280 : vector<8x128xf32>
    %c0_97 = arith.constant 0 : index
    %c0_98 = arith.constant 0 : index
    %283 = vector.load %arg12[%c0_97, %c0_98] : memref<8x128xf32, #tpu.memory_space<vmem>>, vector<8x128xf32>
    tpu.vector_store %arg12[%c0_97, %c0_98], %250 {strides = array<i32>} : memref<8x128xf32, #tpu.memory_space<vmem>>, vector<8x128xf32>,
    %c0_99 = arith.constant 0 : index
    %c0_100 = arith.constant 0 : index
    %284 = vector.load %arg13[%c0_99, %c0_100] : memref<8x128xf32, #tpu.memory_space<vmem>>, vector<8x128xf32>
    tpu.vector_store %arg13[%c0_99, %c0_100], %248 {strides = array<i32>} : memref<8x128xf32, #tpu.memory_space<vmem>>, vector<8x128xf32>,
    %c0_101 = arith.constant 0 : index
    %c0_102 = arith.constant 0 : index
    %285 = vector.load %arg14[%c0_101, %c0_102] : memref<8x128xf32, #tpu.memory_space<vmem>>, vector<8x128xf32>
    tpu.vector_store %arg14[%c0_101, %c0_102], %280 {strides = array<i32>} : memref<8x128xf32, #tpu.memory_space<vmem>>, vector<8x128xf32>,
    %c0_103 = arith.constant 0 : index
    %c0_104 = arith.constant 0 : index
    %286 = vector.load %arg15[%c0_103, %c0_104] : memref<8x128xf32, #tpu.memory_space<vmem>>, vector<8x128xf32>
    tpu.vector_store %arg15[%c0_103, %c0_104], %278 {strides = array<i32>} : memref<8x128xf32, #tpu.memory_space<vmem>>, vector<8x128xf32>,
    %c0_105 = arith.constant 0 : index
    %c0_106 = arith.constant 0 : index
    %287 = vector.load %arg11[%c0_105, %c0_106] : memref<8x256xf32, #tpu.memory_space<vmem>>, vector<8x128xf32>
    %288 = arith.maximumf %287, %281 : vector<8x128xf32>
    %c0_107 = arith.constant 0 : index
    %c0_108 = arith.constant 0 : index
    %289 = vector.load %arg11[%c0_107, %c0_108] : memref<8x256xf32, #tpu.memory_space<vmem>>, vector<8x128xf32>
    tpu.vector_store %arg11[%c0_107, %c0_108], %288 {strides = array<i32>} : memref<8x256xf32, #tpu.memory_space<vmem>>, vector<8x128xf32>,
    %c0_109 = arith.constant 0 : index
    %c128_110 = arith.constant 128 : index
    %290 = vector.load %arg11[%c0_109, %c128_110] : memref<8x256xf32, #tpu.memory_space<vmem>>, vector<8x128xf32>
    %291 = arith.maximumf %290, %282 : vector<8x128xf32>
    %c0_111 = arith.constant 0 : index
    %c128_112 = arith.constant 128 : index
    %292 = vector.load %arg11[%c0_111, %c128_112] : memref<8x256xf32, #tpu.memory_space<vmem>>, vector<8x128xf32>
    tpu.vector_store %arg11[%c0_111, %c128_112], %291 {strides = array<i32>} : memref<8x256xf32, #tpu.memory_space<vmem>>, vector<8x128xf32>,
    return
  }
  func.func @transform_0(%arg0: i32) -> (i32, i32, i32) {
    %c0_i32 = arith.constant 0 : i32
    %c0_i32_0 = arith.constant 0 : i32
    %c0_i32_1 = arith.constant 0 : i32
    return %arg0, %c0_i32, %c0_i32_0 : i32, i32, i32
  }
  func.func @transform_1(%arg0: i32) -> (i32, i32, i32) {
    %c0_i32 = arith.constant 0 : i32
    %c0_i32_0 = arith.constant 0 : i32
    %c0_i32_1 = arith.constant 0 : i32
    return %arg0, %c0_i32, %c0_i32_0 : i32, i32, i32
  }
  func.func @transform_2(%arg0: i32) -> (i32, i32, i32) {
    %c1_i32 = arith.constant 1 : i32
    %0 = arith.subi %c1_i32, %arg0 : i32
    %c0_i32 = arith.constant 0 : i32
    %c0_i32_0 = arith.constant 0 : i32
    %c0_i32_1 = arith.constant 0 : i32
    return %0, %c0_i32, %c0_i32_0 : i32, i32, i32
  }
  func.func @transform_3(%arg0: i32) -> (i32, i32, i32) {
    %c1_i32 = arith.constant 1 : i32
    %0 = arith.subi %c1_i32, %arg0 : i32
    %c0_i32 = arith.constant 0 : i32
    %c0_i32_0 = arith.constant 0 : i32
    %c0_i32_1 = arith.constant 0 : i32
    return %0, %c0_i32, %c0_i32_0 : i32, i32, i32
  }
  func.func @transform_4(%arg0: i32) -> (i32, i32) {
    %c0_i32 = arith.constant 0 : i32
    %c0_i32_0 = arith.constant 0 : i32
    %c0_i32_1 = arith.constant 0 : i32
    return %c0_i32, %c0_i32_0 : i32, i32
  }
  func.func @transform_5(%arg0: i32) -> (i32, i32) {
    %c0_i32 = arith.constant 0 : i32
    %c0_i32_0 = arith.constant 0 : i32
    %c0_i32_1 = arith.constant 0 : i32
    return %c0_i32, %c0_i32_0 : i32, i32
  }
  func.func @transform_6(%arg0: i32) -> (i32, i32) {
    %c0_i32 = arith.constant 0 : i32
    %c0_i32_0 = arith.constant 0 : i32
    %c0_i32_1 = arith.constant 0 : i32
    return %c0_i32, %c0_i32_0 : i32, i32
  }
  func.func @transform_7(%arg0: i32) -> (i32, i32) {
    %c0_i32 = arith.constant 0 : i32
    %c0_i32_0 = arith.constant 0 : i32
    %c0_i32_1 = arith.constant 0 : i32
    return %c0_i32, %c0_i32_0 : i32, i32
  }
  func.func @transform_8(%arg0: i32) -> (i32, i32) {
    %c0_i32 = arith.constant 0 : i32
    %c0_i32_0 = arith.constant 0 : i32
    %c0_i32_1 = arith.constant 0 : i32
    return %c0_i32, %c0_i32_0 : i32, i32
  }
  func.func @transform_9(%arg0: i32) -> (i32, i32) {
    %c0_i32 = arith.constant 0 : i32
    %c0_i32_0 = arith.constant 0 : i32
    %c0_i32_1 = arith.constant 0 : i32
    return %c0_i32, %c0_i32_0 : i32, i32
  }
  func.func @transform_10(%arg0: i32) -> (i32, i32) {
    %c0_i32 = arith.constant 0 : i32
    %c0_i32_0 = arith.constant 0 : i32
    %c0_i32_1 = arith.constant 0 : i32
    return %c0_i32, %c0_i32_0 : i32, i32
  }
}

module attributes {stable_mosaic.version = 11 : i64} {
  func.func @_bilstm_layer_kernel(%arg0: i32, %arg1: memref<4x8x128xbf16, #tpu.memory_space<vmem>>, %arg2: memref<4x8x128xbf16, #tpu.memory_space<vmem>>, %arg3: memref<128x512xbf16, #tpu.memory_space<vmem>>, %arg4: memref<128x512xbf16, #tpu.memory_space<vmem>>, %arg5: memref<128x512xbf16, #tpu.memory_space<vmem>>, %arg6: memref<128x512xbf16, #tpu.memory_space<vmem>>, %arg7: memref<1x512xf32, #tpu.memory_space<vmem>>, %arg8: memref<1x512xf32, #tpu.memory_space<vmem>>, %arg9: memref<4x8x128xbf16, #tpu.memory_space<vmem>>, %arg10: memref<4x8x128xbf16, #tpu.memory_space<vmem>>, %arg11: memref<8x128xf32, #tpu.memory_space<vmem>>, %arg12: memref<8x128xf32, #tpu.memory_space<vmem>>, %arg13: memref<8x128xf32, #tpu.memory_space<vmem>>, %arg14: memref<8x128xf32, #tpu.memory_space<vmem>>, %arg15: memref<4x8x512xf32, #tpu.memory_space<vmem>>, %arg16: memref<4x8x512xf32, #tpu.memory_space<vmem>>) attributes {dimension_semantics = [#tpu.dimension_semantics<arbitrary>], iteration_bounds = array<i64: 2>, scalar_prefetch = 0 : i64, scratch_operands = 6 : i64, tpu.core_type = #tpu.core_type<tc>, window_params = [{transform_indices = @transform_0, window_bounds = array<i64: 4, 8, 128>}, {transform_indices = @transform_1, window_bounds = array<i64: 4, 8, 128>}, {pipeline_mode = #tpu.pipeline_mode<synchronous>, transform_indices = @transform_2, window_bounds = array<i64: 128, 512>}, {pipeline_mode = #tpu.pipeline_mode<synchronous>, transform_indices = @transform_3, window_bounds = array<i64: 128, 512>}, {pipeline_mode = #tpu.pipeline_mode<synchronous>, transform_indices = @transform_4, window_bounds = array<i64: 128, 512>}, {pipeline_mode = #tpu.pipeline_mode<synchronous>, transform_indices = @transform_5, window_bounds = array<i64: 128, 512>}, {pipeline_mode = #tpu.pipeline_mode<synchronous>, transform_indices = @transform_6, window_bounds = array<i64: 1, 512>}, {pipeline_mode = #tpu.pipeline_mode<synchronous>, transform_indices = @transform_7, window_bounds = array<i64: 1, 512>}, {transform_indices = @transform_8, window_bounds = array<i64: 4, 8, 128>}, {transform_indices = @transform_9, window_bounds = array<i64: 4, 8, 128>}]} {
    %c0_i32 = arith.constant 0 : i32
    %0 = arith.cmpi eq, %arg0, %c0_i32 : i32
    %1 = arith.extui %0 : i1 to i32
    %c0_i32_0 = arith.constant 0 : i32
    %2 = arith.cmpi ne, %1, %c0_i32_0 : i32
    scf.if %2 {
      %cst_118 = arith.constant 0.000000e+00 : f32
      %303 = vector.broadcast %cst_118 : f32 to vector<8x128xf32>
      %c0_119 = arith.constant 0 : index
      %c0_120 = arith.constant 0 : index
      %304 = vector.load %arg11[%c0_119, %c0_120] : memref<8x128xf32, #tpu.memory_space<vmem>>, vector<8x128xf32>
      tpu.vector_store %arg11[%c0_119, %c0_120], %303 {strides = array<i32>} : memref<8x128xf32, #tpu.memory_space<vmem>>, vector<8x128xf32>,
      %cst_121 = arith.constant 0.000000e+00 : f32
      %305 = vector.broadcast %cst_121 : f32 to vector<8x128xf32>
      %c0_122 = arith.constant 0 : index
      %c0_123 = arith.constant 0 : index
      %306 = vector.load %arg12[%c0_122, %c0_123] : memref<8x128xf32, #tpu.memory_space<vmem>>, vector<8x128xf32>
      tpu.vector_store %arg12[%c0_122, %c0_123], %305 {strides = array<i32>} : memref<8x128xf32, #tpu.memory_space<vmem>>, vector<8x128xf32>,
      %cst_124 = arith.constant 0.000000e+00 : f32
      %307 = vector.broadcast %cst_124 : f32 to vector<8x128xf32>
      %c0_125 = arith.constant 0 : index
      %c0_126 = arith.constant 0 : index
      %308 = vector.load %arg13[%c0_125, %c0_126] : memref<8x128xf32, #tpu.memory_space<vmem>>, vector<8x128xf32>
      tpu.vector_store %arg13[%c0_125, %c0_126], %307 {strides = array<i32>} : memref<8x128xf32, #tpu.memory_space<vmem>>, vector<8x128xf32>,
      %cst_127 = arith.constant 0.000000e+00 : f32
      %309 = vector.broadcast %cst_127 : f32 to vector<8x128xf32>
      %c0_128 = arith.constant 0 : index
      %c0_129 = arith.constant 0 : index
      %310 = vector.load %arg14[%c0_128, %c0_129] : memref<8x128xf32, #tpu.memory_space<vmem>>, vector<8x128xf32>
      tpu.vector_store %arg14[%c0_128, %c0_129], %309 {strides = array<i32>} : memref<8x128xf32, #tpu.memory_space<vmem>>, vector<8x128xf32>,
    } else {
    }
    %c0 = arith.constant 0 : index
    %c0_1 = arith.constant 0 : index
    %c0_2 = arith.constant 0 : index
    %3 = vector.load %arg1[%c0, %c0_1, %c0_2] : memref<4x8x128xbf16, #tpu.memory_space<vmem>>, vector<4x8x128xbf16>
    %4 = vector.shape_cast %3 : vector<4x8x128xbf16> to vector<32x128xbf16>
    %c0_3 = arith.constant 0 : index
    %c0_4 = arith.constant 0 : index
    %5 = vector.load %arg3[%c0_3, %c0_4] : memref<128x512xbf16, #tpu.memory_space<vmem>>, vector<128x512xbf16>
    %cst = arith.constant dense<0.000000e+00> : vector<32x512xf32>
    %6 = tpu.matmul %4, %5, %cst {dimension_numbers = #tpu.dot_dimension_numbers<[1], [0], [0], [1], [0, 0, 1, 1], [], []>} : vector<32x128xbf16>, vector<128x512xbf16>, vector<32x512xf32> -> vector<32x512xf32>
    %c0_5 = arith.constant 0 : index
    %c0_6 = arith.constant 0 : index
    %7 = vector.load %arg7[%c0_5, %c0_6] : memref<1x512xf32, #tpu.memory_space<vmem>>, vector<1x512xf32>
    %8 = vector.broadcast %7 : vector<1x512xf32> to vector<32x512xf32>
    %9 = arith.addf %6, %8 : vector<32x512xf32>
    %10 = vector.shape_cast %9 : vector<32x512xf32> to vector<4x8x512xf32>
    %c0_7 = arith.constant 0 : index
    %c0_8 = arith.constant 0 : index
    %c0_9 = arith.constant 0 : index
    %11 = vector.load %arg15[%c0_7, %c0_8, %c0_9] : memref<4x8x512xf32, #tpu.memory_space<vmem>>, vector<4x8x512xf32>
    tpu.vector_store %arg15[%c0_7, %c0_8, %c0_9], %10 {strides = array<i32>} : memref<4x8x512xf32, #tpu.memory_space<vmem>>, vector<4x8x512xf32>,
    %c0_10 = arith.constant 0 : index
    %c0_11 = arith.constant 0 : index
    %c0_12 = arith.constant 0 : index
    %12 = vector.load %arg2[%c0_10, %c0_11, %c0_12] : memref<4x8x128xbf16, #tpu.memory_space<vmem>>, vector<4x8x128xbf16>
    %13 = vector.shape_cast %12 : vector<4x8x128xbf16> to vector<32x128xbf16>
    %c0_13 = arith.constant 0 : index
    %c0_14 = arith.constant 0 : index
    %14 = vector.load %arg4[%c0_13, %c0_14] : memref<128x512xbf16, #tpu.memory_space<vmem>>, vector<128x512xbf16>
    %cst_15 = arith.constant dense<0.000000e+00> : vector<32x512xf32>
    %15 = tpu.matmul %13, %14, %cst_15 {dimension_numbers = #tpu.dot_dimension_numbers<[1], [0], [0], [1], [0, 0, 1, 1], [], []>} : vector<32x128xbf16>, vector<128x512xbf16>, vector<32x512xf32> -> vector<32x512xf32>
    %c0_16 = arith.constant 0 : index
    %c0_17 = arith.constant 0 : index
    %16 = vector.load %arg8[%c0_16, %c0_17] : memref<1x512xf32, #tpu.memory_space<vmem>>, vector<1x512xf32>
    %17 = vector.broadcast %16 : vector<1x512xf32> to vector<32x512xf32>
    %18 = arith.addf %15, %17 : vector<32x512xf32>
    %19 = vector.shape_cast %18 : vector<32x512xf32> to vector<4x8x512xf32>
    %c0_18 = arith.constant 0 : index
    %c0_19 = arith.constant 0 : index
    %c0_20 = arith.constant 0 : index
    %20 = vector.load %arg16[%c0_18, %c0_19, %c0_20] : memref<4x8x512xf32, #tpu.memory_space<vmem>>, vector<4x8x512xf32>
    tpu.vector_store %arg16[%c0_18, %c0_19, %c0_20], %19 {strides = array<i32>} : memref<4x8x512xf32, #tpu.memory_space<vmem>>, vector<4x8x512xf32>,
    %c0_21 = arith.constant 0 : index
    %c0_22 = arith.constant 0 : index
    %21 = vector.load %arg5[%c0_21, %c0_22] : memref<128x512xbf16, #tpu.memory_space<vmem>>, vector<128x512xbf16>
    %c0_23 = arith.constant 0 : index
    %c0_24 = arith.constant 0 : index
    %22 = vector.load %arg6[%c0_23, %c0_24] : memref<128x512xbf16, #tpu.memory_space<vmem>>, vector<128x512xbf16>
    %c0_25 = arith.constant 0 : index
    %c0_26 = arith.constant 0 : index
    %23 = vector.load %arg11[%c0_25, %c0_26] : memref<8x128xf32, #tpu.memory_space<vmem>>, vector<8x128xf32>
    %c0_27 = arith.constant 0 : index
    %c0_28 = arith.constant 0 : index
    %24 = vector.load %arg12[%c0_27, %c0_28] : memref<8x128xf32, #tpu.memory_space<vmem>>, vector<8x128xf32>
    %c0_29 = arith.constant 0 : index
    %c0_30 = arith.constant 0 : index
    %25 = vector.load %arg13[%c0_29, %c0_30] : memref<8x128xf32, #tpu.memory_space<vmem>>, vector<8x128xf32>
    %c0_31 = arith.constant 0 : index
    %c0_32 = arith.constant 0 : index
    %26 = vector.load %arg14[%c0_31, %c0_32] : memref<8x128xf32, #tpu.memory_space<vmem>>, vector<8x128xf32>
    %c0_33 = arith.constant 0 : index
    %c0_34 = arith.constant 0 : index
    %c0_35 = arith.constant 0 : index
    %27 = vector.load %arg15[%c0_33, %c0_34, %c0_35] : memref<4x8x512xf32, #tpu.memory_space<vmem>>, vector<1x8x512xf32>
    %28 = vector.shape_cast %27 : vector<1x8x512xf32> to vector<8x512xf32>
    %29 = arith.truncf %23 : vector<8x128xf32> to vector<8x128xbf16>
    %cst_36 = arith.constant dense<0.000000e+00> : vector<8x512xf32>
    %30 = tpu.matmul %29, %21, %cst_36 {dimension_numbers = #tpu.dot_dimension_numbers<[1], [0], [0], [1], [0, 0, 1, 1], [], []>} : vector<8x128xbf16>, vector<128x512xbf16>, vector<8x512xf32> -> vector<8x512xf32>
    %31 = arith.addf %28, %30 : vector<8x512xf32>
    %32 = vector.extract_strided_slice %31 {offsets = [0, 0], sizes = [8, 128], strides = [1, 1]} : vector<8x512xf32> to vector<8x128xf32>
    %33 = arith.negf %32 : vector<8x128xf32>
    %34 = math.exp %33 : vector<8x128xf32>
    %cst_37 = arith.constant 1.000000e+00 : f32
    %35 = vector.broadcast %cst_37 : f32 to vector<8x128xf32>
    %36 = arith.addf %35, %34 : vector<8x128xf32>
    %37 = arith.divf %35, %36 : vector<8x128xf32>
    %38 = vector.extract_strided_slice %31 {offsets = [0, 128], sizes = [8, 128], strides = [1, 1]} : vector<8x512xf32> to vector<8x128xf32>
    %39 = arith.negf %38 : vector<8x128xf32>
    %40 = math.exp %39 : vector<8x128xf32>
    %cst_38 = arith.constant 1.000000e+00 : f32
    %41 = vector.broadcast %cst_38 : f32 to vector<8x128xf32>
    %42 = arith.addf %41, %40 : vector<8x128xf32>
    %43 = arith.divf %41, %42 : vector<8x128xf32>
    %44 = vector.extract_strided_slice %31 {offsets = [0, 256], sizes = [8, 128], strides = [1, 1]} : vector<8x512xf32> to vector<8x128xf32>
    %45 = math.tanh %44 : vector<8x128xf32>
    %46 = vector.extract_strided_slice %31 {offsets = [0, 384], sizes = [8, 128], strides = [1, 1]} : vector<8x512xf32> to vector<8x128xf32>
    %47 = arith.negf %46 : vector<8x128xf32>
    %48 = math.exp %47 : vector<8x128xf32>
    %cst_39 = arith.constant 1.000000e+00 : f32
    %49 = vector.broadcast %cst_39 : f32 to vector<8x128xf32>
    %50 = arith.addf %49, %48 : vector<8x128xf32>
    %51 = arith.divf %49, %50 : vector<8x128xf32>
    %52 = arith.mulf %43, %24 : vector<8x128xf32>
    %53 = arith.mulf %37, %45 : vector<8x128xf32>
    %54 = arith.addf %52, %53 : vector<8x128xf32>
    %55 = math.tanh %54 : vector<8x128xf32>
    %56 = arith.mulf %51, %55 : vector<8x128xf32>
    %c3 = arith.constant 3 : index
    %c0_40 = arith.constant 0 : index
    %c0_41 = arith.constant 0 : index
    %57 = vector.load %arg16[%c3, %c0_40, %c0_41] : memref<4x8x512xf32, #tpu.memory_space<vmem>>, vector<1x8x512xf32>
    %58 = vector.shape_cast %57 : vector<1x8x512xf32> to vector<8x512xf32>
    %59 = arith.truncf %25 : vector<8x128xf32> to vector<8x128xbf16>
    %cst_42 = arith.constant dense<0.000000e+00> : vector<8x512xf32>
    %60 = tpu.matmul %59, %22, %cst_42 {dimension_numbers = #tpu.dot_dimension_numbers<[1], [0], [0], [1], [0, 0, 1, 1], [], []>} : vector<8x128xbf16>, vector<128x512xbf16>, vector<8x512xf32> -> vector<8x512xf32>
    %61 = arith.addf %58, %60 : vector<8x512xf32>
    %62 = vector.extract_strided_slice %61 {offsets = [0, 0], sizes = [8, 128], strides = [1, 1]} : vector<8x512xf32> to vector<8x128xf32>
    %63 = arith.negf %62 : vector<8x128xf32>
    %64 = math.exp %63 : vector<8x128xf32>
    %cst_43 = arith.constant 1.000000e+00 : f32
    %65 = vector.broadcast %cst_43 : f32 to vector<8x128xf32>
    %66 = arith.addf %65, %64 : vector<8x128xf32>
    %67 = arith.divf %65, %66 : vector<8x128xf32>
    %68 = vector.extract_strided_slice %61 {offsets = [0, 128], sizes = [8, 128], strides = [1, 1]} : vector<8x512xf32> to vector<8x128xf32>
    %69 = arith.negf %68 : vector<8x128xf32>
    %70 = math.exp %69 : vector<8x128xf32>
    %cst_44 = arith.constant 1.000000e+00 : f32
    %71 = vector.broadcast %cst_44 : f32 to vector<8x128xf32>
    %72 = arith.addf %71, %70 : vector<8x128xf32>
    %73 = arith.divf %71, %72 : vector<8x128xf32>
    %74 = vector.extract_strided_slice %61 {offsets = [0, 256], sizes = [8, 128], strides = [1, 1]} : vector<8x512xf32> to vector<8x128xf32>
    %75 = math.tanh %74 : vector<8x128xf32>
    %76 = vector.extract_strided_slice %61 {offsets = [0, 384], sizes = [8, 128], strides = [1, 1]} : vector<8x512xf32> to vector<8x128xf32>
    %77 = arith.negf %76 : vector<8x128xf32>
    %78 = math.exp %77 : vector<8x128xf32>
    %cst_45 = arith.constant 1.000000e+00 : f32
    %79 = vector.broadcast %cst_45 : f32 to vector<8x128xf32>
    %80 = arith.addf %79, %78 : vector<8x128xf32>
    %81 = arith.divf %79, %80 : vector<8x128xf32>
    %82 = arith.mulf %73, %26 : vector<8x128xf32>
    %83 = arith.mulf %67, %75 : vector<8x128xf32>
    %84 = arith.addf %82, %83 : vector<8x128xf32>
    %85 = math.tanh %84 : vector<8x128xf32>
    %86 = arith.mulf %81, %85 : vector<8x128xf32>
    %87 = arith.truncf %56 : vector<8x128xf32> to vector<8x128xbf16>
    %c0_46 = arith.constant 0 : index
    %c0_47 = arith.constant 0 : index
    %c0_48 = arith.constant 0 : index
    %88 = vector.load %arg9[%c0_46, %c0_47, %c0_48] : memref<4x8x128xbf16, #tpu.memory_space<vmem>>, vector<1x8x128xbf16>
    %89 = vector.shape_cast %88 : vector<1x8x128xbf16> to vector<8x128xbf16>
    %90 = vector.shape_cast %87 : vector<8x128xbf16> to vector<1x8x128xbf16>
    tpu.vector_store %arg9[%c0_46, %c0_47, %c0_48], %90 {strides = array<i32>} : memref<4x8x128xbf16, #tpu.memory_space<vmem>>, vector<1x8x128xbf16>,
    %91 = arith.truncf %86 : vector<8x128xf32> to vector<8x128xbf16>
    %c3_49 = arith.constant 3 : index
    %c0_50 = arith.constant 0 : index
    %c0_51 = arith.constant 0 : index
    %92 = vector.load %arg10[%c3_49, %c0_50, %c0_51] : memref<4x8x128xbf16, #tpu.memory_space<vmem>>, vector<1x8x128xbf16>
    %93 = vector.shape_cast %92 : vector<1x8x128xbf16> to vector<8x128xbf16>
    %94 = vector.shape_cast %91 : vector<8x128xbf16> to vector<1x8x128xbf16>
    tpu.vector_store %arg10[%c3_49, %c0_50, %c0_51], %94 {strides = array<i32>} : memref<4x8x128xbf16, #tpu.memory_space<vmem>>, vector<1x8x128xbf16>,
    %c1 = arith.constant 1 : index
    %c0_52 = arith.constant 0 : index
    %c0_53 = arith.constant 0 : index
    %95 = vector.load %arg15[%c1, %c0_52, %c0_53] : memref<4x8x512xf32, #tpu.memory_space<vmem>>, vector<1x8x512xf32>
    %96 = vector.shape_cast %95 : vector<1x8x512xf32> to vector<8x512xf32>
    %97 = arith.truncf %56 : vector<8x128xf32> to vector<8x128xbf16>
    %cst_54 = arith.constant dense<0.000000e+00> : vector<8x512xf32>
    %98 = tpu.matmul %97, %21, %cst_54 {dimension_numbers = #tpu.dot_dimension_numbers<[1], [0], [0], [1], [0, 0, 1, 1], [], []>} : vector<8x128xbf16>, vector<128x512xbf16>, vector<8x512xf32> -> vector<8x512xf32>
    %99 = arith.addf %96, %98 : vector<8x512xf32>
    %100 = vector.extract_strided_slice %99 {offsets = [0, 0], sizes = [8, 128], strides = [1, 1]} : vector<8x512xf32> to vector<8x128xf32>
    %101 = arith.negf %100 : vector<8x128xf32>
    %102 = math.exp %101 : vector<8x128xf32>
    %cst_55 = arith.constant 1.000000e+00 : f32
    %103 = vector.broadcast %cst_55 : f32 to vector<8x128xf32>
    %104 = arith.addf %103, %102 : vector<8x128xf32>
    %105 = arith.divf %103, %104 : vector<8x128xf32>
    %106 = vector.extract_strided_slice %99 {offsets = [0, 128], sizes = [8, 128], strides = [1, 1]} : vector<8x512xf32> to vector<8x128xf32>
    %107 = arith.negf %106 : vector<8x128xf32>
    %108 = math.exp %107 : vector<8x128xf32>
    %cst_56 = arith.constant 1.000000e+00 : f32
    %109 = vector.broadcast %cst_56 : f32 to vector<8x128xf32>
    %110 = arith.addf %109, %108 : vector<8x128xf32>
    %111 = arith.divf %109, %110 : vector<8x128xf32>
    %112 = vector.extract_strided_slice %99 {offsets = [0, 256], sizes = [8, 128], strides = [1, 1]} : vector<8x512xf32> to vector<8x128xf32>
    %113 = math.tanh %112 : vector<8x128xf32>
    %114 = vector.extract_strided_slice %99 {offsets = [0, 384], sizes = [8, 128], strides = [1, 1]} : vector<8x512xf32> to vector<8x128xf32>
    %115 = arith.negf %114 : vector<8x128xf32>
    %116 = math.exp %115 : vector<8x128xf32>
    %cst_57 = arith.constant 1.000000e+00 : f32
    %117 = vector.broadcast %cst_57 : f32 to vector<8x128xf32>
    %118 = arith.addf %117, %116 : vector<8x128xf32>
    %119 = arith.divf %117, %118 : vector<8x128xf32>
    %120 = arith.mulf %111, %54 : vector<8x128xf32>
    %121 = arith.mulf %105, %113 : vector<8x128xf32>
    %122 = arith.addf %120, %121 : vector<8x128xf32>
    %123 = math.tanh %122 : vector<8x128xf32>
    %124 = arith.mulf %119, %123 : vector<8x128xf32>
    %c2 = arith.constant 2 : index
    %c0_58 = arith.constant 0 : index
    %c0_59 = arith.constant 0 : index
    %125 = vector.load %arg16[%c2, %c0_58, %c0_59] : memref<4x8x512xf32, #tpu.memory_space<vmem>>, vector<1x8x512xf32>
    %126 = vector.shape_cast %125 : vector<1x8x512xf32> to vector<8x512xf32>
    %127 = arith.truncf %86 : vector<8x128xf32> to vector<8x128xbf16>
    %cst_60 = arith.constant dense<0.000000e+00> : vector<8x512xf32>
    %128 = tpu.matmul %127, %22, %cst_60 {dimension_numbers = #tpu.dot_dimension_numbers<[1], [0], [0], [1], [0, 0, 1, 1], [], []>} : vector<8x128xbf16>, vector<128x512xbf16>, vector<8x512xf32> -> vector<8x512xf32>
    %129 = arith.addf %126, %128 : vector<8x512xf32>
    %130 = vector.extract_strided_slice %129 {offsets = [0, 0], sizes = [8, 128], strides = [1, 1]} : vector<8x512xf32> to vector<8x128xf32>
    %131 = arith.negf %130 : vector<8x128xf32>
    %132 = math.exp %131 : vector<8x128xf32>
    %cst_61 = arith.constant 1.000000e+00 : f32
    %133 = vector.broadcast %cst_61 : f32 to vector<8x128xf32>
    %134 = arith.addf %133, %132 : vector<8x128xf32>
    %135 = arith.divf %133, %134 : vector<8x128xf32>
    %136 = vector.extract_strided_slice %129 {offsets = [0, 128], sizes = [8, 128], strides = [1, 1]} : vector<8x512xf32> to vector<8x128xf32>
    %137 = arith.negf %136 : vector<8x128xf32>
    %138 = math.exp %137 : vector<8x128xf32>
    %cst_62 = arith.constant 1.000000e+00 : f32
    %139 = vector.broadcast %cst_62 : f32 to vector<8x128xf32>
    %140 = arith.addf %139, %138 : vector<8x128xf32>
    %141 = arith.divf %139, %140 : vector<8x128xf32>
    %142 = vector.extract_strided_slice %129 {offsets = [0, 256], sizes = [8, 128], strides = [1, 1]} : vector<8x512xf32> to vector<8x128xf32>
    %143 = math.tanh %142 : vector<8x128xf32>
    %144 = vector.extract_strided_slice %129 {offsets = [0, 384], sizes = [8, 128], strides = [1, 1]} : vector<8x512xf32> to vector<8x128xf32>
    %145 = arith.negf %144 : vector<8x128xf32>
    %146 = math.exp %145 : vector<8x128xf32>
    %cst_63 = arith.constant 1.000000e+00 : f32
    %147 = vector.broadcast %cst_63 : f32 to vector<8x128xf32>
    %148 = arith.addf %147, %146 : vector<8x128xf32>
    %149 = arith.divf %147, %148 : vector<8x128xf32>
    %150 = arith.mulf %141, %84 : vector<8x128xf32>
    %151 = arith.mulf %135, %143 : vector<8x128xf32>
    %152 = arith.addf %150, %151 : vector<8x128xf32>
    %153 = math.tanh %152 : vector<8x128xf32>
    %154 = arith.mulf %149, %153 : vector<8x128xf32>
    %155 = arith.truncf %124 : vector<8x128xf32> to vector<8x128xbf16>
    %c1_64 = arith.constant 1 : index
    %c0_65 = arith.constant 0 : index
    %c0_66 = arith.constant 0 : index
    %156 = vector.load %arg9[%c1_64, %c0_65, %c0_66] : memref<4x8x128xbf16, #tpu.memory_space<vmem>>, vector<1x8x128xbf16>
    %157 = vector.shape_cast %156 : vector<1x8x128xbf16> to vector<8x128xbf16>
    %158 = vector.shape_cast %155 : vector<8x128xbf16> to vector<1x8x128xbf16>
    tpu.vector_store %arg9[%c1_64, %c0_65, %c0_66], %158 {strides = array<i32>} : memref<4x8x128xbf16, #tpu.memory_space<vmem>>, vector<1x8x128xbf16>,
    %159 = arith.truncf %154 : vector<8x128xf32> to vector<8x128xbf16>
    %c2_67 = arith.constant 2 : index
    %c0_68 = arith.constant 0 : index
    %c0_69 = arith.constant 0 : index
    %160 = vector.load %arg10[%c2_67, %c0_68, %c0_69] : memref<4x8x128xbf16, #tpu.memory_space<vmem>>, vector<1x8x128xbf16>
    %161 = vector.shape_cast %160 : vector<1x8x128xbf16> to vector<8x128xbf16>
    %162 = vector.shape_cast %159 : vector<8x128xbf16> to vector<1x8x128xbf16>
    tpu.vector_store %arg10[%c2_67, %c0_68, %c0_69], %162 {strides = array<i32>} : memref<4x8x128xbf16, #tpu.memory_space<vmem>>, vector<1x8x128xbf16>,
    %c2_70 = arith.constant 2 : index
    %c0_71 = arith.constant 0 : index
    %c0_72 = arith.constant 0 : index
    %163 = vector.load %arg15[%c2_70, %c0_71, %c0_72] : memref<4x8x512xf32, #tpu.memory_space<vmem>>, vector<1x8x512xf32>
    %164 = vector.shape_cast %163 : vector<1x8x512xf32> to vector<8x512xf32>
    %165 = arith.truncf %124 : vector<8x128xf32> to vector<8x128xbf16>
    %cst_73 = arith.constant dense<0.000000e+00> : vector<8x512xf32>
    %166 = tpu.matmul %165, %21, %cst_73 {dimension_numbers = #tpu.dot_dimension_numbers<[1], [0], [0], [1], [0, 0, 1, 1], [], []>} : vector<8x128xbf16>, vector<128x512xbf16>, vector<8x512xf32> -> vector<8x512xf32>
    %167 = arith.addf %164, %166 : vector<8x512xf32>
    %168 = vector.extract_strided_slice %167 {offsets = [0, 0], sizes = [8, 128], strides = [1, 1]} : vector<8x512xf32> to vector<8x128xf32>
    %169 = arith.negf %168 : vector<8x128xf32>
    %170 = math.exp %169 : vector<8x128xf32>
    %cst_74 = arith.constant 1.000000e+00 : f32
    %171 = vector.broadcast %cst_74 : f32 to vector<8x128xf32>
    %172 = arith.addf %171, %170 : vector<8x128xf32>
    %173 = arith.divf %171, %172 : vector<8x128xf32>
    %174 = vector.extract_strided_slice %167 {offsets = [0, 128], sizes = [8, 128], strides = [1, 1]} : vector<8x512xf32> to vector<8x128xf32>
    %175 = arith.negf %174 : vector<8x128xf32>
    %176 = math.exp %175 : vector<8x128xf32>
    %cst_75 = arith.constant 1.000000e+00 : f32
    %177 = vector.broadcast %cst_75 : f32 to vector<8x128xf32>
    %178 = arith.addf %177, %176 : vector<8x128xf32>
    %179 = arith.divf %177, %178 : vector<8x128xf32>
    %180 = vector.extract_strided_slice %167 {offsets = [0, 256], sizes = [8, 128], strides = [1, 1]} : vector<8x512xf32> to vector<8x128xf32>
    %181 = math.tanh %180 : vector<8x128xf32>
    %182 = vector.extract_strided_slice %167 {offsets = [0, 384], sizes = [8, 128], strides = [1, 1]} : vector<8x512xf32> to vector<8x128xf32>
    %183 = arith.negf %182 : vector<8x128xf32>
    %184 = math.exp %183 : vector<8x128xf32>
    %cst_76 = arith.constant 1.000000e+00 : f32
    %185 = vector.broadcast %cst_76 : f32 to vector<8x128xf32>
    %186 = arith.addf %185, %184 : vector<8x128xf32>
    %187 = arith.divf %185, %186 : vector<8x128xf32>
    %188 = arith.mulf %179, %122 : vector<8x128xf32>
    %189 = arith.mulf %173, %181 : vector<8x128xf32>
    %190 = arith.addf %188, %189 : vector<8x128xf32>
    %191 = math.tanh %190 : vector<8x128xf32>
    %192 = arith.mulf %187, %191 : vector<8x128xf32>
    %c1_77 = arith.constant 1 : index
    %c0_78 = arith.constant 0 : index
    %c0_79 = arith.constant 0 : index
    %193 = vector.load %arg16[%c1_77, %c0_78, %c0_79] : memref<4x8x512xf32, #tpu.memory_space<vmem>>, vector<1x8x512xf32>
    %194 = vector.shape_cast %193 : vector<1x8x512xf32> to vector<8x512xf32>
    %195 = arith.truncf %154 : vector<8x128xf32> to vector<8x128xbf16>
    %cst_80 = arith.constant dense<0.000000e+00> : vector<8x512xf32>
    %196 = tpu.matmul %195, %22, %cst_80 {dimension_numbers = #tpu.dot_dimension_numbers<[1], [0], [0], [1], [0, 0, 1, 1], [], []>} : vector<8x128xbf16>, vector<128x512xbf16>, vector<8x512xf32> -> vector<8x512xf32>
    %197 = arith.addf %194, %196 : vector<8x512xf32>
    %198 = vector.extract_strided_slice %197 {offsets = [0, 0], sizes = [8, 128], strides = [1, 1]} : vector<8x512xf32> to vector<8x128xf32>
    %199 = arith.negf %198 : vector<8x128xf32>
    %200 = math.exp %199 : vector<8x128xf32>
    %cst_81 = arith.constant 1.000000e+00 : f32
    %201 = vector.broadcast %cst_81 : f32 to vector<8x128xf32>
    %202 = arith.addf %201, %200 : vector<8x128xf32>
    %203 = arith.divf %201, %202 : vector<8x128xf32>
    %204 = vector.extract_strided_slice %197 {offsets = [0, 128], sizes = [8, 128], strides = [1, 1]} : vector<8x512xf32> to vector<8x128xf32>
    %205 = arith.negf %204 : vector<8x128xf32>
    %206 = math.exp %205 : vector<8x128xf32>
    %cst_82 = arith.constant 1.000000e+00 : f32
    %207 = vector.broadcast %cst_82 : f32 to vector<8x128xf32>
    %208 = arith.addf %207, %206 : vector<8x128xf32>
    %209 = arith.divf %207, %208 : vector<8x128xf32>
    %210 = vector.extract_strided_slice %197 {offsets = [0, 256], sizes = [8, 128], strides = [1, 1]} : vector<8x512xf32> to vector<8x128xf32>
    %211 = math.tanh %210 : vector<8x128xf32>
    %212 = vector.extract_strided_slice %197 {offsets = [0, 384], sizes = [8, 128], strides = [1, 1]} : vector<8x512xf32> to vector<8x128xf32>
    %213 = arith.negf %212 : vector<8x128xf32>
    %214 = math.exp %213 : vector<8x128xf32>
    %cst_83 = arith.constant 1.000000e+00 : f32
    %215 = vector.broadcast %cst_83 : f32 to vector<8x128xf32>
    %216 = arith.addf %215, %214 : vector<8x128xf32>
    %217 = arith.divf %215, %216 : vector<8x128xf32>
    %218 = arith.mulf %209, %152 : vector<8x128xf32>
    %219 = arith.mulf %203, %211 : vector<8x128xf32>
    %220 = arith.addf %218, %219 : vector<8x128xf32>
    %221 = math.tanh %220 : vector<8x128xf32>
    %222 = arith.mulf %217, %221 : vector<8x128xf32>
    %223 = arith.truncf %192 : vector<8x128xf32> to vector<8x128xbf16>
    %c2_84 = arith.constant 2 : index
    %c0_85 = arith.constant 0 : index
    %c0_86 = arith.constant 0 : index
    %224 = vector.load %arg9[%c2_84, %c0_85, %c0_86] : memref<4x8x128xbf16, #tpu.memory_space<vmem>>, vector<1x8x128xbf16>
    %225 = vector.shape_cast %224 : vector<1x8x128xbf16> to vector<8x128xbf16>
    %226 = vector.shape_cast %223 : vector<8x128xbf16> to vector<1x8x128xbf16>
    tpu.vector_store %arg9[%c2_84, %c0_85, %c0_86], %226 {strides = array<i32>} : memref<4x8x128xbf16, #tpu.memory_space<vmem>>, vector<1x8x128xbf16>,
    %227 = arith.truncf %222 : vector<8x128xf32> to vector<8x128xbf16>
    %c1_87 = arith.constant 1 : index
    %c0_88 = arith.constant 0 : index
    %c0_89 = arith.constant 0 : index
    %228 = vector.load %arg10[%c1_87, %c0_88, %c0_89] : memref<4x8x128xbf16, #tpu.memory_space<vmem>>, vector<1x8x128xbf16>
    %229 = vector.shape_cast %228 : vector<1x8x128xbf16> to vector<8x128xbf16>
    %230 = vector.shape_cast %227 : vector<8x128xbf16> to vector<1x8x128xbf16>
    tpu.vector_store %arg10[%c1_87, %c0_88, %c0_89], %230 {strides = array<i32>} : memref<4x8x128xbf16, #tpu.memory_space<vmem>>, vector<1x8x128xbf16>,
    %c3_90 = arith.constant 3 : index
    %c0_91 = arith.constant 0 : index
    %c0_92 = arith.constant 0 : index
    %231 = vector.load %arg15[%c3_90, %c0_91, %c0_92] : memref<4x8x512xf32, #tpu.memory_space<vmem>>, vector<1x8x512xf32>
    %232 = vector.shape_cast %231 : vector<1x8x512xf32> to vector<8x512xf32>
    %233 = arith.truncf %192 : vector<8x128xf32> to vector<8x128xbf16>
    %cst_93 = arith.constant dense<0.000000e+00> : vector<8x512xf32>
    %234 = tpu.matmul %233, %21, %cst_93 {dimension_numbers = #tpu.dot_dimension_numbers<[1], [0], [0], [1], [0, 0, 1, 1], [], []>} : vector<8x128xbf16>, vector<128x512xbf16>, vector<8x512xf32> -> vector<8x512xf32>
    %235 = arith.addf %232, %234 : vector<8x512xf32>
    %236 = vector.extract_strided_slice %235 {offsets = [0, 0], sizes = [8, 128], strides = [1, 1]} : vector<8x512xf32> to vector<8x128xf32>
    %237 = arith.negf %236 : vector<8x128xf32>
    %238 = math.exp %237 : vector<8x128xf32>
    %cst_94 = arith.constant 1.000000e+00 : f32
    %239 = vector.broadcast %cst_94 : f32 to vector<8x128xf32>
    %240 = arith.addf %239, %238 : vector<8x128xf32>
    %241 = arith.divf %239, %240 : vector<8x128xf32>
    %242 = vector.extract_strided_slice %235 {offsets = [0, 128], sizes = [8, 128], strides = [1, 1]} : vector<8x512xf32> to vector<8x128xf32>
    %243 = arith.negf %242 : vector<8x128xf32>
    %244 = math.exp %243 : vector<8x128xf32>
    %cst_95 = arith.constant 1.000000e+00 : f32
    %245 = vector.broadcast %cst_95 : f32 to vector<8x128xf32>
    %246 = arith.addf %245, %244 : vector<8x128xf32>
    %247 = arith.divf %245, %246 : vector<8x128xf32>
    %248 = vector.extract_strided_slice %235 {offsets = [0, 256], sizes = [8, 128], strides = [1, 1]} : vector<8x512xf32> to vector<8x128xf32>
    %249 = math.tanh %248 : vector<8x128xf32>
    %250 = vector.extract_strided_slice %235 {offsets = [0, 384], sizes = [8, 128], strides = [1, 1]} : vector<8x512xf32> to vector<8x128xf32>
    %251 = arith.negf %250 : vector<8x128xf32>
    %252 = math.exp %251 : vector<8x128xf32>
    %cst_96 = arith.constant 1.000000e+00 : f32
    %253 = vector.broadcast %cst_96 : f32 to vector<8x128xf32>
    %254 = arith.addf %253, %252 : vector<8x128xf32>
    %255 = arith.divf %253, %254 : vector<8x128xf32>
    %256 = arith.mulf %247, %190 : vector<8x128xf32>
    %257 = arith.mulf %241, %249 : vector<8x128xf32>
    %258 = arith.addf %256, %257 : vector<8x128xf32>
    %259 = math.tanh %258 : vector<8x128xf32>
    %260 = arith.mulf %255, %259 : vector<8x128xf32>
    %c0_97 = arith.constant 0 : index
    %c0_98 = arith.constant 0 : index
    %c0_99 = arith.constant 0 : index
    %261 = vector.load %arg16[%c0_97, %c0_98, %c0_99] : memref<4x8x512xf32, #tpu.memory_space<vmem>>, vector<1x8x512xf32>
    %262 = vector.shape_cast %261 : vector<1x8x512xf32> to vector<8x512xf32>
    %263 = arith.truncf %222 : vector<8x128xf32> to vector<8x128xbf16>
    %cst_100 = arith.constant dense<0.000000e+00> : vector<8x512xf32>
    %264 = tpu.matmul %263, %22, %cst_100 {dimension_numbers = #tpu.dot_dimension_numbers<[1], [0], [0], [1], [0, 0, 1, 1], [], []>} : vector<8x128xbf16>, vector<128x512xbf16>, vector<8x512xf32> -> vector<8x512xf32>
    %265 = arith.addf %262, %264 : vector<8x512xf32>
    %266 = vector.extract_strided_slice %265 {offsets = [0, 0], sizes = [8, 128], strides = [1, 1]} : vector<8x512xf32> to vector<8x128xf32>
    %267 = arith.negf %266 : vector<8x128xf32>
    %268 = math.exp %267 : vector<8x128xf32>
    %cst_101 = arith.constant 1.000000e+00 : f32
    %269 = vector.broadcast %cst_101 : f32 to vector<8x128xf32>
    %270 = arith.addf %269, %268 : vector<8x128xf32>
    %271 = arith.divf %269, %270 : vector<8x128xf32>
    %272 = vector.extract_strided_slice %265 {offsets = [0, 128], sizes = [8, 128], strides = [1, 1]} : vector<8x512xf32> to vector<8x128xf32>
    %273 = arith.negf %272 : vector<8x128xf32>
    %274 = math.exp %273 : vector<8x128xf32>
    %cst_102 = arith.constant 1.000000e+00 : f32
    %275 = vector.broadcast %cst_102 : f32 to vector<8x128xf32>
    %276 = arith.addf %275, %274 : vector<8x128xf32>
    %277 = arith.divf %275, %276 : vector<8x128xf32>
    %278 = vector.extract_strided_slice %265 {offsets = [0, 256], sizes = [8, 128], strides = [1, 1]} : vector<8x512xf32> to vector<8x128xf32>
    %279 = math.tanh %278 : vector<8x128xf32>
    %280 = vector.extract_strided_slice %265 {offsets = [0, 384], sizes = [8, 128], strides = [1, 1]} : vector<8x512xf32> to vector<8x128xf32>
    %281 = arith.negf %280 : vector<8x128xf32>
    %282 = math.exp %281 : vector<8x128xf32>
    %cst_103 = arith.constant 1.000000e+00 : f32
    %283 = vector.broadcast %cst_103 : f32 to vector<8x128xf32>
    %284 = arith.addf %283, %282 : vector<8x128xf32>
    %285 = arith.divf %283, %284 : vector<8x128xf32>
    %286 = arith.mulf %277, %220 : vector<8x128xf32>
    %287 = arith.mulf %271, %279 : vector<8x128xf32>
    %288 = arith.addf %286, %287 : vector<8x128xf32>
    %289 = math.tanh %288 : vector<8x128xf32>
    %290 = arith.mulf %285, %289 : vector<8x128xf32>
    %291 = arith.truncf %260 : vector<8x128xf32> to vector<8x128xbf16>
    %c3_104 = arith.constant 3 : index
    %c0_105 = arith.constant 0 : index
    %c0_106 = arith.constant 0 : index
    %292 = vector.load %arg9[%c3_104, %c0_105, %c0_106] : memref<4x8x128xbf16, #tpu.memory_space<vmem>>, vector<1x8x128xbf16>
    %293 = vector.shape_cast %292 : vector<1x8x128xbf16> to vector<8x128xbf16>
    %294 = vector.shape_cast %291 : vector<8x128xbf16> to vector<1x8x128xbf16>
    tpu.vector_store %arg9[%c3_104, %c0_105, %c0_106], %294 {strides = array<i32>} : memref<4x8x128xbf16, #tpu.memory_space<vmem>>, vector<1x8x128xbf16>,
    %295 = arith.truncf %290 : vector<8x128xf32> to vector<8x128xbf16>
    %c0_107 = arith.constant 0 : index
    %c0_108 = arith.constant 0 : index
    %c0_109 = arith.constant 0 : index
    %296 = vector.load %arg10[%c0_107, %c0_108, %c0_109] : memref<4x8x128xbf16, #tpu.memory_space<vmem>>, vector<1x8x128xbf16>
    %297 = vector.shape_cast %296 : vector<1x8x128xbf16> to vector<8x128xbf16>
    %298 = vector.shape_cast %295 : vector<8x128xbf16> to vector<1x8x128xbf16>
    tpu.vector_store %arg10[%c0_107, %c0_108, %c0_109], %298 {strides = array<i32>} : memref<4x8x128xbf16, #tpu.memory_space<vmem>>, vector<1x8x128xbf16>,
    %c0_110 = arith.constant 0 : index
    %c0_111 = arith.constant 0 : index
    %299 = vector.load %arg11[%c0_110, %c0_111] : memref<8x128xf32, #tpu.memory_space<vmem>>, vector<8x128xf32>
    tpu.vector_store %arg11[%c0_110, %c0_111], %260 {strides = array<i32>} : memref<8x128xf32, #tpu.memory_space<vmem>>, vector<8x128xf32>,
    %c0_112 = arith.constant 0 : index
    %c0_113 = arith.constant 0 : index
    %300 = vector.load %arg12[%c0_112, %c0_113] : memref<8x128xf32, #tpu.memory_space<vmem>>, vector<8x128xf32>
    tpu.vector_store %arg12[%c0_112, %c0_113], %258 {strides = array<i32>} : memref<8x128xf32, #tpu.memory_space<vmem>>, vector<8x128xf32>,
    %c0_114 = arith.constant 0 : index
    %c0_115 = arith.constant 0 : index
    %301 = vector.load %arg13[%c0_114, %c0_115] : memref<8x128xf32, #tpu.memory_space<vmem>>, vector<8x128xf32>
    tpu.vector_store %arg13[%c0_114, %c0_115], %290 {strides = array<i32>} : memref<8x128xf32, #tpu.memory_space<vmem>>, vector<8x128xf32>,
    %c0_116 = arith.constant 0 : index
    %c0_117 = arith.constant 0 : index
    %302 = vector.load %arg14[%c0_116, %c0_117] : memref<8x128xf32, #tpu.memory_space<vmem>>, vector<8x128xf32>
    tpu.vector_store %arg14[%c0_116, %c0_117], %288 {strides = array<i32>} : memref<8x128xf32, #tpu.memory_space<vmem>>, vector<8x128xf32>,
    return
  }
  func.func @transform_0(%arg0: i32) -> (i32, i32, i32) {
    %c0_i32 = arith.constant 0 : i32
    %c0_i32_0 = arith.constant 0 : i32
    %c0_i32_1 = arith.constant 0 : i32
    return %arg0, %c0_i32, %c0_i32_0 : i32, i32, i32
  }
  func.func @transform_1(%arg0: i32) -> (i32, i32, i32) {
    %c1_i32 = arith.constant 1 : i32
    %0 = arith.subi %c1_i32, %arg0 : i32
    %c0_i32 = arith.constant 0 : i32
    %c0_i32_0 = arith.constant 0 : i32
    %c0_i32_1 = arith.constant 0 : i32
    return %0, %c0_i32, %c0_i32_0 : i32, i32, i32
  }
  func.func @transform_2(%arg0: i32) -> (i32, i32) {
    %c0_i32 = arith.constant 0 : i32
    %c0_i32_0 = arith.constant 0 : i32
    %c0_i32_1 = arith.constant 0 : i32
    return %c0_i32, %c0_i32_0 : i32, i32
  }
  func.func @transform_3(%arg0: i32) -> (i32, i32) {
    %c0_i32 = arith.constant 0 : i32
    %c0_i32_0 = arith.constant 0 : i32
    %c0_i32_1 = arith.constant 0 : i32
    return %c0_i32, %c0_i32_0 : i32, i32
  }
  func.func @transform_4(%arg0: i32) -> (i32, i32) {
    %c0_i32 = arith.constant 0 : i32
    %c0_i32_0 = arith.constant 0 : i32
    %c0_i32_1 = arith.constant 0 : i32
    return %c0_i32, %c0_i32_0 : i32, i32
  }
  func.func @transform_5(%arg0: i32) -> (i32, i32) {
    %c0_i32 = arith.constant 0 : i32
    %c0_i32_0 = arith.constant 0 : i32
    %c0_i32_1 = arith.constant 0 : i32
    return %c0_i32, %c0_i32_0 : i32, i32
  }
  func.func @transform_6(%arg0: i32) -> (i32, i32) {
    %c0_i32 = arith.constant 0 : i32
    %c0_i32_0 = arith.constant 0 : i32
    %c0_i32_1 = arith.constant 0 : i32
    return %c0_i32, %c0_i32_0 : i32, i32
  }
  func.func @transform_7(%arg0: i32) -> (i32, i32) {
    %c0_i32 = arith.constant 0 : i32
    %c0_i32_0 = arith.constant 0 : i32
    %c0_i32_1 = arith.constant 0 : i32
    return %c0_i32, %c0_i32_0 : i32, i32
  }
  func.func @transform_8(%arg0: i32) -> (i32, i32, i32) {
    %c0_i32 = arith.constant 0 : i32
    %c0_i32_0 = arith.constant 0 : i32
    %c0_i32_1 = arith.constant 0 : i32
    return %arg0, %c0_i32, %c0_i32_0 : i32, i32, i32
  }
  func.func @transform_9(%arg0: i32) -> (i32, i32, i32) {
    %c1_i32 = arith.constant 1 : i32
    %0 = arith.subi %c1_i32, %arg0 : i32
    %c0_i32 = arith.constant 0 : i32
    %c0_i32_0 = arith.constant 0 : i32
    %c0_i32_1 = arith.constant 0 : i32
    return %0, %c0_i32, %c0_i32_0 : i32, i32, i32
  }
}

</mosaic_0001>

<bundles_post_ra>
// kernel: bilstm_forward.5
= control target key start
LH: loop header
LB: loop body
LE: loop exit
PB: predicated region body
PF: predicated region fallthrough
CT: control target
= control target key end

     0   :  { %v125_v34 = vlaneseq  ;;  %s314_s1 = inlined_call_operand.vmem [shape: f32[256,128], index: 1, kind: input, shape index: {}]   ;;  %s315_s0 = inlined_call_operand.vmem [shape: f32[8,256], index: 0, kind: input, shape index: {}]   ;;  %s316_s2 = inlined_call_operand.vmem [shape: f32[1,128], index: 2, kind: input, shape index: {}]   ;;  %s317_s3 = inlined_call_operand.vmem [shape: f32[8,128], index: 3, kind: output, shape index: {}]  }
   0x1   :  { %v47_v0 = vld [vmem:[%s314_s1 + $0xf8] sm:$0xff]  ;;  %v46_v2 = vld [vmem:[%s314_s1 + $0xf0] sm:$0xff]  ;;  %v45_v4 = vld [vmem:[%s314_s1 + $0xe8] sm:$0xff] }
   0x2   :  { %v31_v1 = vld [vmem:[%s314_s1 + $0x78] sm:$0xff]  ;;  %147 = vmatprep.subr.mxu0 %v47_v0  ;;  %v30_v3 = vld [vmem:[%s314_s1 + $0x70] sm:$0xff]  ;;  %v29_v5 = vld [vmem:[%s314_s1 + $0x68] sm:$0xff]  ;;  %v126_v36 = vand.u32 127, %v125_v34 }
   0x3   :  { %148 = vmatpush3.msra.mxu0 %v31_v1  ;;  %v44_v6 = vld [vmem:[%s314_s1 + $0xe0] sm:$0xff]  ;;  %v43_v8 = vld [vmem:[%s314_s1 + $0xd8] sm:$0xff]  ;;  %v42_v10 = vld [vmem:[%s314_s1 + $0xd0] sm:$0xff] }
   0x4   :  { %149 = vmatprep.subr.mxu0 %v46_v2  ;;  %v28_v7 = vld [vmem:[%s314_s1 + $0x60] sm:$0xff]  ;;  %v27_v9 = vld [vmem:[%s314_s1 + $0x58] sm:$0xff]  ;;  %v26_v11 = vld [vmem:[%s314_s1 + $0x50] sm:$0xff]  ;;  %vm127_vm0 = vcmp.lt.s32.totalorder %v126_v36, 4 }
   0x5   :  { %150 = vmatpush3.msra.mxu0 %v30_v3  ;;  %v41_v12 = vld [vmem:[%s314_s1 + $0xc8] sm:$0xff]  ;;  %v40_v15 = vld [vmem:[%s314_s1 + $0xc0] sm:$0xff]  ;;  %v39_v17 = vld [vmem:[%s314_s1 + $0xb8] sm:$0xff] }
   0x6   :  { %151 = vmatprep.subr.mxu0 %v45_v4  ;;  %v15_v13 = vld [vmem:[%s315_s0 + $0x8] sm:$0xff]  ;;  %v24_v16 = vld [vmem:[%s314_s1 + $0x40] sm:$0xff]  ;;  %v23_v18 = vld [vmem:[%s314_s1 + $0x38] sm:$0xff] }
   0x7   :  { %152 = vmatpush3.msra.mxu0 %v29_v5  ;;  %v25_v14 = vld [vmem:[%s314_s1 + $0x48] sm:$0xff]  ;;  %119 = vmatprep.mubr.f32.mxu0 %v15_v13  ;;  %v38_v19 = vld [vmem:[%s314_s1 + $0xb0] sm:$0xff]  ;;  %v36_v23 = vld [vmem:[%s314_s1 + $0xa0] sm:$0xff] }
   0x8   :  { %153 = vmatprep.subr.mxu0 %v44_v6  ;;  %v22_v20 = vld [vmem:[%s314_s1 + $0x30] sm:$0xff]  ;;  %v37_v21 = vld [vmem:[%s314_s1 + $0xa8] sm:$0xff]  ;;  %v20_v24 = vld [vmem:[%s314_s1 + $0x20] sm:$0xff] }
   0x9   :  { %154 = vmatpush3.msra.mxu0 %v28_v7  ;;  %v21_v22 = vld [vmem:[%s314_s1 + $0x28] sm:$0xff]  ;;  %v35_v25 = vld [vmem:[%s314_s1 + $0x98] sm:$0xff]  ;;  %v34_v27 = vld [vmem:[%s314_s1 + $0x90] sm:$0xff] }
   0xa   :  { %155 = vmatprep.subr.mxu0 %v43_v8  ;;  %v19_v26 = vld [vmem:[%s314_s1 + $0x18] sm:$0xff]  ;;  %v18_v28 = vld [vmem:[%s314_s1 + $0x10] sm:$0xff]  ;;  %v33_v29 = vld [vmem:[%s314_s1 + $0x88] sm:$0xff] }
   0xb   :  { %156 = vmatpush3.msra.mxu0 %v27_v9  ;;  %v17_v30 = vld [vmem:[%s314_s1 + $0x8] sm:$0xff]  ;;  %v32_v31 = vld [vmem:[%s314_s1 + $0x80] sm:$0xff] }
   0xc   :  { %157 = vmatprep.subr.mxu0 %v42_v10  ;;  %v16_v32 = vld [vmem:[%s314_s1] sm:$0xff] }
   0xd   :  { %158 = vmatpush3.msra.mxu0 %v26_v11  ;;  %v14_v33 = vld [vmem:[%s315_s0] sm:$0xff] }
   0xe   :  { %159 = vmatprep.subr.mxu0 %v41_v12  ;;  %v146_v38 = vld [vmem:[%s316_s2] ss:$0 sm:$0xff] }
   0xf   :  { %160 = vmatpush3.msra.mxu0 %v25_v14 }
  0x10   :  { %161 = vmatprep.subr.mxu0 %v40_v15 }
  0x11   :  { %162 = vmatpush3.msra.mxu0 %v24_v16 }
  0x12   :  { %163 = vmatprep.subr.mxu0 %v39_v17 }
  0x13   :  { %164 = vmatpush3.msra.mxu0 %v23_v18 }
  0x14   :  { %165 = vmatprep.subr.mxu0 %v38_v19 }
  0x15   :  { %166 = vmatpush3.msra.mxu0 %v22_v20 }
  0x16   :  { %167 = vmatprep.subr.mxu0 %v37_v21 }
  0x17   :  { %168 = vmatpush3.msra.mxu0 %v21_v22 }
  0x18   :  { %169 = vmatprep.subr.mxu0 %v36_v23 }
  0x19   :  { %170 = vmatpush3.msra.mxu0 %v20_v24 }
  0x1a   :  { %171 = vmatprep.subr.mxu0 %v35_v25 }
  0x1b   :  { %172 = vmatpush3.msra.mxu0 %v19_v26 }
  0x1c   :  { %173 = vmatprep.subr.mxu0 %v34_v27 }
  0x1d   :  { %174 = vmatpush3.msra.mxu0 %v18_v28 }
  0x1e   :  { %175 = vmatprep.subr.mxu0 %v33_v29 }
  0x1f   :  { %176 = vmatpush3.msra.mxu0 %v17_v30 }
  0x20   :  { %177 = vmatprep.subr.mxu0 %v32_v31 }
  0x21   :  { %178 = vmatpush3.msra.mxu0 %v16_v32 }
  0x22   :  { %120 = vmatmul.mubr.f32.vlgmr.msra.gmra.mxu0 %v14_v33 }
  0xe2   :  { %v179_v35 = vpop.f32.mrf.mxu0 }
  0xe4   :  { %v180_v37 = vpop.f32.mrf.mxu0 }
  0xe5   :  { %v181_v39 = vadd.f32 %v180_v37, %v179_v35 }
  0xe7   :  { %v122_v40 = vadd.f32 %v181_v39, %v146_v38 }
  0xe9   :  { %v128_v41 = vsel %vm127_vm0, %v122_v40, -1e+30 }
  0xea   :  { %129 = vmax.xlane.f32.xlu0 %v128_v41 }
 0x173   :  { %v130_v42 = vpop.xlane.xlu0 %129 }
 0x174   :  { %v131_v43 = vsub.f32 %v128_v41, %v130_v42 }
 0x176   :  { %v132_v44 = vmul.f32 1.442695, %v131_v43 }
 0x178   :  { %182 = vpow2.f32 %v132_v44 }
 0x185   :  { %v183_v45 = vpop.eup %182 }
 0x186   :  { %134 = vadd.xlane.f32.xlu0 %v183_v45 }
 0x20f   :  { %v135_v46 = vpop.xlane.xlu0 %134 }
 0x210   :  { %184 = vrcp.f32 %v135_v46 }
 0x21d   :  { %v185_v47 = vpop.eup %184 }
 0x21e   :  { %v137_v48 = vmul.f32 %v185_v47, %v135_v46 }
 0x220   :  { %v138_v49 = vsub.f32 2.0, %v137_v48 }
 0x222   :  { %v139_v50 = vmul.f32 %v185_v47, %v138_v49 }
 0x224   :  { %v140_v51 = vmul.f32 %v183_v45, %v139_v50 }
 0x226   :  { %141 = vst [vmem:[%s317_s3] sm:$0xff] %v140_v51 }

// kernel: bilstm_forward.3
= control target key start
LH: loop header
LB: loop body
LE: loop exit
PB: predicated region body
PF: predicated region fallthrough
CT: control target
= control target key end

     0   :  { %15 = vsyncpa [#allocation9], 0  ;;  %s4073_s0 = inlined_call_operand.vmem [shape: bf16[8,8,128], index: 0, kind: input, shape index: {}, may-alias: {0,1}]   ;;  %s4074_s1 = inlined_call_operand.vmem [shape: bf16[8,8,128], index: 1, kind: input, shape index: {}, may-alias: {0,1}]   ;;  %s4075_s2 = inlined_call_operand.hbm [shape: bf16[128,512], index: 2, kind: input, shape index: {}]   ;;  %s4076_s3 = inlined_call_operand.hbm [shape: bf16[128,512], index: 3, kind: input, shape index: {}]   ;;  %s4077_s4 = inlined_call_operand.hbm [shape: bf16[128,512], index: 4, kind: input, shape index: {}]   ;;  %s4078_s5 = inlined_call_operand.hbm [shape: bf16[128,512], index: 5, kind: input, shape index: {}]   ;;  %s4079_s6 = inlined_call_operand.vmem [shape: f32[1,512], index: 6, kind: input, shape index: {}]   ;;  %s4080_s7 = inlined_call_operand.vmem [shape: f32[1,512], index: 7, kind: input, shape index: {}]   ;;  %s4081_s8 = inlined_call_operand.vmem [shape: bf16[8,8,128], index: 8, kind: output, shape index: {0}]   ;;  %s4082_s9 = inlined_call_operand.vmem [shape: bf16[8,8,128], index: 9, kind: output, shape index: {1}]  }
   0x1   :  { %16 = vsyncpa [#allocation11], 0 }
   0x2   :  { %17 = vsyncpa [#allocation14], 0  ;;  %s3436_s30 = smov 0  }
   0x3 LB: > { %s3442_s10 = sadd.s32 4294967295, %s3376_s30   ;;  %p2638_p0 = scmp.ge.s32.totalorder %s3376_s30, 1  ;;  %s3376_s30 = sphi %s3436_s30, %s23_s30  }
   0x4   : > { %p262_p1 = scmp.lt.s32.totalorder %s3376_s30, 3  ;;  %p2639_p2 = scmp.ne.s32.totalorder %s3442_s10, 0 }
   0x5   : > { %p2851_p3 = scmp.eq.s32.totalorder %s3442_s10, 0  ;;  %s3378_s12 = smov [#allocation10]  }
   0x6   : > { %p3448_p4 = pnand %p2638_p0, %p262_p1  ;;  %s287_s13 = sshll.u32 %s3378_s12, 4  ;;  %s288_s13 = int_to_ptr.vmem [resolvable:$true] %s287_s13 }
   0x7   : > { %s3379_s14 = smov [#allocation8]   ;;  %s3380_s17 = smov [#allocation12]  }
   0x8   : > { %p2838_p5 = pneg %p3448_p4  ;;  %s274_s15 = sshll.u32 %s3379_s14, 4  ;;  %s3454_s15 = int_to_ptr.vmem [resolvable:$true] %s274_s15 }
   0x9   : > { %s300_s18 = sshll.u32 %s3380_s17, 4  ;;  %s3381_s19 = smov [#allocation13]   ;;  %s3462_s18 = int_to_ptr.vmem [resolvable:$true] %s300_s18 }
   0xa   : > { %p3458_p6 = pnand %p2851_p3, %p2838_p5  ;;  %s3464_s20 = sshll.u32 %s3381_s19, 4  ;;  %s314_s20 = int_to_ptr.vmem [resolvable:$true] %s3464_s20 }
   0xb   : > { %s3265_s21 = scalar_lea.vmem %s288_s13, 4096  ;;  %p3273_p11 = scmp.lt.s32.totalorder %s288_s13, %s288_s13 }
   0xc   : > { %p3256_p7 = pneg %p3458_p6  ;;  %p3266_p8 = scmp.ne.s32.totalorder %s288_s13, %s3265_s21 }
   0xd   : > { %p3274_p12 = scmp.lt.s32.totalorder %s3265_s21, %s3265_s21 }
   0xe   : > { %p3268_p9 = pnand %p3266_p8, %p3256_p7 }
   0xf   : > { %p3275_p13 = por %p3274_p12, %p3273_p11 }
  0x10   : > { %p3269_p10 = pneg %p3268_p9 }
  0x12   : > { %p3276_p0 = pnand %p3275_p13, %p3269_p10 }
  0x14   : > { %3279 = shalt.err (!%p3276_p0)
}
  0x15   : > { %s3382_s22 = smov 256   ;;  %s3383_s23 = smov 16  }
  0x16   : > { %2844 = dma.hbm_to_vmem [thread:$0]  (!%p3458_p6), %s4076_s3, 4096, %s288_s13, [#allocation11], %s3382_s22, %s3382_s22, %s3383_s23  }
  0x17   : > { %s3291_s26 = scalar_lea.vmem %s3454_s15, 4096  ;;  %p3299_p9 = scmp.lt.s32.totalorder %s3454_s15, %s3454_s15 }
  0x18   : > { %p3292_p1 = scmp.ne.s32.totalorder %s3454_s15, %s3291_s26  ;;  %p3300_p10 = scmp.lt.s32.totalorder %s3291_s26, %s3291_s26 }
  0x1a   : > { %p3294_p5 = pnand %p3292_p1, %p3256_p7  ;;  %p3301_p11 = por %p3300_p10, %p3299_p9 }
  0x1c   : > { %p3295_p8 = pneg %p3294_p5 }
  0x1e   : > { %p3302_p12 = pnand %p3301_p11, %p3295_p8 }
  0x20   : > { %3305 = shalt.err (!%p3302_p12)
}
  0x21   : > { %2841 = dma.hbm_to_vmem [thread:$0]  (!%p3458_p6), %s4075_s2, 4096, %s3454_s15, [#allocation9], %s3382_s22, %s3382_s22, %s3383_s23  }
  0x22   : > { %s3317_s29 = scalar_lea.vmem %s3462_s18, 4096  ;;  %p3325_p5 = scmp.lt.s32.totalorder %s3462_s18, %s3462_s18 }
  0x23   : > { %p3318_p13 = scmp.ne.s32.totalorder %s3462_s18, %s3317_s29  ;;  %p3326_p8 = scmp.lt.s32.totalorder %s3317_s29, %s3317_s29 }
  0x25   : > { %p3320_p0 = pnand %p3318_p13, %p3256_p7  ;;  %p3327_p9 = por %p3326_p8, %p3325_p5 }
  0x27   : > { %p3321_p1 = pneg %p3320_p0 }
  0x29   : > { %p3328_p10 = pnand %p3327_p9, %p3321_p1 }
  0x2b   : > { %3331 = shalt.err (!%p3328_p10)
}
  0x2c   : > { %2847 = dma.hbm_to_vmem [thread:$0]  (!%p3458_p6), %s4077_s4, 4096, %s3462_s18, [#allocation11], %s3382_s22, %s3382_s22, %s3383_s23  }
  0x2d   : > { %s3343_s14 = scalar_lea.vmem %s314_s20, 4096  ;;  %p3351_p0 = scmp.lt.s32.totalorder %s314_s20, %s314_s20 }
  0x2e   : > { %p3344_p11 = scmp.ne.s32.totalorder %s314_s20, %s3343_s14  ;;  %p3352_p1 = scmp.lt.s32.totalorder %s3343_s14, %s3343_s14 }
  0x30   : > { %p3346_p12 = pnand %p3344_p11, %p3256_p7  ;;  %p3353_p5 = por %p3352_p1, %p3351_p0 }
  0x32   : > { %p3347_p13 = pneg %p3346_p12 }
  0x34   : > { %p3354_p8 = pnand %p3353_p5, %p3347_p13 }
  0x36   : > { %3357 = shalt.err (!%p3354_p8)
}
  0x37   : > { %2850 = dma.hbm_to_vmem [thread:$0]  (!%p3458_p6), %s4078_s5, 4096, %s314_s20, [#allocation14], %s3382_s22, %s3382_s22, %s3383_s23  }
  0x38   : > { %355 = sbr.rel (%p3448_p4) target bundleno = 1212 (0x4bc), region = 52 }
  0x3d   : > { %3363 = dma.done.wait (%p2851_p3), [#allocation9], 4096  }
  0x3e   : > { %3365 = vsyncadd (%p2851_p3), [#allocation9], 4294963200 }
  0x3f   : > { %3367 = dma.done.wait (%p2851_p3), [#allocation11], 8192  }
  0x40   : > { %3369 = vsyncadd (%p2851_p3), [#allocation11], 4294959104 }
  0x41   : > { %3371 = dma.done.wait (%p2851_p3), [#allocation14], 4096  }
  0x42   : > { %3373 = vsyncadd (%p2851_p3), [#allocation14], 4294963200  ;;  %s2649_s11 = sshll.u32 %s3442_s10, 2  ;;  %s421_s16 = ssub.s32 1, %s3442_s10 }
  0x43   : > { %p416_p4 = scmp.lt.s32.totalorder %s2649_s11, 7  ;;  %s2651_s18 = sshll.u32 %s421_s16, 2 }
  0x44   : > { %p423_p6 = scmp.lt.s32.totalorder %s2651_s18, 7 }
  0x45   : > { %s4245_s11 = smov (!%p416_p4, %s2649_s11), 7  ;;  %447 = sbr.rel (%p2639_p2) target bundleno = 77 (0x4d), region = 72 }
  0x46   : > { %s4247_s18 = smov (!%p423_p6, %s2651_s18), 7  ;;  %s2650_s19 = sshll.u32 %s4245_s11, 2 }
  0x47   : > { %s3542_s22 = scalar_lea.vmem %s4073_s0, %s2650_s19  ;;  %s2652_s23 = sshll.u32 %s4247_s18, 2 }
  0x48   : > { %s3547_s26 = scalar_lea.vmem %s4074_s1, %s2652_s23  ;;  %s3552_s29 = scalar_lea.vmem %s4081_s8, %s2650_s19 }
  0x49   : > { %s3557_s14 = scalar_lea.vmem %s4082_s9, %s2652_s23 }
  0x4a   : > { %v3384_v0 = vmov 0.0  }
  0x4b   : > { %448 = vst [vmem:[#allocation2] sm:$0xff] %v3384_v0  ;;  %449 = vst [vmem:[#allocation3] sm:$0xff] %v3384_v0 }
  0x4c   : > { %450 = vst [vmem:[#allocation4] sm:$0xff] %v3384_v0  ;;  %451 = vst [vmem:[#allocation5] sm:$0xff] %v3384_v0 }
  0x4d PF: > { %v2875_v1 = vld [vmem:[#allocation8 + $0xe4] ss:$16 sps:$4 sm:$0xff]   ;;  %v2877_v2 = vld [vmem:[#allocation8 + $0xec] ss:$16 sps:$4 sm:$0xff]   ;;  %v4083_v3 = vmov 0  }
  0x4e   : > { %714 = vmatprep.mubr.bf16.mxu0 %v4083_v3  ;;  %767 = vmatprep.mubr.bf16.mxu1 %v4083_v3  ;;  %v2879_v4 = vld [vmem:[#allocation8 + $0xe0] ss:$16 sps:$4 sm:$0xff]   ;;  %v2880_v5 = vld [vmem:[#allocation8 + $0xe8] ss:$16 sps:$4 sm:$0xff]   ;;  %v2881_v6 = vld [vmem:[#allocation8 + $0xc4] ss:$16 sps:$4 sm:$0xff]  }
  0x4f   : > { %682 = vmatprep.subr.bf16.mxu0 %v2875_v1  ;;  %735 = vmatprep.subr.bf16.mxu1 %v2877_v2  ;;  %v2883_v7 = vld [vmem:[#allocation8 + $0xcc] ss:$16 sps:$4 sm:$0xff]   ;;  %v2885_v8 = vld [vmem:[#allocation8 + $0xc0] ss:$16 sps:$4 sm:$0xff]   ;;  %v2886_v9 = vld [vmem:[#allocation8 + $0xc8] ss:$16 sps:$4 sm:$0xff]  }
  0x50   : > { %683 = vmatpush1.bf16.msra.mxu0 %v2879_v4  ;;  %736 = vmatpush1.bf16.msra.mxu1 %v2880_v5  ;;  %v2887_v10 = vld [vmem:[#allocation8 + $0xa4] ss:$16 sps:$4 sm:$0xff]   ;;  %v2889_v11 = vld [vmem:[#allocation8 + $0xac] ss:$16 sps:$4 sm:$0xff]   ;;  %v2891_v12 = vld [vmem:[#allocation8 + $0xa0] ss:$16 sps:$4 sm:$0xff]  }
  0x51   : > { %684 = vmatprep.subr.bf16.mxu0 %v2881_v6  ;;  %737 = vmatprep.subr.bf16.mxu1 %v2883_v7  ;;  %v2892_v13 = vld [vmem:[#allocation8 + $0xa8] ss:$16 sps:$4 sm:$0xff]   ;;  %v2893_v14 = vld [vmem:[#allocation8 + $0x84] ss:$16 sps:$4 sm:$0xff]   ;;  %v2895_v15 = vld [vmem:[#allocation8 + $0x8c] ss:$16 sps:$4 sm:$0xff]  }
  0x52   : > { %v2897_v16 = vld [vmem:[#allocation8 + $0x80] ss:$16 sps:$4 sm:$0xff]   ;;  %v2898_v17 = vld [vmem:[#allocation8 + $0x88] ss:$16 sps:$4 sm:$0xff]   ;;  %v2899_v18 = vld [vmem:[#allocation8 + $0x64] ss:$16 sps:$4 sm:$0xff]  }
  0x53   : > { %v2901_v19 = vld [vmem:[#allocation8 + $0x6c] ss:$16 sps:$4 sm:$0xff]   ;;  %v2903_v20 = vld [vmem:[#allocation8 + $0x60] ss:$16 sps:$4 sm:$0xff]   ;;  %v2904_v21 = vld [vmem:[#allocation8 + $0x68] ss:$16 sps:$4 sm:$0xff]  }
  0x54   : > { %685 = vmatpush1.bf16.msra.mxu0 %v2885_v8  ;;  %738 = vmatpush1.bf16.msra.mxu1 %v2886_v9  ;;  %v2905_v22 = vld [vmem:[#allocation8 + $0x44] ss:$16 sps:$4 sm:$0xff]   ;;  %v2907_v23 = vld [vmem:[#allocation8 + $0x4c] ss:$16 sps:$4 sm:$0xff]   ;;  %v2909_v24 = vld [vmem:[#allocation8 + $0x40] ss:$16 sps:$4 sm:$0xff]  }
  0x55   : > { %686 = vmatprep.subr.bf16.mxu0 %v2887_v10  ;;  %739 = vmatprep.subr.bf16.mxu1 %v2889_v11  ;;  %v2910_v25 = vld [vmem:[#allocation8 + $0x48] ss:$16 sps:$4 sm:$0xff]   ;;  %v2911_v26 = vld [vmem:[#allocation8 + $0x24] ss:$16 sps:$4 sm:$0xff]   ;;  %v2913_v27 = vld [vmem:[#allocation8 + $0x2c] ss:$16 sps:$4 sm:$0xff]  }
  0x56   : > { %v2915_v28 = vld [vmem:[#allocation8 + $0x20] ss:$16 sps:$4 sm:$0xff]   ;;  %v2916_v29 = vld [vmem:[#allocation8 + $0x28] ss:$16 sps:$4 sm:$0xff]   ;;  %v2917_v30 = vld [vmem:[#allocation8 + $0x4] ss:$16 sps:$4 sm:$0xff]  }
  0x57   : > { %v2919_v31 = vld [vmem:[#allocation8 + $0xc] ss:$16 sps:$4 sm:$0xff]   ;;  %v2921_v32 = vld [vmem:[#allocation8] ss:$16 sps:$4 sm:$0xff]   ;;  %v2922_v33 = vld [vmem:[#allocation8 + $0x8] ss:$16 sps:$4 sm:$0xff]  }
  0x58   : > { %687 = vmatpush1.bf16.msra.mxu0 %v2891_v12  ;;  %740 = vmatpush1.bf16.msra.mxu1 %v2892_v13  ;;  %v2926_v34 = vld [vmem:[#allocation10 + $0xe4] ss:$16 sps:$4 sm:$0xff]   ;;  %v2929_v35 = vld [vmem:[#allocation10 + $0xec] ss:$16 sps:$4 sm:$0xff]   ;;  %v2924_v37 = vld [vmem:[#allocation10 + $0xe0] ss:$16 sps:$4 sm:$0xff]  }
  0x59   : > { %688 = vmatprep.subr.bf16.mxu0 %v2893_v14  ;;  %741 = vmatprep.subr.bf16.mxu1 %v2895_v15  ;;  %v2923_v36 = vld [vmem:[%s3542_s22] sm:$0xff]   ;;  %v2927_v38 = vld [vmem:[#allocation10 + $0xe8] ss:$16 sps:$4 sm:$0xff]   ;;  %v2935_v40 = vld [vmem:[#allocation10 + $0xcc] ss:$16 sps:$4 sm:$0xff]  }
  0x5a   : > { %v2932_v39 = vld [vmem:[#allocation10 + $0xc4] ss:$16 sps:$4 sm:$0xff]   ;;  %v2930_v41 = vld [vmem:[#allocation10 + $0xc0] ss:$16 sps:$4 sm:$0xff]   ;;  %v2933_v42 = vld [vmem:[#allocation10 + $0xc8] ss:$16 sps:$4 sm:$0xff]  }
  0x5b   : > { %v2938_v43 = vld [vmem:[#allocation10 + $0xa4] ss:$16 sps:$4 sm:$0xff]   ;;  %v2941_v44 = vld [vmem:[#allocation10 + $0xac] ss:$16 sps:$4 sm:$0xff]   ;;  %v2936_v46 = vld [vmem:[#allocation10 + $0xa0] ss:$16 sps:$4 sm:$0xff]  }
  0x5c   : > { %689 = vmatpush1.bf16.msra.mxu0 %v2897_v16  ;;  %742 = vmatpush1.bf16.msra.mxu1 %v2898_v17  ;;  %v2954_v45 = vld [vmem:[%s3542_s22 + $0x8] sm:$0xff]   ;;  %v2944_v48 = vld [vmem:[#allocation10 + $0x84] ss:$16 sps:$4 sm:$0xff]   ;;  %v2942_v50 = vld [vmem:[#allocation10 + $0x80] ss:$16 sps:$4 sm:$0xff]  }
  0x5d   : > { %690 = vmatprep.subr.bf16.mxu0 %v2899_v18  ;;  %743 = vmatprep.subr.bf16.mxu1 %v2901_v19  ;;  %v2939_v47 = vld [vmem:[#allocation10 + $0xa8] ss:$16 sps:$4 sm:$0xff]   ;;  %v2947_v49 = vld [vmem:[#allocation10 + $0x8c] ss:$16 sps:$4 sm:$0xff]   ;;  %v2950_v52 = vld [vmem:[#allocation10 + $0x64] ss:$16 sps:$4 sm:$0xff]  }
  0x5e   : > { %v2945_v51 = vld [vmem:[#allocation10 + $0x88] ss:$16 sps:$4 sm:$0xff]   ;;  %v2953_v53 = vld [vmem:[#allocation10 + $0x6c] ss:$16 sps:$4 sm:$0xff]   ;;  %v2948_v54 = vld [vmem:[#allocation10 + $0x60] ss:$16 sps:$4 sm:$0xff]  }
  0x5f   : > { %v2951_v55 = vld [vmem:[#allocation10 + $0x68] ss:$16 sps:$4 sm:$0xff]   ;;  %v2957_v56 = vld [vmem:[#allocation10 + $0x44] ss:$16 sps:$4 sm:$0xff]   ;;  %v2960_v57 = vld [vmem:[#allocation10 + $0x4c] ss:$16 sps:$4 sm:$0xff]  }
  0x60   : > { %691 = vmatpush1.bf16.msra.mxu0 %v2903_v20  ;;  %744 = vmatpush1.bf16.msra.mxu1 %v2904_v21  ;;  %v2955_v58 = vld [vmem:[#allocation10 + $0x40] ss:$16 sps:$4 sm:$0xff]   ;;  %v2958_v59 = vld [vmem:[#allocation10 + $0x48] ss:$16 sps:$4 sm:$0xff]   ;;  %v2963_v60 = vld [vmem:[#allocation10 + $0x24] ss:$16 sps:$4 sm:$0xff]  }
  0x61   : > { %692 = vmatprep.subr.bf16.mxu0 %v2905_v22  ;;  %745 = vmatprep.subr.bf16.mxu1 %v2907_v23  ;;  %v2966_v61 = vld [vmem:[#allocation10 + $0x2c] ss:$16 sps:$4 sm:$0xff]   ;;  %v2961_v62 = vld [vmem:[#allocation10 + $0x20] ss:$16 sps:$4 sm:$0xff]   ;;  %v2964_v63 = vld [vmem:[#allocation10 + $0x28] ss:$16 sps:$4 sm:$0xff]  }
  0x62   : > { %v2969_v0 = vld [vmem:[#allocation10 + $0x4] ss:$16 sps:$4 sm:$0xff]   ;;  %v2972_v1 = vld [vmem:[#allocation10 + $0xc] ss:$16 sps:$4 sm:$0xff]   ;;  %v2967_v2 = vld [vmem:[#allocation10] ss:$16 sps:$4 sm:$0xff]  }
  0x63   : > { %v2970_v4 = vld [vmem:[#allocation10 + $0x8] ss:$16 sps:$4 sm:$0xff]   ;;  %v3569_v5 = vld [vmem:[#allocation12 + $0xe4] ss:$16 sps:$4 sm:$0xff]   ;;  %v3571_v6 = vld [vmem:[#allocation12 + $0xec] ss:$16 sps:$4 sm:$0xff]  }
  0x64   : > { %693 = vmatpush1.bf16.msra.mxu0 %v2909_v24  ;;  %746 = vmatpush1.bf16.msra.mxu1 %v2910_v25  ;;  %v2973_v7 = vld [vmem:[%s3547_s26] sm:$0xff]   ;;  %v3576_v9 = vld [vmem:[#allocation12 + $0xe8] ss:$16 sps:$4 sm:$0xff]   ;;  %v3582_v11 = vld [vmem:[#allocation12 + $0xcc] ss:$16 sps:$4 sm:$0xff]  }
  0x65   : > { %694 = vmatprep.subr.bf16.mxu0 %v2911_v26  ;;  %747 = vmatprep.subr.bf16.mxu1 %v2913_v27  ;;  %v3574_v8 = vld [vmem:[#allocation12 + $0xe0] ss:$16 sps:$4 sm:$0xff]   ;;  %v3578_v10 = vld [vmem:[#allocation12 + $0xc4] ss:$16 sps:$4 sm:$0xff]   ;;  %4131 = vst [vmem:[#allocation18_spill] sm:$0xff] %v3582_v11  ;;  %v3004_v17 = vld [vmem:[%s3547_s26 + $0x8] sm:$0xff]  }
  0x66   : > { %v3584_v12 = vld [vmem:[#allocation12 + $0xc0] ss:$16 sps:$4 sm:$0xff]   ;;  %v3586_v13 = vld [vmem:[#allocation12 + $0xc8] ss:$16 sps:$4 sm:$0xff]   ;;  %v3590_v14 = vld [vmem:[#allocation12 + $0xa4] ss:$16 sps:$4 sm:$0xff]  }
  0x67   : > { %4132 = vst [vmem:[#allocation19_spill] sm:$0xff] %v3584_v12  ;;  %4133 = vst [vmem:[#allocation20_spill] sm:$0xff] %v3586_v13  ;;  %v3594_v15 = vld [vmem:[#allocation12 + $0xac] ss:$16 sps:$4 sm:$0xff]   ;;  %v3596_v16 = vld [vmem:[#allocation12 + $0xa0] ss:$16 sps:$4 sm:$0xff]  }
  0x68   : > { %695 = vmatpush1.bf16.msra.mxu0 %v2915_v28  ;;  %748 = vmatpush1.bf16.msra.mxu1 %v2916_v29  ;;  %4134 = vst [vmem:[#allocation21_spill] sm:$0xff] %v3590_v14  ;;  %4135 = vst [vmem:[#allocation22_spill] sm:$0xff] %v3594_v15  ;;  %v3603_v18 = vld [vmem:[#allocation12 + $0xa8] ss:$16 sps:$4 sm:$0xff]   ;;  %v3607_v19 = vld [vmem:[#allocation12 + $0x84] ss:$16 sps:$4 sm:$0xff]  }
  0x69   : > { %696 = vmatprep.subr.bf16.mxu0 %v2917_v30  ;;  %749 = vmatprep.subr.bf16.mxu1 %v2919_v31  ;;  %4136 = vst [vmem:[#allocation23_spill] sm:$0xff] %v3596_v16  ;;  %4137 = vst [vmem:[#allocation24_spill] sm:$0xff] %v3603_v18  ;;  %v3609_v20 = vld [vmem:[#allocation12 + $0x8c] ss:$16 sps:$4 sm:$0xff]   ;;  %v3611_v21 = vld [vmem:[#allocation12 + $0x80] ss:$16 sps:$4 sm:$0xff]  }
  0x6a   : > { %4138 = vst [vmem:[#allocation25_spill] sm:$0xff] %v3607_v19  ;;  %4139 = vst [vmem:[#allocation26_spill] sm:$0xff] %v3609_v20  ;;  %v3613_v22 = vld [vmem:[#allocation12 + $0x88] ss:$16 sps:$4 sm:$0xff]   ;;  %v3617_v23 = vld [vmem:[#allocation12 + $0x64] ss:$16 sps:$4 sm:$0xff]  }
  0x6b   : > { %4140 = vst [vmem:[#allocation27_spill] sm:$0xff] %v3611_v21  ;;  %4141 = vst [vmem:[#allocation28_spill] sm:$0xff] %v3613_v22  ;;  %v3621_v24 = vld [vmem:[#allocation12 + $0x6c] ss:$16 sps:$4 sm:$0xff]   ;;  %v3625_v25 = vld [vmem:[#allocation12 + $0x60] ss:$16 sps:$4 sm:$0xff]  }
  0x6c   : > { %697 = vmatpush1.bf16.msra.mxu0 %v2921_v32  ;;  %750 = vmatpush1.bf16.msra.mxu1 %v2922_v33  ;;  %4142 = vst [vmem:[#allocation29_spill] sm:$0xff] %v3617_v23  ;;  %4143 = vst [vmem:[#allocation30_spill] sm:$0xff] %v3621_v24  ;;  %v3629_v26 = vld [vmem:[#allocation12 + $0x68] ss:$16 sps:$4 sm:$0xff]   ;;  %v3633_v27 = vld [vmem:[#allocation12 + $0x44] ss:$16 sps:$4 sm:$0xff]  }
  0x6d   : > { %1034 = vmatprep.subr.bf16.mxu0 %v2926_v34  ;;  %1087 = vmatprep.subr.bf16.mxu1 %v2929_v35  ;;  %4144 = vst [vmem:[#allocation31_spill] sm:$0xff] %v3625_v25  ;;  %4145 = vst [vmem:[#allocation32_spill] sm:$0xff] %v3629_v26  ;;  %v3635_v28 = vld [vmem:[#allocation12 + $0x4c] ss:$16 sps:$4 sm:$0xff]   ;;  %v3637_v29 = vld [vmem:[#allocation12 + $0x40] ss:$16 sps:$4 sm:$0xff]  }
  0x6e   : > { %4146 = vst [vmem:[#allocation33_spill] sm:$0xff] %v3633_v27  ;;  %4147 = vst [vmem:[#allocation34_spill] sm:$0xff] %v3635_v28  ;;  %v3639_v30 = vld [vmem:[#allocation12 + $0x48] ss:$16 sps:$4 sm:$0xff]   ;;  %v3643_v31 = vld [vmem:[#allocation12 + $0x24] ss:$16 sps:$4 sm:$0xff]  }
  0x6f   : > { %715 = vmatmul.mubr.bf16.vlgmr.msra.gmra.mxu0 %v2923_v36  ;;  %768 = vmatmul.mubr.bf16.vlgmr.msra.gmra.mxu1 %v2923_v36  ;;  %4148 = vst [vmem:[#allocation35_spill] sm:$0xff] %v3637_v29  ;;  %4149 = vst [vmem:[#allocation36_spill] sm:$0xff] %v3639_v30  ;;  %v3647_v32 = vld [vmem:[#allocation12 + $0x2c] ss:$16 sps:$4 sm:$0xff]   ;;  %v3649_v33 = vld [vmem:[#allocation12 + $0x20] ss:$16 sps:$4 sm:$0xff]  }
  0x70   : > { %1035 = vmatpush1.bf16.msra.mxu0 %v2924_v37  ;;  %1088 = vmatpush1.bf16.msra.mxu1 %v2927_v38  ;;  %4150 = vst [vmem:[#allocation37_spill] sm:$0xff] %v3643_v31  ;;  %4151 = vst [vmem:[#allocation38_spill] sm:$0xff] %v3647_v32  ;;  %v3653_v34 = vld [vmem:[#allocation12 + $0x28] ss:$16 sps:$4 sm:$0xff]   ;;  %v3657_v35 = vld [vmem:[#allocation12 + $0x4] ss:$16 sps:$4 sm:$0xff]  }
  0x71   : > { %1036 = vmatprep.subr.bf16.mxu0 %v2932_v39  ;;  %1089 = vmatprep.subr.bf16.mxu1 %v2935_v40  ;;  %4152 = vst [vmem:[#allocation39_spill] sm:$0xff] %v3649_v33  ;;  %4153 = vst [vmem:[#allocation40_spill] sm:$0xff] %v3653_v34  ;;  %v3659_v36 = vld [vmem:[#allocation12 + $0xc] ss:$16 sps:$4 sm:$0xff]   ;;  %v3663_v37 = vld [vmem:[#allocation12] ss:$16 sps:$4 sm:$0xff]  }
  0x72   : > { %724 = vmatprep.mubr.bf16.mxu0 %v4083_v3  ;;  %777 = vmatprep.mubr.bf16.mxu1 %v4083_v3  ;;  %4154 = vst [vmem:[#allocation41_spill] sm:$0xff] %v3657_v35  ;;  %4155 = vst [vmem:[#allocation42_spill] sm:$0xff] %v3659_v36  ;;  %v3665_v38 = vld [vmem:[#allocation12 + $0x8] ss:$16 sps:$4 sm:$0xff]   ;;  %v1220_v39 = vld [vmem:[#allocation2] sm:$0xff] }
  0x73   : > { %4156 = vst [vmem:[#allocation43_spill] sm:$0xff] %v3663_v37  ;;  %4157 = vst [vmem:[#allocation44_spill] sm:$0xff] %v3665_v38  ;;  %v3669_v40 = vld [vmem:[#allocation13 + $0xe4] ss:$16 sps:$4 sm:$0xff]  }
  0x74   : > { %1037 = vmatpush1.bf16.msra.mxu0 %v2930_v41  ;;  %1090 = vmatpush1.bf16.msra.mxu1 %v2933_v42  ;;  %4158 = vst [vmem:[#allocation45_spill] sm:$0xff] %v3669_v40  ;;  %v3671_v41 = vld [vmem:[#allocation13 + $0xec] ss:$16 sps:$4 sm:$0xff]   ;;  %v1228_v42 = vpack.c.bf16 %v1220_v39, %v1220_v39 }
  0x75   : > { %1038 = vmatprep.subr.bf16.mxu0 %v2938_v43  ;;  %1091 = vmatprep.subr.bf16.mxu1 %v2941_v44  ;;  %4159 = vst [vmem:[#allocation46_spill] sm:$0xff] %v3671_v41  ;;  %v3675_v43 = vld [vmem:[#allocation13 + $0xe0] ss:$16 sps:$4 sm:$0xff]   ;;  %v3677_v44 = vld [vmem:[#allocation13 + $0xe8] ss:$16 sps:$4 sm:$0xff]  }
  0x76   : > { %v3757_v39 = vld [vmem:[#allocation13 + $0xc] ss:$16 sps:$4 sm:$0xff]  }
  0x77   : > { %725 = vmatmul.mubr.bf16.gmra.mxu0 %v2954_v45  ;;  %778 = vmatmul.mubr.bf16.gmra.mxu1 %v2954_v45  ;;  %v3681_v45 = vld [vmem:[#allocation13 + $0xc4] ss:$16 sps:$4 sm:$0xff]   ;;  %4162 = vst [vmem:[#allocation49_spill] sm:$0xff] %v3757_v39 }
  0x78   : > { %1039 = vmatpush1.bf16.msra.mxu0 %v2936_v46  ;;  %1092 = vmatpush1.bf16.msra.mxu1 %v2939_v47  ;;  %v3683_v46 = vld [vmem:[#allocation13 + $0xcc] ss:$16 sps:$4 sm:$0xff]   ;;  %v3687_v47 = vld [vmem:[#allocation13 + $0xc0] ss:$16 sps:$4 sm:$0xff]  }
  0x79   : > { %1040 = vmatprep.subr.bf16.mxu0 %v2944_v48  ;;  %1093 = vmatprep.subr.bf16.mxu1 %v2947_v49  ;;  %v3689_v48 = vld [vmem:[#allocation13 + $0xc8] ss:$16 sps:$4 sm:$0xff]   ;;  %v3693_v49 = vld [vmem:[#allocation13 + $0xa4] ss:$16 sps:$4 sm:$0xff]  }
  0x7a   : > { %1066 = vmatprep.mubr.bf16.mxu0 %v4083_v3  ;;  %1119 = vmatprep.mubr.bf16.mxu1 %v4083_v3 }
  0x7c   : > { %1041 = vmatpush1.bf16.msra.mxu0 %v2942_v50  ;;  %1094 = vmatpush1.bf16.msra.mxu1 %v2945_v51  ;;  %v3695_v50 = vld [vmem:[#allocation13 + $0xac] ss:$16 sps:$4 sm:$0xff]   ;;  %v3701_v51 = vld [vmem:[#allocation13 + $0xa0] ss:$16 sps:$4 sm:$0xff]  }
  0x7d   : > { %1042 = vmatprep.subr.bf16.mxu0 %v2950_v52  ;;  %1095 = vmatprep.subr.bf16.mxu1 %v2953_v53  ;;  %v3703_v52 = vld [vmem:[#allocation13 + $0xa8] ss:$16 sps:$4 sm:$0xff]   ;;  %v3707_v53 = vld [vmem:[#allocation13 + $0x84] ss:$16 sps:$4 sm:$0xff]  }
  0x80   : > { %1043 = vmatpush1.bf16.msra.mxu0 %v2948_v54  ;;  %1096 = vmatpush1.bf16.msra.mxu1 %v2951_v55  ;;  %v3709_v54 = vld [vmem:[#allocation13 + $0x8c] ss:$16 sps:$4 sm:$0xff]   ;;  %v3713_v55 = vld [vmem:[#allocation13 + $0x80] ss:$16 sps:$4 sm:$0xff]  }
  0x81   : > { %1044 = vmatprep.subr.bf16.mxu0 %v2957_v56  ;;  %1097 = vmatprep.subr.bf16.mxu1 %v2960_v57  ;;  %v3715_v56 = vld [vmem:[#allocation13 + $0x88] ss:$16 sps:$4 sm:$0xff]   ;;  %v3719_v57 = vld [vmem:[#allocation13 + $0x64] ss:$16 sps:$4 sm:$0xff]  }
  0x84   : > { %1045 = vmatpush1.bf16.msra.mxu0 %v2955_v58  ;;  %1098 = vmatpush1.bf16.msra.mxu1 %v2958_v59  ;;  %v3721_v58 = vld [vmem:[#allocation13 + $0x6c] ss:$16 sps:$4 sm:$0xff]   ;;  %v3725_v59 = vld [vmem:[#allocation13 + $0x60] ss:$16 sps:$4 sm:$0xff]  }
  0x85   : > { %1046 = vmatprep.subr.bf16.mxu0 %v2963_v60  ;;  %1099 = vmatprep.subr.bf16.mxu1 %v2966_v61  ;;  %v3727_v60 = vld [vmem:[#allocation13 + $0x68] ss:$16 sps:$4 sm:$0xff]   ;;  %v3731_v61 = vld [vmem:[#allocation13 + $0x44] ss:$16 sps:$4 sm:$0xff]  }
  0x88   : > { %1047 = vmatpush1.bf16.msra.mxu0 %v2961_v62  ;;  %1100 = vmatpush1.bf16.msra.mxu1 %v2964_v63  ;;  %v3733_v62 = vld [vmem:[#allocation13 + $0x4c] ss:$16 sps:$4 sm:$0xff]   ;;  %v3737_v63 = vld [vmem:[#allocation13 + $0x40] ss:$16 sps:$4 sm:$0xff]  }
  0x89   : > { %1048 = vmatprep.subr.bf16.mxu0 %v2969_v0  ;;  %1101 = vmatprep.subr.bf16.mxu1 %v2972_v1  ;;  %v3739_v0 = vld [vmem:[#allocation13 + $0x48] ss:$16 sps:$4 sm:$0xff]   ;;  %v3743_v1 = vld [vmem:[#allocation13 + $0x24] ss:$16 sps:$4 sm:$0xff]  }
  0x8a   : > { %4160 = vst [vmem:[#allocation47_spill] sm:$0xff] %v3739_v0  ;;  %4161 = vst [vmem:[#allocation48_spill] sm:$0xff] %v3743_v1 }
  0x8c   : > { %1049 = vmatpush1.bf16.msra.mxu0 %v2967_v2  ;;  %1102 = vmatpush1.bf16.msra.mxu1 %v2970_v4  ;;  %v3745_v2 = vld [vmem:[#allocation13 + $0x2c] ss:$16 sps:$4 sm:$0xff]   ;;  %v3749_v4 = vld [vmem:[#allocation13 + $0x20] ss:$16 sps:$4 sm:$0xff]  }
  0x8d   : > { %1389 = vmatprep.subr.bf16.mxu0 %v3569_v5  ;;  %1430 = vmatprep.subr.bf16.mxu1 %v3571_v6 }
  0x8f   : > { %1067 = vmatmul.mubr.bf16.vlgmr.msra.gmra.mxu0 %v2973_v7  ;;  %1120 = vmatmul.mubr.bf16.vlgmr.msra.gmra.mxu1 %v2973_v7  ;;  %v3751_v7 = vld [vmem:[#allocation13 + $0x28] ss:$16 sps:$4 sm:$0xff]  }
  0x90   : > { %1390 = vmatpush1.bf16.msra.mxu0 %v3574_v8  ;;  %1431 = vmatpush1.bf16.msra.mxu1 %v3576_v9 }
  0x91   : > { %1391 = vmatprep.subr.bf16.mxu0 %v3578_v10  ;;  %1432 = vmatprep.subr.bf16.mxu1 %v3582_v11 }
  0x92   : > { %1076 = vmatprep.mubr.bf16.mxu0 %v4083_v3  ;;  %1129 = vmatprep.mubr.bf16.mxu1 %v4083_v3 }
  0x94   : > { %1392 = vmatpush1.bf16.msra.mxu0 %v3584_v12  ;;  %1433 = vmatpush1.bf16.msra.mxu1 %v3586_v13 }
  0x95   : > { %1393 = vmatprep.subr.bf16.mxu0 %v3590_v14  ;;  %1434 = vmatprep.subr.bf16.mxu1 %v3594_v15 }
  0x97   : > { %1077 = vmatmul.mubr.bf16.gmra.mxu0 %v3004_v17  ;;  %1130 = vmatmul.mubr.bf16.gmra.mxu1 %v3004_v17  ;;  %v3755_v17 = vld [vmem:[#allocation13 + $0x4] ss:$16 sps:$4 sm:$0xff]  }
  0x98   : > { %1394 = vmatpush1.bf16.msra.mxu0 %v3596_v16  ;;  %1435 = vmatpush1.bf16.msra.mxu1 %v3603_v18 }
  0x99   : > { %1395 = vmatprep.subr.bf16.mxu0 %v3607_v19  ;;  %1436 = vmatprep.subr.bf16.mxu1 %v3609_v20 }
  0x9a   : > { %1421 = vmatprep.mubr.bf16.mxu0 %v4083_v3  ;;  %1462 = vmatprep.mubr.bf16.mxu1 %v4083_v3 }
  0x9c   : > { %1396 = vmatpush1.bf16.msra.mxu0 %v3611_v21  ;;  %1437 = vmatpush1.bf16.msra.mxu1 %v3613_v22 }
  0x9d   : > { %1397 = vmatprep.subr.bf16.mxu0 %v3617_v23  ;;  %1438 = vmatprep.subr.bf16.mxu1 %v3621_v24 }
  0xa0   : > { %1398 = vmatpush1.bf16.msra.mxu0 %v3625_v25  ;;  %1439 = vmatpush1.bf16.msra.mxu1 %v3629_v26 }
  0xa1   : > { %1399 = vmatprep.subr.bf16.mxu0 %v3633_v27  ;;  %1440 = vmatprep.subr.bf16.mxu1 %v3635_v28 }
  0xa4   : > { %1400 = vmatpush1.bf16.msra.mxu0 %v3637_v29  ;;  %1441 = vmatpush1.bf16.msra.mxu1 %v3639_v30 }
  0xa5   : > { %1401 = vmatprep.subr.bf16.mxu0 %v3643_v31  ;;  %1442 = vmatprep.subr.bf16.mxu1 %v3647_v32 }
  0xa8   : > { %1402 = vmatpush1.bf16.msra.mxu0 %v3649_v33  ;;  %1443 = vmatpush1.bf16.msra.mxu1 %v3653_v34 }
  0xa9   : > { %1403 = vmatprep.subr.bf16.mxu0 %v3657_v35  ;;  %1444 = vmatprep.subr.bf16.mxu1 %v3659_v36 }
  0xac   : > { %1404 = vmatpush1.bf16.msra.mxu0 %v3663_v37  ;;  %1445 = vmatpush1.bf16.msra.mxu1 %v3665_v38 }
  0xad   : > { %1665 = vmatprep.subr.bf16.mxu0 %v3669_v40  ;;  %1706 = vmatprep.subr.bf16.mxu1 %v3671_v41 }
  0xaf   : > { %1422 = vmatmul.mubr.bf16.vlgmr.msra.gmra.mxu0 %v1228_v42  ;;  %1463 = vmatmul.mubr.bf16.vlgmr.msra.gmra.mxu1 %v1228_v42  ;;  %v3761_v42 = vld [vmem:[#allocation13] ss:$16 sps:$4 sm:$0xff]  }
  0xb0   : > { %1666 = vmatpush1.bf16.msra.mxu0 %v3675_v43  ;;  %1707 = vmatpush1.bf16.msra.mxu1 %v3677_v44 }
  0xb1   : > { %1667 = vmatprep.subr.bf16.mxu0 %v3681_v45  ;;  %1708 = vmatprep.subr.bf16.mxu1 %v3683_v46 }
  0xb2   : > { %1697 = vmatprep.mubr.bf16.mxu0 %v4083_v3  ;;  %1738 = vmatprep.mubr.bf16.mxu1 %v4083_v3  ;;  %v3763_v3 = vld [vmem:[#allocation13 + $0x8] ss:$16 sps:$4 sm:$0xff]  }
  0xb4   : > { %1668 = vmatpush1.bf16.msra.mxu0 %v3687_v47  ;;  %1709 = vmatpush1.bf16.msra.mxu1 %v3689_v48 }
  0xb5   : > { %1669 = vmatprep.subr.bf16.mxu0 %v3693_v49  ;;  %1710 = vmatprep.subr.bf16.mxu1 %v3695_v50 }
  0xb8   : > { %1670 = vmatpush1.bf16.msra.mxu0 %v3701_v51  ;;  %1711 = vmatpush1.bf16.msra.mxu1 %v3703_v52 }
  0xb9   : > { %1671 = vmatprep.subr.bf16.mxu0 %v3707_v53  ;;  %1712 = vmatprep.subr.bf16.mxu1 %v3709_v54 }
  0xbc   : > { %1672 = vmatpush1.bf16.msra.mxu0 %v3713_v55  ;;  %1713 = vmatpush1.bf16.msra.mxu1 %v3715_v56 }
  0xbd   : > { %1673 = vmatprep.subr.bf16.mxu0 %v3719_v57  ;;  %1714 = vmatprep.subr.bf16.mxu1 %v3721_v58 }
  0xc0   : > { %1674 = vmatpush1.bf16.msra.mxu0 %v3725_v59  ;;  %1715 = vmatpush1.bf16.msra.mxu1 %v3727_v60 }
  0xc1   : > { %1675 = vmatprep.subr.bf16.mxu0 %v3731_v61  ;;  %1716 = vmatprep.subr.bf16.mxu1 %v3733_v62 }
  0xc4   : > { %1676 = vmatpush1.bf16.msra.mxu0 %v3737_v63  ;;  %1717 = vmatpush1.bf16.msra.mxu1 %v3739_v0  ;;  %v1222_v0 = vld [vmem:[#allocation4] sm:$0xff] }
  0xc5   : > { %1677 = vmatprep.subr.bf16.mxu0 %v3743_v1  ;;  %1718 = vmatprep.subr.bf16.mxu1 %v3745_v2  ;;  %v1504_v1 = vpack.c.bf16 %v1222_v0, %v1222_v0  ;;  %v490_v0 = vlaneseq }
  0xc8   : > { %1678 = vmatpush1.bf16.msra.mxu0 %v3749_v4  ;;  %1719 = vmatpush1.bf16.msra.mxu1 %v3751_v7 }
  0xc9   : > { %1679 = vmatprep.subr.bf16.mxu0 %v3755_v17  ;;  %1720 = vmatprep.subr.bf16.mxu1 %v3757_v39  ;;  %v4163_v39 = vmov 0  }
  0xcc   : > { %1680 = vmatpush1.bf16.msra.mxu0 %v3761_v42  ;;  %1721 = vmatpush1.bf16.msra.mxu1 %v3763_v3 }
  0xcd   : > { %1785 = vmatprep.subr.bf16.mxu0 %v3569_v5  ;;  %1826 = vmatprep.subr.bf16.mxu1 %v3571_v6 }
  0xcf   : > { %1698 = vmatmul.mubr.bf16.vlgmr.msra.gmra.mxu0 %v1504_v1  ;;  %1739 = vmatmul.mubr.bf16.vlgmr.msra.gmra.mxu1 %v1504_v1  ;;  %v491_v1 = vshrl.u32 %v490_v0, 7 }
  0xd0   : > { %1786 = vmatpush1.bf16.msra.mxu0 %v3574_v8  ;;  %1827 = vmatpush1.bf16.msra.mxu1 %v3576_v9 }
  0xd1   : > { %1787 = vmatprep.subr.bf16.mxu0 %v3578_v10  ;;  %1828 = vmatprep.subr.bf16.mxu1 %v3582_v11 }
  0xd2   : > { %1817 = vmatprep.mubr.bf16.mxu0 %v4163_v39  ;;  %1858 = vmatprep.mubr.bf16.mxu1 %v4163_v39 }
  0xd4   : > { %1788 = vmatpush1.bf16.msra.mxu0 %v3584_v12  ;;  %1829 = vmatpush1.bf16.msra.mxu1 %v3586_v13 }
  0xd5   : > { %1789 = vmatprep.subr.bf16.mxu0 %v3590_v14  ;;  %1830 = vmatprep.subr.bf16.mxu1 %v3594_v15 }
  0xd8   : > { %1790 = vmatpush1.bf16.msra.mxu0 %v3596_v16  ;;  %1831 = vmatpush1.bf16.msra.mxu1 %v3603_v18 }
  0xd9   : > { %1791 = vmatprep.subr.bf16.mxu0 %v3607_v19  ;;  %1832 = vmatprep.subr.bf16.mxu1 %v3609_v20 }
  0xdc   : > { %1792 = vmatpush1.bf16.msra.mxu0 %v3611_v21  ;;  %1833 = vmatpush1.bf16.msra.mxu1 %v3613_v22 }
  0xdd   : > { %1793 = vmatprep.subr.bf16.mxu0 %v3617_v23  ;;  %1834 = vmatprep.subr.bf16.mxu1 %v3621_v24 }
  0xe0   : > { %1794 = vmatpush1.bf16.msra.mxu0 %v3625_v25  ;;  %1835 = vmatpush1.bf16.msra.mxu1 %v3629_v26 }
  0xe1   : > { %1795 = vmatprep.subr.bf16.mxu0 %v3633_v27  ;;  %1836 = vmatprep.subr.bf16.mxu1 %v3635_v28 }
  0xe4   : > { %1796 = vmatpush1.bf16.msra.mxu0 %v3637_v29  ;;  %1837 = vmatpush1.bf16.msra.mxu1 %v3639_v30  ;;  %v504_v30 = vsub.s32 3, %v491_v1 }
  0xe5   : > { %1797 = vmatprep.subr.bf16.mxu0 %v3643_v31  ;;  %1838 = vmatprep.subr.bf16.mxu1 %v3647_v32  ;;  %v500_v31 = vsub.s32 2, %v491_v1  ;;  %v492_v32 = vsub.s32 0, %v491_v1 }
  0xe8   : > { %1798 = vmatpush1.bf16.msra.mxu0 %v3649_v33  ;;  %1839 = vmatpush1.bf16.msra.mxu1 %v3653_v34  ;;  %v488_v34 = vld [vmem:[%s4079_s6] sm:$0xf] }
  0xe9   : > { %1799 = vmatprep.subr.bf16.mxu0 %v3657_v35  ;;  %1840 = vmatprep.subr.bf16.mxu1 %v3659_v36  ;;  %v3812_v33 = vrot.slane %v488_v34, %v500_v31  ;;  %v3818_v0 = vrot.slane %v488_v34, %v504_v30 }
  0xec   : > { %1800 = vmatpush1.bf16.msra.mxu0 %v3663_v37  ;;  %1841 = vmatpush1.bf16.msra.mxu1 %v3665_v38  ;;  %v496_v37 = vsub.s32 1, %v491_v1 }
  0xed   : > { %1900 = vmatprep.subr.bf16.mxu0 %v3669_v40  ;;  %1941 = vmatprep.subr.bf16.mxu1 %v3671_v41  ;;  %v493_v41 = vrot.slane %v488_v34, %v492_v32 }
  0xee   : > { %v497_v27 = vrot.slane %v488_v34, %v496_v37 }
 0x12f   : > { %v3808_v35 = vpop.f32.mrf.mxu0  ;;  %v3810_v36 = vpop.f32.mrf.mxu1 }
 0x131   : > { %v3814_v38 = vpop.f32.mrf.mxu0  ;;  %v3816_v40 = vpop.f32.mrf.mxu1 }
 0x132   : > { %v772_v11 = vadd.f32 %v3816_v40, %v3818_v0 }
 0x133   : > { %v720_v29 = vpop.f32.mrf.mxu0  ;;  %v773_v28 = vpop.f32.mrf.mxu1 }
 0x134   : > { %v3820_v26 = vadd.f32 %v720_v29, %v493_v41  ;;  %v3823_v25 = vadd.f32 %v773_v28, %v3812_v33 }
 0x135   : > { %v722_v24 = vpop.f32.mrf.mxu0  ;;  %v775_v23 = vpop.f32.mrf.mxu1 }
 0x136   : > { %4164 = vst [vmem:[#allocation50_spill] sm:$0xff] %v3820_v26  ;;  %4165 = vst [vmem:[#allocation51_spill] sm:$0xff] %v3823_v25  ;;  %v3825_v1 = vadd.f32 %v722_v24, %v497_v27  ;;  %v3828_v22 = vadd.f32 %v775_v23, %v3818_v0 }
 0x137   : > { %v726_v21 = vpop.f32.mrf.mxu0  ;;  %v779_v20 = vpop.f32.mrf.mxu1 }
 0x138   : > { %4166 = vst [vmem:[#allocation52_spill] sm:$0xff] %v3825_v1  ;;  %4167 = vst [vmem:[#allocation53_spill] sm:$0xff] %v3828_v22  ;;  %v3830_v19 = vadd.f32 %v726_v21, %v493_v41  ;;  %v3833_v18 = vadd.f32 %v779_v20, %v3812_v33 }
 0x139   : > { %v728_v34 = vpop.f32.mrf.mxu0  ;;  %v781_v29 = vpop.f32.mrf.mxu1 }
 0x13a   : > { %4168 = vst [vmem:[#allocation54_spill] sm:$0xff] %v3830_v19  ;;  %4169 = vst [vmem:[#allocation55_spill] sm:$0xff] %v3833_v18  ;;  %v3835_v26 = vadd.f32 %v728_v34, %v497_v27  ;;  %v3838_v28 = vadd.f32 %v781_v29, %v3818_v0  ;;  %v840_v34 = vld [vmem:[%s4080_s7] sm:$0xf] }
 0x13b   : > { %v730_v25 = vpop.f32.mrf.mxu0  ;;  %v783_v24 = vpop.f32.mrf.mxu1  ;;  %v845_v29 = vrot.slane %v840_v34, %v492_v32  ;;  %v3853_v18 = vrot.slane %v840_v34, %v500_v31 }
 0x13c   : > { %4170 = vst [vmem:[#allocation56_spill] sm:$0xff] %v3835_v26  ;;  %4171 = vst [vmem:[#allocation57_spill] sm:$0xff] %v3838_v28  ;;  %v3840_v1 = vadd.f32 %v730_v25, %v493_v41  ;;  %v3843_v23 = vadd.f32 %v783_v24, %v3812_v33  ;;  %v3855_v28 = vrot.slane %v840_v34, %v496_v37 }
 0x13d   : > { %v732_v22 = vpop.f32.mrf.mxu0  ;;  %v785_v21 = vpop.f32.mrf.mxu1  ;;  %v3857_v25 = vrot.slane %v840_v34, %v504_v30 }
 0x13e   : > { %4172 = vst [vmem:[#allocation58_spill] sm:$0xff] %v3840_v1  ;;  %4173 = vst [vmem:[#allocation59_spill] sm:$0xff] %v3843_v23  ;;  %v3845_v19 = vadd.f32 %v732_v22, %v497_v27  ;;  %v3848_v20 = vadd.f32 %v785_v21, %v3818_v0  ;;  %v1221_v0 = vld [vmem:[#allocation3] sm:$0xff] }
 0x140   : > { %4174 = vst [vmem:[#allocation60_spill] sm:$0xff] %v3845_v19  ;;  %4175 = vst [vmem:[#allocation61_spill] sm:$0xff] %v3848_v20 }
 0x14f   : > { %v1068_v24 = vpop.f32.mrf.mxu0  ;;  %v1121_v23 = vpop.f32.mrf.mxu1 }
 0x150   : > { %v3859_v1 = vadd.f32 %v1068_v24, %v845_v29  ;;  %v3862_v22 = vadd.f32 %v1121_v23, %v3853_v18 }
 0x151   : > { %v1070_v21 = vpop.f32.mrf.mxu0  ;;  %v1123_v20 = vpop.f32.mrf.mxu1 }
 0x152   : > { %4176 = vst [vmem:[#allocation62_spill] sm:$0xff] %v3859_v1  ;;  %4177 = vst [vmem:[#allocation63_spill] sm:$0xff] %v3862_v22  ;;  %v3865_v19 = vadd.f32 %v1070_v21, %v3855_v28  ;;  %v3868_v32 = vadd.f32 %v1123_v20, %v3857_v25 }
 0x153   : > { %v1072_v31 = vpop.f32.mrf.mxu0  ;;  %v1125_v37 = vpop.f32.mrf.mxu1 }
 0x154   : > { %4178 = vst [vmem:[#allocation64_spill] sm:$0xff] %v3865_v19  ;;  %4179 = vst [vmem:[#allocation65_spill] sm:$0xff] %v3868_v32  ;;  %v3870_v26 = vadd.f32 %v1072_v31, %v845_v29  ;;  %v3873_v30 = vadd.f32 %v1125_v37, %v3853_v18 }
 0x155   : > { %v1074_v34 = vpop.f32.mrf.mxu0  ;;  %v1127_v24 = vpop.f32.mrf.mxu1 }
 0x156   : > { %4180 = vst [vmem:[#allocation66_spill] sm:$0xff] %v3870_v26  ;;  %4181 = vst [vmem:[#allocation67_spill] sm:$0xff] %v3873_v30  ;;  %v3876_v23 = vadd.f32 %v1074_v34, %v3855_v28  ;;  %v3879_v22 = vadd.f32 %v1127_v24, %v3857_v25 }
 0x157   : > { %v1078_v21 = vpop.f32.mrf.mxu0  ;;  %v1131_v19 = vpop.f32.mrf.mxu1 }
 0x158   : > { %4182 = vst [vmem:[#allocation68_spill] sm:$0xff] %v3876_v23  ;;  %4183 = vst [vmem:[#allocation69_spill] sm:$0xff] %v3879_v22  ;;  %v3881_v1 = vadd.f32 %v1078_v21, %v845_v29  ;;  %v3884_v20 = vadd.f32 %v1131_v19, %v3853_v18  ;;  %v717_v22 = vadd.f32 %v3808_v35, %v493_v41 }
 0x159   : > { %v1080_v31 = vpop.f32.mrf.mxu0  ;;  %v1133_v32 = vpop.f32.mrf.mxu1  ;;  %v770_v41 = vadd.f32 %v3810_v36, %v3812_v33 }
 0x15a   : > { %4184 = vst [vmem:[#allocation70_spill] sm:$0xff] %v3881_v1  ;;  %4185 = vst [vmem:[#allocation71_spill] sm:$0xff] %v3884_v20  ;;  %v3887_v37 = vadd.f32 %v1080_v31, %v3855_v28  ;;  %v3890_v30 = vadd.f32 %v1133_v32, %v3857_v25  ;;  %v719_v1 = vadd.f32 %v3814_v38, %v497_v27 }
 0x15b   : > { %v1135_v34 = vpop.f32.mrf.mxu1  ;;  %v1082_v23 = vpop.f32.mrf.mxu0 }
 0x15c   : > { %4186 = vst [vmem:[#allocation72_spill] sm:$0xff] %v3887_v37  ;;  %4187 = vst [vmem:[#allocation73_spill] sm:$0xff] %v3890_v30 }
 0x15d   : > { %v1137_v26 = vpop.f32.mrf.mxu1  ;;  %v1084_v24 = vpop.f32.mrf.mxu0 }
 0x15e   : > { %v1085_v40 = vadd.f32 %v1084_v24, %v3855_v28  ;;  %v1138_v28 = vadd.f32 %v1137_v26, %v3857_v25  ;;  %v1223_v25 = vld [vmem:[#allocation5] sm:$0xff] }
 0x16f   : > { %v1423_v16 = vpop.f32.mrf.mxu0  ;;  %v1464_v21 = vpop.f32.mrf.mxu1 }
 0x170   : > { %v1471_v19 = vadd.f32 %v1423_v16, %v717_v22  ;;  %v1473_v38 = vadd.f32 %v1464_v21, %v770_v41 }
 0x171   : > { %v1425_v20 = vpop.f32.mrf.mxu0  ;;  %v1466_v15 = vpop.f32.mrf.mxu1 }
 0x172   : > { %v2758_v14 = vmul.f32 -1.442695, %v1471_v19  ;;  %v1472_v13 = vadd.f32 %v1425_v20, %v719_v1  ;;  %v1474_v35 = vadd.f32 %v1466_v15, %v772_v11 }
 0x173   : > { %v1427_v31 = vpop.f32.mrf.mxu0  ;;  %v1468_v37 = vpop.f32.mrf.mxu1 }
 0x174   : > { %3071 = vpow2.f32 %v2758_v14  ;;  %v2759_v32 = vmul.f32 -1.442695, %v1472_v13  ;;  %v2760_v27 = vmul.f32 -1.442695, %v1474_v35  ;;  %v1083_v13 = vadd.f32 %v1082_v23, %v845_v29 }
 0x175   : > { %v1428_v30 = vpop.f32.mrf.mxu0  ;;  %v1469_v12 = vpop.f32.mrf.mxu1 }
 0x176   : > { %3073 = vpow2.f32 %v2759_v32 }
 0x177   : > { %3075 = vpow2.f32 %v2760_v27 }
 0x181   : > { %v3072_v16 = vpop.eup %3071 }
 0x182   : > { %v1478_v22 = vadd.f32 1.0, %v3072_v16 }
 0x183   : > { %v3074_v19 = vpop.eup %3073 }
 0x184   : > { %3077 = vrcp.f32 %v1478_v22  ;;  %v1484_v1 = vadd.f32 1.0, %v3074_v19  ;;  %v3076_v30 = vpop.eup %3075  ;;  %v1136_v19 = vadd.f32 %v1135_v34, %v3853_v18 }
 0x185   : > { %3079 = vtanh.f32 %v1473_v38  ;;  %v1491_v32 = vadd.f32 1.0, %v3076_v30 }
 0x186   : > { %3081 = vrcp.f32 %v1484_v1 }
 0x18f   : > { %v1699_v12 = vpop.f32.mrf.mxu0  ;;  %v1740_v14 = vpop.f32.mrf.mxu1 }
 0x190   : > { %v1747_v11 = vadd.f32 %v1699_v12, %v1083_v13  ;;  %v1749_v12 = vadd.f32 %v1740_v14, %v1136_v19  ;;  %v4196_v19 = vld [vmem:[#allocation23_spill] sm:$0xff] }
 0x191   : > { %v3078_v15 = vpop.eup %3077  ;;  %v1701_v33 = vpop.f32.mrf.mxu0 }
 0x192   : > { %v1742_v36 = vpop.f32.mrf.mxu1  ;;  %v3080_v20 = vpop.eup %3079  ;;  %v2793_v37 = vmul.f32 -1.442695, %v1747_v11  ;;  %v1748_v21 = vadd.f32 %v1701_v33, %v1085_v40 }
 0x193   : > { %v3082_v31 = vpop.eup %3081  ;;  %v1703_v35 = vpop.f32.mrf.mxu0  ;;  %v1495_v27 = vmul.f32 %v3080_v20, %v3078_v15  ;;  %v1750_v24 = vadd.f32 %v1742_v36, %v1138_v28  ;;  %v4192_v28 = vld [vmem:[#allocation19_spill] sm:$0xff] }
 0x194   : > { %v1744_v41 = vpop.f32.mrf.mxu1  ;;  %v1494_v16 = vmul.f32 %v3082_v31, %v1221_v0  ;;  %3083 = vpow2.f32 %v2793_v37  ;;  %v2794_v29 = vmul.f32 -1.442695, %v1748_v21  ;;  %v4189_v35 = vld [vmem:[#allocation48_spill] sm:$0xff] }
 0x195   : > { %v1704_v23 = vpop.f32.mrf.mxu0  ;;  %v2795_v1 = vmul.f32 -1.442695, %v1750_v24  ;;  %v4195_v24 = vld [vmem:[#allocation22_spill] sm:$0xff] }
 0x196   : > { %v1745_v38 = vpop.f32.mrf.mxu1  ;;  %v3899_v22 = vadd.f32 %v1495_v27, %v1494_v16  ;;  %3085 = vpow2.f32 %v2794_v29  ;;  %v4190_v27 = vld [vmem:[#allocation49_spill] sm:$0xff] }
 0x197   : > { %3087 = vrcp.f32 %v1491_v32  ;;  %v4188_v32 = vld [vmem:[#allocation47_spill] sm:$0xff]  ;;  %v4191_v38 = vld [vmem:[#allocation18_spill] sm:$0xff] }
 0x198   : > { %3089 = vtanh.f32 %v3899_v22 }
 0x199   : > { %3091 = vpow2.f32 %v2795_v1  ;;  %v4200_v1 = vld [vmem:[#allocation27_spill] sm:$0xff] }
 0x1a1   : > { %v3084_v13 = vpop.eup %3083 }
 0x1a2   : > { %v1754_v30 = vadd.f32 1.0, %v3084_v13  ;;  %v4201_v13 = vld [vmem:[#allocation28_spill] sm:$0xff] }
 0x1a3   : > { %v3086_v40 = vpop.eup %3085 }
 0x1a4   : > { %v3088_v11 = vpop.eup %3087  ;;  %3093 = vrcp.f32 %v1754_v30  ;;  %v1760_v15 = vadd.f32 1.0, %v3086_v40  ;;  %v4203_v30 = vld [vmem:[#allocation30_spill] sm:$0xff]  ;;  %v4204_v40 = vld [vmem:[#allocation31_spill] sm:$0xff] }
 0x1a5   : > { %v3090_v0 = vpop.eup %3089  ;;  %3095 = vtanh.f32 %v1749_v12  ;;  %v4202_v12 = vld [vmem:[#allocation29_spill] sm:$0xff] }
 0x1a6   : > { %3097 = vrcp.f32 %v1760_v15  ;;  %v1498_v33 = vmul.f32 %v3090_v0, %v3088_v11  ;;  %v3092_v18 = vpop.eup %3091  ;;  %v4205_v11 = vld [vmem:[#allocation32_spill] sm:$0xff]  ;;  %v4206_v15 = vld [vmem:[#allocation33_spill] sm:$0xff]  ;;  %v4207_v0 = vld [vmem:[#allocation34_spill] sm:$0xff] }
 0x1a7   : > { %v1767_v36 = vadd.f32 1.0, %v3092_v18  ;;  %v4210_v18 = vld [vmem:[#allocation37_spill] sm:$0xff] }
 0x1a8   : > { %v1775_v20 = vpack.c.bf16 %v1498_v33, %v1498_v33  ;;  %v4208_v33 = vld [vmem:[#allocation35_spill] sm:$0xff] }
 0x1a9   : > { %3099 = vrcp.f32 %v1767_v36  ;;  %v4215_v36 = vld [vmem:[#allocation42_spill] sm:$0xff] }
 0x1aa   : > { %1776 = vst [vmem:[%s3552_s29] sm:$0xf] %v1775_v20  ;;  %1818 = vmatmul.mubr.bf16.vlgmr.msra.gmra.mxu0 %v1775_v20  ;;  %1859 = vmatmul.mubr.bf16.vlgmr.msra.gmra.mxu1 %v1775_v20  ;;  %v4209_v20 = vld [vmem:[#allocation36_spill] sm:$0xff] }
 0x1ab   : > { %1901 = vmatpush1.bf16.msra.mxu0 %v3675_v43  ;;  %1942 = vmatpush1.bf16.msra.mxu1 %v3677_v44 }
 0x1ac   : > { %1902 = vmatprep.subr.bf16.mxu0 %v3681_v45  ;;  %1943 = vmatprep.subr.bf16.mxu1 %v3683_v46 }
 0x1ad   : > { %1932 = vmatprep.mubr.bf16.mxu0 %v4163_v39  ;;  %1973 = vmatprep.mubr.bf16.mxu1 %v4163_v39 }
 0x1af   : > { %1903 = vmatpush1.bf16.msra.mxu0 %v3687_v47  ;;  %1944 = vmatpush1.bf16.msra.mxu1 %v3689_v48 }
 0x1b0   : > { %1904 = vmatprep.subr.bf16.mxu0 %v3693_v49  ;;  %1945 = vmatprep.subr.bf16.mxu1 %v3695_v50 }
 0x1b1   : > { %v3094_v26 = vpop.eup %3093 }
 0x1b2   : > { %v3096_v34 = vpop.eup %3095 }
 0x1b3   : > { %v3098_v14 = vpop.eup %3097  ;;  %1905 = vmatpush1.bf16.msra.mxu0 %v3701_v51  ;;  %1946 = vmatpush1.bf16.msra.mxu1 %v3703_v52  ;;  %v1771_v37 = vmul.f32 %v3096_v34, %v3094_v26  ;;  %v4211_v26 = vld [vmem:[#allocation38_spill] sm:$0xff]  ;;  %v4213_v34 = vld [vmem:[#allocation40_spill] sm:$0xff] }
 0x1b4   : > { %v1770_v21 = vmul.f32 %v3098_v14, %v1223_v25  ;;  %1906 = vmatprep.subr.bf16.mxu0 %v3707_v53  ;;  %1947 = vmatprep.subr.bf16.mxu1 %v3709_v54  ;;  %v4212_v25 = vld [vmem:[#allocation39_spill] sm:$0xff]  ;;  %v4214_v14 = vld [vmem:[#allocation41_spill] sm:$0xff] }
 0x1b6   : > { %v3919_v31 = vadd.f32 %v1771_v37, %v1770_v21  ;;  %v3100_v41 = vpop.eup %3099  ;;  %v4216_v37 = vld [vmem:[#allocation43_spill] sm:$0xff]  ;;  %v4217_v21 = vld [vmem:[#allocation44_spill] sm:$0xff] }
 0x1b7   : > { %1907 = vmatpush1.bf16.msra.mxu0 %v3713_v55  ;;  %1948 = vmatpush1.bf16.msra.mxu1 %v3715_v56 }
 0x1b8   : > { %1908 = vmatprep.subr.bf16.mxu0 %v3719_v57  ;;  %1949 = vmatprep.subr.bf16.mxu1 %v3721_v58  ;;  %3101 = vtanh.f32 %v3919_v31 }
 0x1bb   : > { %1909 = vmatpush1.bf16.msra.mxu0 %v3725_v59  ;;  %1950 = vmatpush1.bf16.msra.mxu1 %v3727_v60 }
 0x1bc   : > { %1910 = vmatprep.subr.bf16.mxu0 %v3731_v61  ;;  %1951 = vmatprep.subr.bf16.mxu1 %v3733_v62 }
 0x1bf   : > { %1911 = vmatpush1.bf16.msra.mxu0 %v3737_v63  ;;  %1952 = vmatpush1.bf16.msra.mxu1 %v4188_v32 }
 0x1c0   : > { %1912 = vmatprep.subr.bf16.mxu0 %v4189_v35  ;;  %1953 = vmatprep.subr.bf16.mxu1 %v3745_v2 }
 0x1c3   : > { %1913 = vmatpush1.bf16.msra.mxu0 %v3749_v4  ;;  %1954 = vmatpush1.bf16.msra.mxu1 %v3751_v7 }
 0x1c4   : > { %1914 = vmatprep.subr.bf16.mxu0 %v3755_v17  ;;  %1955 = vmatprep.subr.bf16.mxu1 %v4190_v27 }
 0x1c5   : > { %v3102_v16 = vpop.eup %3101 }
 0x1c6   : > { %v1774_v29 = vmul.f32 %v3102_v16, %v3100_v41  ;;  %v4218_v41 = vld [vmem:[#allocation45_spill] sm:$0xff]  ;;  %v4219_v16 = vld [vmem:[#allocation46_spill] sm:$0xff] }
 0x1c7   : > { %1915 = vmatpush1.bf16.msra.mxu0 %v3761_v42  ;;  %1956 = vmatpush1.bf16.msra.mxu1 %v3763_v3 }
 0x1c8   : > { %v1777_v23 = vpack.c.bf16 %v1774_v29, %v1774_v29  ;;  %2021 = vmatprep.subr.bf16.mxu0 %v3569_v5  ;;  %2062 = vmatprep.subr.bf16.mxu1 %v3571_v6  ;;  %v4193_v5 = vld [vmem:[#allocation20_spill] sm:$0xff]  ;;  %v4194_v6 = vld [vmem:[#allocation21_spill] sm:$0xff] }
 0x1ca   : > { %2796 = vst [vmem:[%s3557_s14 + $0xc] sm:$0xf] %v1777_v23  ;;  %1933 = vmatmul.mubr.bf16.vlgmr.msra.gmra.mxu0 %v1777_v23  ;;  %1974 = vmatmul.mubr.bf16.vlgmr.msra.gmra.mxu1 %v1777_v23 }
 0x1cb   : > { %2022 = vmatpush1.bf16.msra.mxu0 %v3574_v8  ;;  %2063 = vmatpush1.bf16.msra.mxu1 %v3576_v9  ;;  %v4197_v8 = vld [vmem:[#allocation24_spill] sm:$0xff]  ;;  %v4198_v9 = vld [vmem:[#allocation25_spill] sm:$0xff] }
 0x1cc   : > { %2023 = vmatprep.subr.bf16.mxu0 %v3578_v10  ;;  %2064 = vmatprep.subr.bf16.mxu1 %v4191_v38  ;;  %v4199_v10 = vld [vmem:[#allocation26_spill] sm:$0xff] }
 0x1cd   : > { %2053 = vmatprep.mubr.bf16.mxu0 %v4163_v39  ;;  %2094 = vmatprep.mubr.bf16.mxu1 %v4163_v39  ;;  %v4220_v38 = vld [vmem:[#allocation50_spill] sm:$0xff] }
 0x1cf   : > { %2024 = vmatpush1.bf16.msra.mxu0 %v4192_v28  ;;  %2065 = vmatpush1.bf16.msra.mxu1 %v4193_v5 }
 0x1d0   : > { %2025 = vmatprep.subr.bf16.mxu0 %v4194_v6  ;;  %2066 = vmatprep.subr.bf16.mxu1 %v4195_v24 }
 0x1d3   : > { %2026 = vmatpush1.bf16.msra.mxu0 %v4196_v19  ;;  %2067 = vmatpush1.bf16.msra.mxu1 %v4197_v8  ;;  %v4221_v19 = vld [vmem:[#allocation52_spill] sm:$0xff] }
 0x1d4   : > { %2027 = vmatprep.subr.bf16.mxu0 %v4198_v9  ;;  %2068 = vmatprep.subr.bf16.mxu1 %v4199_v10 }
 0x1d7   : > { %2028 = vmatpush1.bf16.msra.mxu0 %v4200_v1  ;;  %2069 = vmatpush1.bf16.msra.mxu1 %v4201_v13 }
 0x1d8   : > { %2029 = vmatprep.subr.bf16.mxu0 %v4202_v12  ;;  %2070 = vmatprep.subr.bf16.mxu1 %v4203_v30  ;;  %v4222_v30 = vld [vmem:[#allocation53_spill] sm:$0xff] }
 0x1db   : > { %2030 = vmatpush1.bf16.msra.mxu0 %v4204_v40  ;;  %2071 = vmatpush1.bf16.msra.mxu1 %v4205_v11  ;;  %v4223_v11 = vld [vmem:[#allocation51_spill] sm:$0xff] }
 0x1dc   : > { %2031 = vmatprep.subr.bf16.mxu0 %v4206_v15  ;;  %2072 = vmatprep.subr.bf16.mxu1 %v4207_v0 }
 0x1df   : > { %2032 = vmatpush1.bf16.msra.mxu0 %v4208_v33  ;;  %2073 = vmatpush1.bf16.msra.mxu1 %v4209_v20 }
 0x1e0   : > { %2033 = vmatprep.subr.bf16.mxu0 %v4210_v18  ;;  %2074 = vmatprep.subr.bf16.mxu1 %v4211_v26 }
 0x1e3   : > { %2034 = vmatpush1.bf16.msra.mxu0 %v4212_v25  ;;  %2075 = vmatpush1.bf16.msra.mxu1 %v4213_v34 }
 0x1e4   : > { %2035 = vmatprep.subr.bf16.mxu0 %v4214_v14  ;;  %2076 = vmatprep.subr.bf16.mxu1 %v4215_v36 }
 0x1e7   : > { %2036 = vmatpush1.bf16.msra.mxu0 %v4216_v37  ;;  %2077 = vmatpush1.bf16.msra.mxu1 %v4217_v21 }
 0x1e8   : > { %2136 = vmatprep.subr.bf16.mxu0 %v4218_v41  ;;  %2177 = vmatprep.subr.bf16.mxu1 %v4219_v16 }
 0x26a   : > { %v1819_v29 = vpop.f32.mrf.mxu0  ;;  %v1860_v23 = vpop.f32.mrf.mxu1 }
 0x26b   : > { %v1867_v28 = vadd.f32 %v1819_v29, %v4220_v38  ;;  %v1869_v15 = vadd.f32 %v1860_v23, %v4223_v11 }
 0x26c   : > { %v1821_v5 = vpop.f32.mrf.mxu0  ;;  %v1862_v6 = vpop.f32.mrf.mxu1 }
 0x26d   : > { %v2797_v24 = vmul.f32 -1.442695, %v1867_v28  ;;  %v1868_v8 = vadd.f32 %v1821_v5, %v4221_v19  ;;  %v1870_v40 = vadd.f32 %v1862_v6, %v4222_v30  ;;  %v4224_v19 = vld [vmem:[#allocation70_spill] sm:$0xff] }
 0x26e   : > { %v1823_v9 = vpop.f32.mrf.mxu0  ;;  %v1864_v10 = vpop.f32.mrf.mxu1 }
 0x26f   : > { %3103 = vpow2.f32 %v2797_v24  ;;  %v2798_v1 = vmul.f32 -1.442695, %v1868_v8  ;;  %v2799_v0 = vmul.f32 -1.442695, %v1870_v40 }
 0x270   : > { %v1824_v13 = vpop.f32.mrf.mxu0  ;;  %v1865_v12 = vpop.f32.mrf.mxu1 }
 0x271   : > { %3105 = vpow2.f32 %v2798_v1  ;;  %v4225_v13 = vld [vmem:[#allocation72_spill] sm:$0xff] }
 0x272   : > { %3107 = vtanh.f32 %v1869_v15 }
 0x273   : > { %3109 = vpow2.f32 %v2799_v0 }
 0x27c   : > { %v3104_v33 = vpop.eup %3103 }
 0x27d   : > { %v1874_v20 = vadd.f32 1.0, %v3104_v33 }
 0x27e   : > { %v3106_v18 = vpop.eup %3105 }
 0x27f   : > { %3111 = vrcp.f32 %v1874_v20  ;;  %v1880_v29 = vadd.f32 1.0, %v3106_v18  ;;  %v3108_v38 = vpop.eup %3107 }
 0x280   : > { %v3110_v24 = vpop.eup %3109 }
 0x281   : > { %3113 = vrcp.f32 %v1880_v29  ;;  %v1887_v40 = vadd.f32 1.0, %v3110_v24 }
 0x28a   : > { %v1934_v28 = vpop.f32.mrf.mxu0  ;;  %v1975_v5 = vpop.f32.mrf.mxu1 }
 0x28b   : > { %v1982_v8 = vadd.f32 %v1934_v28, %v4224_v19  ;;  %v4227_v19 = vld [vmem:[#allocation71_spill] sm:$0xff] }
 0x28c   : > { %v3112_v9 = vpop.eup %3111  ;;  %v1936_v10 = vpop.f32.mrf.mxu0 }
 0x28d   : > { %v1977_v6 = vpop.f32.mrf.mxu1  ;;  %v1891_v1 = vmul.f32 %v3112_v9, %v3108_v38  ;;  %v2800_v23 = vmul.f32 -1.442695, %v1982_v8  ;;  %v1983_v12 = vadd.f32 %v1936_v10, %v4225_v13  ;;  %v4226_v38 = vld [vmem:[#allocation73_spill] sm:$0xff]  ;;  %v1984_v8 = vadd.f32 %v1975_v5, %v4227_v19 }
 0x28e   : > { %v3114_v30 = vpop.eup %3113  ;;  %v1938_v11 = vpop.f32.mrf.mxu0  ;;  %v1985_v28 = vadd.f32 %v1977_v6, %v4226_v38 }
 0x28f   : > { %v1979_v15 = vpop.f32.mrf.mxu1  ;;  %v1890_v0 = vmul.f32 %v3114_v30, %v3899_v22  ;;  %3115 = vpow2.f32 %v2800_v23  ;;  %v2801_v33 = vmul.f32 -1.442695, %v1983_v12  ;;  %v3221_v11 = vld [vmem:[#allocation12 + $0x40] ss:$16 sps:$4 sm:$0xff]  }
 0x290   : > { %v1939_v20 = vpop.f32.mrf.mxu0  ;;  %v2802_v24 = vmul.f32 -1.442695, %v1985_v28  ;;  %v3222_v15 = vld [vmem:[#allocation12 + $0x48] ss:$16 sps:$4 sm:$0xff]  }
 0x291   : > { %v1980_v18 = vpop.f32.mrf.mxu1  ;;  %v3984_v29 = vadd.f32 %v1891_v1, %v1890_v0  ;;  %3117 = vpow2.f32 %v2801_v33  ;;  %v3223_v0 = vld [vmem:[#allocation12 + $0x24] ss:$16 sps:$4 sm:$0xff]  }
 0x292   : > { %3119 = vrcp.f32 %v1887_v40  ;;  %v4228_v18 = vld [vmem:[#allocation54_spill] sm:$0xff] }
 0x293   : > { %3121 = vtanh.f32 %v3984_v29 }
 0x294   : > { %3123 = vtanh.f32 %v1984_v8 }
 0x295   : > { %3125 = vpow2.f32 %v2802_v24 }
 0x29c   : > { %v3116_v9 = vpop.eup %3115 }
 0x29d   : > { %v1989_v10 = vadd.f32 1.0, %v3116_v9  ;;  %v4231_v9 = vld [vmem:[#allocation55_spill] sm:$0xff] }
 0x29e   : > { %v3118_v22 = vpop.eup %3117 }
 0x29f   : > { %v3120_v23 = vpop.eup %3119  ;;  %3127 = vrcp.f32 %v1989_v10  ;;  %v1995_v13 = vadd.f32 1.0, %v3118_v22 }
 0x2a0   : > { %v3122_v1 = vpop.eup %3121 }
 0x2a1   : > { %3129 = vrcp.f32 %v1995_v13  ;;  %v1894_v12 = vmul.f32 %v3122_v1, %v3120_v23  ;;  %v3124_v5 = vpop.eup %3123 }
 0x2a2   : > { %v3126_v6 = vpop.eup %3125 }
 0x2a3   : > { %v2010_v30 = vpack.c.bf16 %v1894_v12, %v1894_v12 }
 0x2a5   : > { %2803 = vst [vmem:[%s3552_s29 + $0x4] sm:$0xf] %v2010_v30  ;;  %2054 = vmatmul.mubr.bf16.vlgmr.msra.gmra.mxu0 %v2010_v30  ;;  %2095 = vmatmul.mubr.bf16.vlgmr.msra.gmra.mxu1 %v2010_v30 }
 0x2a6   : > { %2137 = vmatpush1.bf16.msra.mxu0 %v3675_v43  ;;  %2178 = vmatpush1.bf16.msra.mxu1 %v3677_v44 }
 0x2a7   : > { %2138 = vmatprep.subr.bf16.mxu0 %v3681_v45  ;;  %2179 = vmatprep.subr.bf16.mxu1 %v3683_v46  ;;  %v2002_v45 = vadd.f32 1.0, %v3126_v6 }
 0x2a8   : > { %2168 = vmatprep.mubr.bf16.mxu0 %v4163_v39  ;;  %2209 = vmatprep.mubr.bf16.mxu1 %v4163_v39 }
 0x2a9   : > { %3131 = vrcp.f32 %v2002_v45 }
 0x2aa   : > { %2139 = vmatpush1.bf16.msra.mxu0 %v3687_v47  ;;  %2180 = vmatpush1.bf16.msra.mxu1 %v3689_v48 }
 0x2ab   : > { %2140 = vmatprep.subr.bf16.mxu0 %v3693_v49  ;;  %2181 = vmatprep.subr.bf16.mxu1 %v3695_v50 }
 0x2ac   : > { %v3128_v43 = vpop.eup %3127 }
 0x2ad   : > { %v2006_v44 = vmul.f32 %v3128_v43, %v3124_v5  ;;  %v4232_v43 = vld [vmem:[#allocation66_spill] sm:$0xff] }
 0x2ae   : > { %v3130_v40 = vpop.eup %3129  ;;  %2141 = vmatpush1.bf16.msra.mxu0 %v3701_v51  ;;  %2182 = vmatpush1.bf16.msra.mxu1 %v3703_v52  ;;  %v3199_v52 = vld [vmem:[#allocation12 + $0xe4] ss:$16 sps:$4 sm:$0xff]  }
 0x2af   : > { %v2005_v46 = vmul.f32 %v3130_v40, %v3919_v31  ;;  %2142 = vmatprep.subr.bf16.mxu0 %v3707_v53  ;;  %2183 = vmatprep.subr.bf16.mxu1 %v3709_v54  ;;  %v3200_v53 = vld [vmem:[#allocation12 + $0xec] ss:$16 sps:$4 sm:$0xff]   ;;  %v3201_v54 = vld [vmem:[#allocation12 + $0xe0] ss:$16 sps:$4 sm:$0xff]  }
 0x2b0   : > { %v3217_v31 = vld [vmem:[#allocation12 + $0x60] ss:$16 sps:$4 sm:$0xff]  }
 0x2b1   : > { %v4005_v47 = vadd.f32 %v2006_v44, %v2005_v46 }
 0x2b2   : > { %2143 = vmatpush1.bf16.msra.mxu0 %v3713_v55  ;;  %2184 = vmatpush1.bf16.msra.mxu1 %v3715_v56  ;;  %v3202_v55 = vld [vmem:[#allocation12 + $0xe8] ss:$16 sps:$4 sm:$0xff]   ;;  %v3203_v56 = vld [vmem:[#allocation12 + $0xc4] ss:$16 sps:$4 sm:$0xff]  }
 0x2b3   : > { %2144 = vmatprep.subr.bf16.mxu0 %v3719_v57  ;;  %2185 = vmatprep.subr.bf16.mxu1 %v3721_v58  ;;  %3133 = vtanh.f32 %v4005_v47  ;;  %v3204_v57 = vld [vmem:[#allocation12 + $0xcc] ss:$16 sps:$4 sm:$0xff]   ;;  %v3206_v58 = vld [vmem:[#allocation12 + $0xc8] ss:$16 sps:$4 sm:$0xff]  }
 0x2b6   : > { %2145 = vmatpush1.bf16.msra.mxu0 %v3725_v59  ;;  %2186 = vmatpush1.bf16.msra.mxu1 %v3727_v60  ;;  %v3132_v48 = vpop.eup %3131  ;;  %v3207_v59 = vld [vmem:[#allocation12 + $0xa4] ss:$16 sps:$4 sm:$0xff]   ;;  %v3208_v60 = vld [vmem:[#allocation12 + $0xac] ss:$16 sps:$4 sm:$0xff]  }
 0x2b7   : > { %2146 = vmatprep.subr.bf16.mxu0 %v3731_v61  ;;  %2187 = vmatprep.subr.bf16.mxu1 %v3733_v62  ;;  %v3209_v61 = vld [vmem:[#allocation12 + $0xa0] ss:$16 sps:$4 sm:$0xff]   ;;  %v3210_v62 = vld [vmem:[#allocation12 + $0xa8] ss:$16 sps:$4 sm:$0xff]  }
 0x2ba   : > { %2147 = vmatpush1.bf16.msra.mxu0 %v3737_v63  ;;  %2188 = vmatpush1.bf16.msra.mxu1 %v4188_v32  ;;  %v3211_v63 = vld [vmem:[#allocation12 + $0x84] ss:$16 sps:$4 sm:$0xff]   ;;  %v3218_v32 = vld [vmem:[#allocation12 + $0x68] ss:$16 sps:$4 sm:$0xff]  }
 0x2bb   : > { %2148 = vmatprep.subr.bf16.mxu0 %v4189_v35  ;;  %2189 = vmatprep.subr.bf16.mxu1 %v3745_v2  ;;  %v3212_v2 = vld [vmem:[#allocation12 + $0x8c] ss:$16 sps:$4 sm:$0xff]   ;;  %v3219_v35 = vld [vmem:[#allocation12 + $0x44] ss:$16 sps:$4 sm:$0xff]  }
 0x2be   : > { %2149 = vmatpush1.bf16.msra.mxu0 %v3749_v4  ;;  %2190 = vmatpush1.bf16.msra.mxu1 %v3751_v7  ;;  %v3213_v4 = vld [vmem:[#allocation12 + $0x80] ss:$16 sps:$4 sm:$0xff]   ;;  %v3214_v7 = vld [vmem:[#allocation12 + $0x88] ss:$16 sps:$4 sm:$0xff]  }
 0x2bf   : > { %2150 = vmatprep.subr.bf16.mxu0 %v3755_v17  ;;  %2191 = vmatprep.subr.bf16.mxu1 %v4190_v27  ;;  %v3215_v17 = vld [vmem:[#allocation12 + $0x64] ss:$16 sps:$4 sm:$0xff]   ;;  %v3220_v27 = vld [vmem:[#allocation12 + $0x4c] ss:$16 sps:$4 sm:$0xff]  }
 0x2c0   : > { %v3134_v49 = vpop.eup %3133 }
 0x2c1   : > { %v2009_v50 = vmul.f32 %v3134_v49, %v3132_v48 }
 0x2c2   : > { %2151 = vmatpush1.bf16.msra.mxu0 %v3761_v42  ;;  %2192 = vmatpush1.bf16.msra.mxu1 %v3763_v3  ;;  %v3205_v3 = vld [vmem:[#allocation12 + $0xc0] ss:$16 sps:$4 sm:$0xff]   ;;  %v3216_v42 = vld [vmem:[#allocation12 + $0x6c] ss:$16 sps:$4 sm:$0xff]  }
 0x2c3   : > { %v2013_v51 = vpack.c.bf16 %v2009_v50, %v2009_v50  ;;  %2257 = vmatprep.subr.bf16.mxu0 %v3199_v52  ;;  %2298 = vmatprep.subr.bf16.mxu1 %v3200_v53  ;;  %v4233_v50 = vld [vmem:[#allocation68_spill] sm:$0xff] }
 0x2c5   : > { %2804 = vst [vmem:[%s3557_s14 + $0x8] sm:$0xf] %v2013_v51  ;;  %2169 = vmatmul.mubr.bf16.vlgmr.msra.gmra.mxu0 %v2013_v51  ;;  %2210 = vmatmul.mubr.bf16.vlgmr.msra.gmra.mxu1 %v2013_v51 }
 0x2c6   : > { %2258 = vmatpush1.bf16.msra.mxu0 %v3201_v54  ;;  %2299 = vmatpush1.bf16.msra.mxu1 %v3202_v55 }
 0x2c7   : > { %2259 = vmatprep.subr.bf16.mxu0 %v3203_v56  ;;  %2300 = vmatprep.subr.bf16.mxu1 %v3204_v57 }
 0x2c8   : > { %2289 = vmatprep.mubr.bf16.mxu0 %v4163_v39  ;;  %2330 = vmatprep.mubr.bf16.mxu1 %v4163_v39 }
 0x2ca   : > { %2260 = vmatpush1.bf16.msra.mxu0 %v3205_v3  ;;  %2301 = vmatpush1.bf16.msra.mxu1 %v3206_v58 }
 0x2cb   : > { %2261 = vmatprep.subr.bf16.mxu0 %v3207_v59  ;;  %2302 = vmatprep.subr.bf16.mxu1 %v3208_v60  ;;  %v4234_v60 = vld [vmem:[#allocation69_spill] sm:$0xff] }
 0x2ce   : > { %2262 = vmatpush1.bf16.msra.mxu0 %v3209_v61  ;;  %2303 = vmatpush1.bf16.msra.mxu1 %v3210_v62  ;;  %v4235_v62 = vld [vmem:[#allocation67_spill] sm:$0xff] }
 0x2cf   : > { %2263 = vmatprep.subr.bf16.mxu0 %v3211_v63  ;;  %2304 = vmatprep.subr.bf16.mxu1 %v3212_v2 }
 0x2d2   : > { %2264 = vmatpush1.bf16.msra.mxu0 %v3213_v4  ;;  %2305 = vmatpush1.bf16.msra.mxu1 %v3214_v7 }
 0x2d3   : > { %2265 = vmatprep.subr.bf16.mxu0 %v3215_v17  ;;  %2306 = vmatprep.subr.bf16.mxu1 %v3216_v42 }
 0x2d6   : > { %2266 = vmatpush1.bf16.msra.mxu0 %v3217_v31  ;;  %2307 = vmatpush1.bf16.msra.mxu1 %v3218_v32 }
 0x2d7   : > { %2267 = vmatprep.subr.bf16.mxu0 %v3219_v35  ;;  %2308 = vmatprep.subr.bf16.mxu1 %v3220_v27  ;;  %v3224_v27 = vld [vmem:[#allocation13 + $0xe0] ss:$16 sps:$4 sm:$0xff]  }
 0x2da   : > { %2268 = vmatpush1.bf16.msra.mxu0 %v3221_v11  ;;  %2309 = vmatpush1.bf16.msra.mxu1 %v3222_v15  ;;  %v3225_v11 = vld [vmem:[#allocation13 + $0xe8] ss:$16 sps:$4 sm:$0xff]   ;;  %v3226_v15 = vld [vmem:[#allocation13 + $0xc4] ss:$16 sps:$4 sm:$0xff]  }
 0x2db   : > { %2269 = vmatprep.subr.bf16.mxu0 %v3223_v0  ;;  %2310 = vmatprep.subr.bf16.mxu1 %v4211_v26  ;;  %v3227_v0 = vld [vmem:[#allocation13 + $0xcc] ss:$16 sps:$4 sm:$0xff]  }
 0x2de   : > { %2270 = vmatpush1.bf16.msra.mxu0 %v4212_v25  ;;  %2311 = vmatpush1.bf16.msra.mxu1 %v4213_v34  ;;  %v4229_v34 = vld [vmem:[#allocation56_spill] sm:$0xff] }
 0x2df   : > { %2271 = vmatprep.subr.bf16.mxu0 %v4214_v14  ;;  %2312 = vmatprep.subr.bf16.mxu1 %v4215_v36 }
 0x2e2   : > { %2272 = vmatpush1.bf16.msra.mxu0 %v4216_v37  ;;  %2313 = vmatpush1.bf16.msra.mxu1 %v4217_v21  ;;  %v4230_v21 = vld [vmem:[#allocation57_spill] sm:$0xff] }
 0x2e3   : > { %2371 = vmatprep.subr.bf16.mxu0 %v4218_v41  ;;  %2412 = vmatprep.subr.bf16.mxu1 %v4219_v16 }
 0x365   : > { %v2055_v33 = vpop.f32.mrf.mxu0  ;;  %v2096_v20 = vpop.f32.mrf.mxu1 }
 0x366   : > { %v2103_v26 = vadd.f32 %v2055_v33, %v4228_v18  ;;  %v2105_v16 = vadd.f32 %v2096_v20, %v4231_v9  ;;  %v3228_v20 = vld [vmem:[#allocation13 + $0xc0] ss:$16 sps:$4 sm:$0xff]   ;;  %v3229_v18 = vld [vmem:[#allocation13 + $0xc8] ss:$16 sps:$4 sm:$0xff]  }
 0x367   : > { %v2057_v38 = vpop.f32.mrf.mxu0  ;;  %v2098_v25 = vpop.f32.mrf.mxu1  ;;  %v3237_v9 = vld [vmem:[#allocation13 + $0x88] ss:$16 sps:$4 sm:$0xff]  }
 0x368   : > { %v2805_v28 = vmul.f32 -1.442695, %v2103_v26  ;;  %v2104_v19 = vadd.f32 %v2057_v38, %v4229_v34  ;;  %v2106_v41 = vadd.f32 %v2098_v25, %v4230_v21  ;;  %v3230_v38 = vld [vmem:[#allocation13 + $0xa4] ss:$16 sps:$4 sm:$0xff]   ;;  %v3231_v25 = vld [vmem:[#allocation13 + $0xac] ss:$16 sps:$4 sm:$0xff]  }
 0x369   : > { %v2059_v14 = vpop.f32.mrf.mxu0  ;;  %v2100_v8 = vpop.f32.mrf.mxu1 }
 0x36a   : > { %3135 = vpow2.f32 %v2805_v28  ;;  %v2806_v36 = vmul.f32 -1.442695, %v2104_v19  ;;  %v2807_v10 = vmul.f32 -1.442695, %v2106_v41  ;;  %v3232_v8 = vld [vmem:[#allocation13 + $0xa0] ss:$16 sps:$4 sm:$0xff]  }
 0x36b   : > { %v2060_v37 = vpop.f32.mrf.mxu0  ;;  %v2101_v24 = vpop.f32.mrf.mxu1  ;;  %v3236_v41 = vld [vmem:[#allocation13 + $0x80] ss:$16 sps:$4 sm:$0xff]  }
 0x36c   : > { %3137 = vpow2.f32 %v2806_v36  ;;  %v3233_v36 = vld [vmem:[#allocation13 + $0xa8] ss:$16 sps:$4 sm:$0xff]   ;;  %v3234_v37 = vld [vmem:[#allocation13 + $0x84] ss:$16 sps:$4 sm:$0xff]   ;;  %v3235_v24 = vld [vmem:[#allocation13 + $0x8c] ss:$16 sps:$4 sm:$0xff]  }
 0x36d   : > { %3139 = vtanh.f32 %v2105_v16  ;;  %v3238_v16 = vld [vmem:[#allocation13 + $0x64] ss:$16 sps:$4 sm:$0xff]  }
 0x36e   : > { %3141 = vpow2.f32 %v2807_v10  ;;  %v3239_v10 = vld [vmem:[#allocation13 + $0x6c] ss:$16 sps:$4 sm:$0xff]  }
 0x377   : > { %v3136_v22 = vpop.eup %3135 }
 0x378   : > { %v2110_v23 = vadd.f32 1.0, %v3136_v22  ;;  %v3240_v22 = vld [vmem:[#allocation13 + $0x60] ss:$16 sps:$4 sm:$0xff]  }
 0x379   : > { %v3138_v13 = vpop.eup %3137 }
 0x37a   : > { %3143 = vrcp.f32 %v2110_v23  ;;  %v2116_v1 = vadd.f32 1.0, %v3138_v13  ;;  %v3140_v12 = vpop.eup %3139  ;;  %v3242_v23 = vld [vmem:[#allocation13 + $0x44] ss:$16 sps:$4 sm:$0xff]   ;;  %v3243_v13 = vld [vmem:[#allocation13 + $0x4c] ss:$16 sps:$4 sm:$0xff]  }
 0x37b   : > { %v3142_v6 = vpop.eup %3141 }
 0x37c   : > { %3145 = vrcp.f32 %v2116_v1  ;;  %v2123_v53 = vadd.f32 1.0, %v3142_v6  ;;  %v3244_v1 = vld [vmem:[#allocation13 + $0x40] ss:$16 sps:$4 sm:$0xff]  }
 0x37d   : > { %v3248_v6 = vld [vmem:[#allocation13 + $0x20] ss:$16 sps:$4 sm:$0xff]  }
 0x385   : > { %v2170_v30 = vpop.f32.mrf.mxu0  ;;  %v2211_v5 = vpop.f32.mrf.mxu1 }
 0x386   : > { %v2218_v44 = vadd.f32 %v2170_v30, %v4232_v43  ;;  %v2220_v63 = vadd.f32 %v2211_v5, %v4235_v62  ;;  %v3246_v30 = vld [vmem:[#allocation13 + $0x24] ss:$16 sps:$4 sm:$0xff]   ;;  %v3247_v5 = vld [vmem:[#allocation13 + $0x2c] ss:$16 sps:$4 sm:$0xff]   ;;  %v3249_v43 = vld [vmem:[#allocation13 + $0x28] ss:$16 sps:$4 sm:$0xff]  }
 0x387   : > { %v3144_v40 = vpop.eup %3143  ;;  %v2172_v45 = vpop.f32.mrf.mxu0 }
 0x388   : > { %v2213_v46 = vpop.f32.mrf.mxu1  ;;  %v2127_v48 = vmul.f32 %v3144_v40, %v3140_v12  ;;  %v2808_v49 = vmul.f32 -1.442695, %v2218_v44  ;;  %v2219_v51 = vadd.f32 %v2172_v45, %v4233_v50  ;;  %v3245_v12 = vld [vmem:[#allocation13 + $0x48] ss:$16 sps:$4 sm:$0xff]   ;;  %v3250_v40 = vld [vmem:[#allocation13 + $0x4] ss:$16 sps:$4 sm:$0xff]  }
 0x389   : > { %v3146_v52 = vpop.eup %3145  ;;  %v2174_v54 = vpop.f32.mrf.mxu0  ;;  %v2221_v61 = vadd.f32 %v2213_v46, %v4234_v60  ;;  %v3251_v45 = vld [vmem:[#allocation13 + $0xc] ss:$16 sps:$4 sm:$0xff]   ;;  %v3253_v50 = vld [vmem:[#allocation13 + $0x8] ss:$16 sps:$4 sm:$0xff]  }
 0x38a   : > { %v2215_v55 = vpop.f32.mrf.mxu1  ;;  %v2126_v56 = vmul.f32 %v3146_v52, %v3984_v29  ;;  %3147 = vpow2.f32 %v2808_v49  ;;  %v2809_v57 = vmul.f32 -1.442695, %v2219_v51  ;;  %v3252_v49 = vld [vmem:[#allocation13] ss:$16 sps:$4 sm:$0xff]  }
 0x38b   : > { %v2175_v3 = vpop.f32.mrf.mxu0  ;;  %v2810_v2 = vmul.f32 -1.442695, %v2221_v61  ;;  %v4236_v54 = vld [vmem:[#allocation58_spill] sm:$0xff] }
 0x38c   : > { %v2216_v58 = vpop.f32.mrf.mxu1  ;;  %v4045_v59 = vadd.f32 %v2127_v48, %v2126_v56  ;;  %3149 = vpow2.f32 %v2809_v57 }
 0x38d   : > { %3151 = vrcp.f32 %v2123_v53  ;;  %v4237_v58 = vld [vmem:[#allocation60_spill] sm:$0xff] }
 0x38e   : > { %3153 = vtanh.f32 %v4045_v59 }
 0x38f   : > { %3155 = vtanh.f32 %v2220_v63 }
 0x390   : > { %3157 = vpow2.f32 %v2810_v2 }
 0x397   : > { %v3148_v4 = vpop.eup %3147 }
 0x398   : > { %v2225_v7 = vadd.f32 1.0, %v3148_v4 }
 0x399   : > { %v3150_v29 = vpop.eup %3149 }
 0x39a   : > { %v3152_v17 = vpop.eup %3151  ;;  %3159 = vrcp.f32 %v2225_v7  ;;  %v2231_v42 = vadd.f32 1.0, %v3150_v29  ;;  %v4238_v7 = vld [vmem:[#allocation61_spill] sm:$0xff] }
 0x39b   : > { %v3154_v31 = vpop.eup %3153 }
 0x39c   : > { %3161 = vrcp.f32 %v2231_v42  ;;  %v2130_v32 = vmul.f32 %v3154_v31, %v3152_v17  ;;  %v3156_v33 = vpop.eup %3155  ;;  %v4239_v17 = vld [vmem:[#allocation59_spill] sm:$0xff] }
 0x39d   : > { %v3158_v26 = vpop.eup %3157 }
 0x39e   : > { %v2246_v35 = vpack.c.bf16 %v2130_v32, %v2130_v32  ;;  %v2238_v14 = vadd.f32 1.0, %v3158_v26 }
 0x3a0   : > { %2811 = vst [vmem:[%s3552_s29 + $0x8] sm:$0xf] %v2246_v35  ;;  %2290 = vmatmul.mubr.bf16.vlgmr.msra.gmra.mxu0 %v2246_v35  ;;  %2331 = vmatmul.mubr.bf16.vlgmr.msra.gmra.mxu1 %v2246_v35  ;;  %3163 = vrcp.f32 %v2238_v14  ;;  %v4241_v14 = vld [vmem:[#allocation64_spill] sm:$0xff] }
 0x3a1   : > { %2372 = vmatpush1.bf16.msra.mxu0 %v3224_v27  ;;  %2413 = vmatpush1.bf16.msra.mxu1 %v3225_v11 }
 0x3a2   : > { %2373 = vmatprep.subr.bf16.mxu0 %v3226_v15  ;;  %2414 = vmatprep.subr.bf16.mxu1 %v3227_v0 }
 0x3a3   : > { %2403 = vmatprep.mubr.bf16.mxu0 %v4163_v39  ;;  %2444 = vmatprep.mubr.bf16.mxu1 %v4163_v39 }
 0x3a5   : > { %2374 = vmatpush1.bf16.msra.mxu0 %v3228_v20  ;;  %2415 = vmatpush1.bf16.msra.mxu1 %v3229_v18  ;;  %v4240_v18 = vld [vmem:[#allocation62_spill] sm:$0xff] }
 0x3a6   : > { %2375 = vmatprep.subr.bf16.mxu0 %v3230_v38  ;;  %2416 = vmatprep.subr.bf16.mxu1 %v3231_v25 }
 0x3a7   : > { %v3160_v28 = vpop.eup %3159 }
 0x3a8   : > { %v2242_v34 = vmul.f32 %v3160_v28, %v3156_v33 }
 0x3a9   : > { %v3162_v19 = vpop.eup %3161  ;;  %2376 = vmatpush1.bf16.msra.mxu0 %v3232_v8  ;;  %2417 = vmatpush1.bf16.msra.mxu1 %v3233_v36 }
 0x3aa   : > { %v2241_v39 = vmul.f32 %v3162_v19, %v4005_v47  ;;  %2377 = vmatprep.subr.bf16.mxu0 %v3234_v37  ;;  %2418 = vmatprep.subr.bf16.mxu1 %v3235_v24  ;;  %v3241_v47 = vld [vmem:[#allocation13 + $0x68] ss:$16 sps:$4 sm:$0xff]  }
 0x3ac   : > { %v4054_v21 = vadd.f32 %v2242_v34, %v2241_v39 }
 0x3ad   : > { %2378 = vmatpush1.bf16.msra.mxu0 %v3236_v41  ;;  %2419 = vmatpush1.bf16.msra.mxu1 %v3237_v9  ;;  %v3164_v44 = vpop.eup %3163 }
 0x3ae   : > { %2379 = vmatprep.subr.bf16.mxu0 %v3238_v16  ;;  %2420 = vmatprep.subr.bf16.mxu1 %v3239_v10  ;;  %3165 = vtanh.f32 %v4054_v21 }
 0x3b1   : > { %2380 = vmatpush1.bf16.msra.mxu0 %v3240_v22  ;;  %2421 = vmatpush1.bf16.msra.mxu1 %v3241_v47  ;;  %v4242_v47 = vld [vmem:[#allocation65_spill] sm:$0xff] }
 0x3b2   : > { %2381 = vmatprep.subr.bf16.mxu0 %v3242_v23  ;;  %2422 = vmatprep.subr.bf16.mxu1 %v3243_v13  ;;  %v4243_v13 = vld [vmem:[#allocation63_spill] sm:$0xff] }
 0x3b5   : > { %2382 = vmatpush1.bf16.msra.mxu0 %v3244_v1  ;;  %2423 = vmatpush1.bf16.msra.mxu1 %v3245_v12 }
 0x3b6   : > { %2383 = vmatprep.subr.bf16.mxu0 %v3246_v30  ;;  %2424 = vmatprep.subr.bf16.mxu1 %v3247_v5 }
 0x3b9   : > { %2384 = vmatpush1.bf16.msra.mxu0 %v3248_v6  ;;  %2425 = vmatpush1.bf16.msra.mxu1 %v3249_v43 }
 0x3ba   : > { %2385 = vmatprep.subr.bf16.mxu0 %v3250_v40  ;;  %2426 = vmatprep.subr.bf16.mxu1 %v3251_v45 }
 0x3bb   : > { %v3166_v46 = vpop.eup %3165 }
 0x3bc   : > { %v2245_v48 = vmul.f32 %v3166_v46, %v3164_v44 }
 0x3bd   : > { %2386 = vmatpush1.bf16.msra.mxu0 %v3252_v49  ;;  %2427 = vmatpush1.bf16.msra.mxu1 %v3253_v50 }
 0x3be   : > { %v2249_v51 = vpack.c.bf16 %v2245_v48, %v2245_v48 }
 0x3c0   : > { %2812 = vst [vmem:[%s3557_s14 + $0x4] sm:$0xf] %v2249_v51  ;;  %2404 = vmatmul.mubr.bf16.vlgmr.msra.gmra.mxu0 %v2249_v51  ;;  %2445 = vmatmul.mubr.bf16.vlgmr.msra.gmra.mxu1 %v2249_v51 }
 0x460   : > { %v2291_v52 = vpop.f32.mrf.mxu0  ;;  %v2332_v53 = vpop.f32.mrf.mxu1 }
 0x461   : > { %v2339_v55 = vadd.f32 %v2291_v52, %v4236_v54  ;;  %v2341_v42 = vadd.f32 %v2332_v53, %v4239_v17 }
 0x462   : > { %v2293_v56 = vpop.f32.mrf.mxu0  ;;  %v2334_v57 = vpop.f32.mrf.mxu1 }
 0x463   : > { %v2813_v3 = vmul.f32 -1.442695, %v2339_v55  ;;  %v2340_v60 = vadd.f32 %v2293_v56, %v4237_v58  ;;  %v2342_v29 = vadd.f32 %v2334_v57, %v4238_v7 }
 0x464   : > { %v2295_v61 = vpop.f32.mrf.mxu0  ;;  %v2336_v62 = vpop.f32.mrf.mxu1 }
 0x465   : > { %3167 = vpow2.f32 %v2813_v3  ;;  %v2814_v63 = vmul.f32 -1.442695, %v2340_v60  ;;  %v2815_v31 = vmul.f32 -1.442695, %v2342_v29 }
 0x466   : > { %v2296_v2 = vpop.f32.mrf.mxu0  ;;  %v2337_v4 = vpop.f32.mrf.mxu1 }
 0x467   : > { %3169 = vpow2.f32 %v2814_v63 }
 0x468   : > { %3171 = vtanh.f32 %v2341_v42 }
 0x469   : > { %3173 = vpow2.f32 %v2815_v31 }
 0x472   : > { %v3168_v32 = vpop.eup %3167 }
 0x473   : > { %v2346_v35 = vadd.f32 1.0, %v3168_v32 }
 0x474   : > { %v3170_v27 = vpop.eup %3169 }
 0x475   : > { %3175 = vrcp.f32 %v2346_v35  ;;  %v2352_v11 = vadd.f32 1.0, %v3170_v27  ;;  %v3172_v15 = vpop.eup %3171 }
 0x476   : > { %v3174_v20 = vpop.eup %3173 }
 0x477   : > { %3177 = vrcp.f32 %v2352_v11  ;;  %v2359_v39 = vadd.f32 1.0, %v3174_v20 }
 0x480   : > { %v2405_v0 = vpop.f32.mrf.mxu0  ;;  %v2446_v33 = vpop.f32.mrf.mxu1 }
 0x481   : > { %v2453_v26 = vadd.f32 %v2405_v0, %v4240_v18  ;;  %v2455_v1 = vadd.f32 %v2446_v33, %v4243_v13 }
 0x482   : > { %v3176_v38 = vpop.eup %3175  ;;  %v2407_v25 = vpop.f32.mrf.mxu0 }
 0x483   : > { %v2448_v28 = vpop.f32.mrf.mxu1  ;;  %v2363_v34 = vmul.f32 %v3176_v38, %v3172_v15  ;;  %v2816_v19 = vmul.f32 -1.442695, %v2453_v26  ;;  %v2454_v8 = vadd.f32 %v2407_v25, %v4241_v14 }
 0x484   : > { %v3178_v36 = vpop.eup %3177  ;;  %v2409_v37 = vpop.f32.mrf.mxu0  ;;  %v2456_v23 = vadd.f32 %v2448_v28, %v4242_v47 }
 0x485   : > { %v2450_v24 = vpop.f32.mrf.mxu1  ;;  %v2362_v41 = vmul.f32 %v3178_v36, %v4045_v59  ;;  %3179 = vpow2.f32 %v2816_v19  ;;  %v2817_v9 = vmul.f32 -1.442695, %v2454_v8 }
 0x486   : > { %v2410_v16 = vpop.f32.mrf.mxu0  ;;  %v2818_v12 = vmul.f32 -1.442695, %v2456_v23 }
 0x487   : > { %v2451_v10 = vpop.f32.mrf.mxu1  ;;  %v2364_v22 = vadd.f32 %v2363_v34, %v2362_v41  ;;  %3181 = vpow2.f32 %v2817_v9 }
 0x488   : > { %3183 = vrcp.f32 %v2359_v39 }
 0x489   : > { %3185 = vtanh.f32 %v2364_v22  ;;  %2487 = vst [vmem:[#allocation3] sm:$0xff] %v2364_v22 }
 0x48a   : > { %3187 = vtanh.f32 %v2455_v1 }
 0x48b   : > { %3189 = vpow2.f32 %v2818_v12 }
 0x492   : > { %v3180_v30 = vpop.eup %3179 }
 0x493   : > { %v2460_v5 = vadd.f32 1.0, %v3180_v30 }
 0x494   : > { %v3182_v6 = vpop.eup %3181 }
 0x495   : > { %v3184_v59 = vpop.eup %3183  ;;  %3191 = vrcp.f32 %v2460_v5  ;;  %v2466_v43 = vadd.f32 1.0, %v3182_v6 }
 0x496   : > { %v3186_v44 = vpop.eup %3185 }
 0x497   : > { %v2366_v40 = vmul.f32 %v3186_v44, %v3184_v59  ;;  %3193 = vrcp.f32 %v2466_v43  ;;  %v3188_v46 = vpop.eup %3187 }
 0x498   : > { %v3190_v48 = vpop.eup %3189 }
 0x499   : > { %v2481_v45 = vpack.c.bf16 %v2366_v40, %v2366_v40  ;;  %2486 = vst [vmem:[#allocation2] sm:$0xff] %v2366_v40  ;;  %v2473_v52 = vadd.f32 1.0, %v3190_v48 }
 0x49b   : > { %2819 = vst [vmem:[%s3552_s29 + $0xc] sm:$0xf] %v2481_v45  ;;  %3195 = vrcp.f32 %v2473_v52 }
 0x4a2   : > { %v3192_v49 = vpop.eup %3191 }
 0x4a3   : > { %v2477_v50 = vmul.f32 %v3192_v49, %v3188_v46 }
 0x4a4   : > { %v3194_v51 = vpop.eup %3193 }
 0x4a5   : > { %v2476_v53 = vmul.f32 %v3194_v51, %v4054_v21 }
 0x4a7   : > { %v2478_v54 = vadd.f32 %v2477_v50, %v2476_v53 }
 0x4a8   : > { %v3196_v55 = vpop.eup %3195 }
 0x4a9   : > { %3197 = vtanh.f32 %v2478_v54  ;;  %2489 = vst [vmem:[#allocation5] sm:$0xff] %v2478_v54 }
 0x4b6   : > { %v3198_v56 = vpop.eup %3197 }
 0x4b7   : > { %v2480_v57 = vmul.f32 %v3198_v56, %v3196_v55 }
 0x4b9   : > { %v2484_v3 = vpack.c.bf16 %v2480_v57, %v2480_v57  ;;  %2488 = vst [vmem:[#allocation4] sm:$0xff] %v2480_v57 }
 0x4bb   : > { %2485 = vst [vmem:[%s3557_s14] sm:$0xf] %v2484_v3 }
 0x4bc PF: > { %s23_s30 = sadd.s32 1, %s3376_s30  }
 0x4bd   : > { %p20_p2 = scmp.ge.s32.totalorder %s23_s30, 4  }
 0x4bf   :  { %22 = sbr.rel (!%p20_p2) target bundleno = 3 (0x3), region = 130 }
 0x4c4   :  { %2532 = vsyncpa [#allocation9], 1 }
 0x4c5   :  { %2534 = vsyncpa [#allocation9 + $0x1], 1 }
 0x4c6   :  { %2535 = vsyncpa [#allocation11], 1 }
 0x4c7   :  { %2536 = vsyncpa [#allocation14], 1 }

// kernel: bilstm_forward.4
= control target key start
LH: loop header
LB: loop body
LE: loop exit
PB: predicated region body
PF: predicated region fallthrough
CT: control target
= control target key end

     0   :  { %15 = vsyncpa [#allocation9], 0  ;;  %s5218_s0 = inlined_call_operand.vmem [shape: bf16[8,8,128], index: 0, kind: input, shape index: {}, may-alias: {0,2}]   ;;  %s5219_s1 = inlined_call_operand.vmem [shape: bf16[8,8,128], index: 1, kind: input, shape index: {}, may-alias: {1,3}]   ;;  %s5220_s2 = inlined_call_operand.vmem [shape: bf16[8,8,128], index: 2, kind: input, shape index: {}, may-alias: {0,2}]   ;;  %s5221_s3 = inlined_call_operand.vmem [shape: bf16[8,8,128], index: 3, kind: input, shape index: {}, may-alias: {1,3}]   ;;  %s5222_s4 = inlined_call_operand.vmem [shape: bf16[256,512], index: 4, kind: input, shape index: {}]   ;;  %s5223_s5 = inlined_call_operand.vmem [shape: bf16[256,512], index: 5, kind: input, shape index: {}]   ;;  %s5224_s6 = inlined_call_operand.hbm [shape: bf16[128,512], index: 6, kind: input, shape index: {}]   ;;  %s5225_s7 = inlined_call_operand.hbm [shape: bf16[128,512], index: 7, kind: input, shape index: {}]   ;;  %s5226_s8 = inlined_call_operand.vmem [shape: f32[1,512], index: 8, kind: input, shape index: {}]   ;;  %s5227_s9 = inlined_call_operand.vmem [shape: f32[1,512], index: 9, kind: input, shape index: {}]   ;;  %s5228_s10 = inlined_call_operand.vmem [shape: f32[8,256], index: 10, kind: output, shape index: {}]  }
   0x1   :  { %16 = vsyncpa [#allocation11], 0  ;;  %s4143_s13 = smov 0  }
   0x2 LB: > { %s4149_s14 = sadd.s32 4294967295, %s4079_s13   ;;  %p3249_p0 = scmp.ge.s32.totalorder %s4079_s13, 1  ;;  %s4079_s13 = sphi %s4143_s13, %s22_s13  }
   0x3   : > { %p282_p1 = scmp.lt.s32.totalorder %s4079_s13, 3  ;;  %s4081_s15 = smov [#allocation8]  }
   0x4   : > { %s300_s16 = sshll.u32 %s4081_s15, 4  ;;  %p3506_p4 = scmp.eq.s32.totalorder %s4149_s14, 0  ;;  %s301_s16 = int_to_ptr.vmem [resolvable:$true] %s300_s16 }
   0x5   : > { %p4154_p3 = pnand %p3249_p0, %p282_p1  ;;  %s4082_s18 = smov [#allocation10]  }
   0x6   : > { %s313_s19 = sshll.u32 %s4082_s18, 4  ;;  %s4024_s21 = scalar_lea.vmem %s301_s16, 4096  ;;  %s314_s19 = int_to_ptr.vmem [resolvable:$true] %s313_s19 }
   0x7   : > { %p3499_p5 = pneg %p4154_p3  ;;  %p4025_p8 = scmp.ne.s32.totalorder %s301_s16, %s4024_s21 }
   0x8   : > { %p4032_p11 = scmp.lt.s32.totalorder %s301_s16, %s301_s16  ;;  %p4033_p12 = scmp.lt.s32.totalorder %s4024_s21, %s4024_s21 }
   0x9   : > { %p4163_p6 = pnand %p3506_p4, %p3499_p5 }
   0xa   : > { %p4034_p13 = por %p4033_p12, %p4032_p11 }
   0xb   : > { %p4015_p7 = pneg %p4163_p6 }
   0xd   : > { %p4027_p9 = pnand %p4025_p8, %p4015_p7 }
   0xf   : > { %p4028_p10 = pneg %p4027_p9 }
  0x11   : > { %p4035_p0 = pnand %p4034_p13, %p4028_p10 }
  0x13   : > { %4038 = shalt.err (!%p4035_p0)
}
  0x14   : > { %s4083_s22 = smov 256   ;;  %s4084_s23 = smov 16  }
  0x15   : > { %3502 = dma.hbm_to_vmem [thread:$0]  (!%p4163_p6), %s5224_s6, 4096, %s301_s16, [#allocation9], %s4083_s22, %s4083_s22, %s4084_s23  }
  0x16   : > { %s4050_s26 = scalar_lea.vmem %s314_s19, 4096  ;;  %p4058_p9 = scmp.lt.s32.totalorder %s314_s19, %s314_s19 }
  0x17   : > { %p4051_p1 = scmp.ne.s32.totalorder %s314_s19, %s4050_s26  ;;  %p4059_p2 = scmp.lt.s32.totalorder %s4050_s26, %s4050_s26 }
  0x19   : > { %p4053_p5 = pnand %p4051_p1, %p4015_p7  ;;  %p4060_p11 = por %p4059_p2, %p4058_p9 }
  0x1b   : > { %p4054_p8 = pneg %p4053_p5 }
  0x1d   : > { %p4061_p10 = pnand %p4060_p11, %p4054_p8 }
  0x1f   : > { %4064 = shalt.err (!%p4061_p10)
}
  0x20   : > { %3505 = dma.hbm_to_vmem [thread:$0]  (!%p4163_p6), %s5225_s7, 4096, %s314_s19, [#allocation11], %s4083_s22, %s4083_s22, %s4084_s23  }
  0x21   : > { %375 = sbr.rel (%p4154_p3) target bundleno = 1257 (0x4e9), region = 60 }
  0x26   : > { %4070 = dma.done.wait (%p3506_p4), [#allocation9], 4096  }
  0x27   : > { %4072 = vsyncadd (%p3506_p4), [#allocation9], 4294963200 }
  0x28   : > { %4074 = dma.done.wait (%p3506_p4), [#allocation11], 4096  }
  0x29   : > { %4076 = vsyncadd (%p3506_p4), [#allocation11], 4294963200  ;;  %s3256_s29 = sshll.u32 %s4149_s14, 2  ;;  %s441_s30 = ssub.s32 1, %s4149_s14 }
  0x2a   : > { %p430_p2 = scmp.lt.s32.totalorder %s3256_s29, 7  ;;  %s3260_s11 = sshll.u32 %s441_s30, 2 }
  0x2b   : > { %p443_p6 = scmp.lt.s32.totalorder %s3260_s11, 7  ;;  %p5295_p3 = scmp.ne.s32.totalorder %s4149_s14, 0 }
  0x2c   : > { %s5426_s29 = smov (!%p430_p2, %s3256_s29), 7 }
  0x2d   : > { %s5428_s11 = smov (!%p443_p6, %s3260_s11), 7  ;;  %s3257_s12 = sshll.u32 %s5426_s29, 2 }
  0x2e   : > { %s4200_s17 = scalar_lea.vmem %s5218_s0, %s3257_s12  ;;  %s4205_s20 = scalar_lea.vmem %s5219_s1, %s3257_s12 }
  0x2f   : > { %s3261_s21 = sshll.u32 %s5428_s11, 2  ;;  %461 = sbr.rel (%p5295_p3) target bundleno = 56 (0x38), region = 72 }
  0x30   : > { %s4210_s24 = scalar_lea.vmem %s5220_s2, %s3261_s21  ;;  %s4215_s27 = scalar_lea.vmem %s5221_s3, %s3261_s21 }
  0x34   : > { %v4085_v0 = vmov 0.0   ;;  %v4086_v1 = vmov -inf  }
  0x35   : > { %462 = vst [vmem:[#allocation2] sm:$0xff] %v4085_v0  ;;  %463 = vst [vmem:[#allocation3] sm:$0xff] %v4085_v0 }
  0x36   : > { %464 = vst [vmem:[#allocation4] sm:$0xff] %v4085_v0  ;;  %465 = vst [vmem:[#allocation5] sm:$0xff] %v4085_v0 }
  0x37   : > { %466 = vst [vmem:[%s5228_s10] sm:$0xff] %v4086_v1  ;;  %467 = vst [vmem:[%s5228_s10 + $0x8] sm:$0xff] %v4086_v1 }
  0x38 PF: > { %v3525_v2 = vld [vmem:[%s5222_s4 + $0x1e4] ss:$16 sps:$4 sm:$0xff]   ;;  %v3527_v3 = vld [vmem:[%s5222_s4 + $0x1ec] ss:$16 sps:$4 sm:$0xff]   ;;  %v5229_v4 = vmov 0  }
  0x39   : > { %744 = vmatprep.mubr.bf16.mxu0 %v5229_v4  ;;  %797 = vmatprep.mubr.bf16.mxu1 %v5229_v4  ;;  %v3529_v5 = vld [vmem:[%s5222_s4 + $0x1e0] ss:$16 sps:$4 sm:$0xff]   ;;  %v3530_v6 = vld [vmem:[%s5222_s4 + $0x1e8] ss:$16 sps:$4 sm:$0xff]   ;;  %v3531_v7 = vld [vmem:[%s5222_s4 + $0x1c4] ss:$16 sps:$4 sm:$0xff]  }
  0x3a   : > { %712 = vmatprep.subr.bf16.mxu0 %v3525_v2  ;;  %765 = vmatprep.subr.bf16.mxu1 %v3527_v3  ;;  %v3533_v8 = vld [vmem:[%s5222_s4 + $0x1cc] ss:$16 sps:$4 sm:$0xff]   ;;  %v3535_v9 = vld [vmem:[%s5222_s4 + $0x1c0] ss:$16 sps:$4 sm:$0xff]   ;;  %v3536_v10 = vld [vmem:[%s5222_s4 + $0x1c8] ss:$16 sps:$4 sm:$0xff]  }
  0x3b   : > { %713 = vmatpush1.bf16.msra.mxu0 %v3529_v5  ;;  %766 = vmatpush1.bf16.msra.mxu1 %v3530_v6  ;;  %v3537_v11 = vld [vmem:[%s5222_s4 + $0x1a4] ss:$16 sps:$4 sm:$0xff]   ;;  %v3539_v12 = vld [vmem:[%s5222_s4 + $0x1ac] ss:$16 sps:$4 sm:$0xff]   ;;  %v3541_v13 = vld [vmem:[%s5222_s4 + $0x1a0] ss:$16 sps:$4 sm:$0xff]  }
  0x3c   : > { %714 = vmatprep.subr.bf16.mxu0 %v3531_v7  ;;  %767 = vmatprep.subr.bf16.mxu1 %v3533_v8  ;;  %v3542_v14 = vld [vmem:[%s5222_s4 + $0x1a8] ss:$16 sps:$4 sm:$0xff]   ;;  %v3543_v15 = vld [vmem:[%s5222_s4 + $0x184] ss:$16 sps:$4 sm:$0xff]   ;;  %v3545_v16 = vld [vmem:[%s5222_s4 + $0x18c] ss:$16 sps:$4 sm:$0xff]  }
  0x3d   : > { %v3547_v17 = vld [vmem:[%s5222_s4 + $0x180] ss:$16 sps:$4 sm:$0xff]   ;;  %v3548_v18 = vld [vmem:[%s5222_s4 + $0x188] ss:$16 sps:$4 sm:$0xff]   ;;  %v3549_v19 = vld [vmem:[%s5222_s4 + $0x164] ss:$16 sps:$4 sm:$0xff]  }
  0x3e   : > { %v3551_v20 = vld [vmem:[%s5222_s4 + $0x16c] ss:$16 sps:$4 sm:$0xff]   ;;  %v3553_v21 = vld [vmem:[%s5222_s4 + $0x160] ss:$16 sps:$4 sm:$0xff]   ;;  %v3554_v22 = vld [vmem:[%s5222_s4 + $0x168] ss:$16 sps:$4 sm:$0xff]  }
  0x3f   : > { %715 = vmatpush1.bf16.msra.mxu0 %v3535_v9  ;;  %768 = vmatpush1.bf16.msra.mxu1 %v3536_v10  ;;  %v3555_v23 = vld [vmem:[%s5222_s4 + $0x144] ss:$16 sps:$4 sm:$0xff]   ;;  %v3557_v24 = vld [vmem:[%s5222_s4 + $0x14c] ss:$16 sps:$4 sm:$0xff]   ;;  %v3559_v25 = vld [vmem:[%s5222_s4 + $0x140] ss:$16 sps:$4 sm:$0xff]  }
  0x40   : > { %716 = vmatprep.subr.bf16.mxu0 %v3537_v11  ;;  %769 = vmatprep.subr.bf16.mxu1 %v3539_v12  ;;  %v3560_v26 = vld [vmem:[%s5222_s4 + $0x148] ss:$16 sps:$4 sm:$0xff]   ;;  %v3561_v27 = vld [vmem:[%s5222_s4 + $0x124] ss:$16 sps:$4 sm:$0xff]   ;;  %v3563_v28 = vld [vmem:[%s5222_s4 + $0x12c] ss:$16 sps:$4 sm:$0xff]  }
  0x41   : > { %v3565_v29 = vld [vmem:[%s5222_s4 + $0x120] ss:$16 sps:$4 sm:$0xff]   ;;  %v3566_v30 = vld [vmem:[%s5222_s4 + $0x128] ss:$16 sps:$4 sm:$0xff]   ;;  %v3567_v31 = vld [vmem:[%s5222_s4 + $0x104] ss:$16 sps:$4 sm:$0xff]  }
  0x42   : > { %v3569_v32 = vld [vmem:[%s5222_s4 + $0x10c] ss:$16 sps:$4 sm:$0xff]   ;;  %v3571_v33 = vld [vmem:[%s5222_s4 + $0x100] ss:$16 sps:$4 sm:$0xff]   ;;  %v3572_v34 = vld [vmem:[%s5222_s4 + $0x108] ss:$16 sps:$4 sm:$0xff]  }
  0x43   : > { %717 = vmatpush1.bf16.msra.mxu0 %v3541_v13  ;;  %770 = vmatpush1.bf16.msra.mxu1 %v3542_v14  ;;  %v3576_v35 = vld [vmem:[%s5222_s4 + $0xe4] ss:$16 sps:$4 sm:$0xff]   ;;  %v3579_v36 = vld [vmem:[%s5222_s4 + $0xec] ss:$16 sps:$4 sm:$0xff]   ;;  %v3574_v38 = vld [vmem:[%s5222_s4 + $0xe0] ss:$16 sps:$4 sm:$0xff]  }
  0x44   : > { %718 = vmatprep.subr.bf16.mxu0 %v3543_v15  ;;  %771 = vmatprep.subr.bf16.mxu1 %v3545_v16  ;;  %v3573_v37 = vld [vmem:[%s4205_s20] sm:$0xff]   ;;  %v3577_v39 = vld [vmem:[%s5222_s4 + $0xe8] ss:$16 sps:$4 sm:$0xff]   ;;  %v3585_v41 = vld [vmem:[%s5222_s4 + $0xcc] ss:$16 sps:$4 sm:$0xff]  }
  0x45   : > { %v3582_v40 = vld [vmem:[%s5222_s4 + $0xc4] ss:$16 sps:$4 sm:$0xff]   ;;  %v3580_v42 = vld [vmem:[%s5222_s4 + $0xc0] ss:$16 sps:$4 sm:$0xff]   ;;  %v3583_v43 = vld [vmem:[%s5222_s4 + $0xc8] ss:$16 sps:$4 sm:$0xff]  }
  0x46   : > { %v3588_v44 = vld [vmem:[%s5222_s4 + $0xa4] ss:$16 sps:$4 sm:$0xff]   ;;  %v3591_v45 = vld [vmem:[%s5222_s4 + $0xac] ss:$16 sps:$4 sm:$0xff]   ;;  %v3586_v47 = vld [vmem:[%s5222_s4 + $0xa0] ss:$16 sps:$4 sm:$0xff]  }
  0x47   : > { %719 = vmatpush1.bf16.msra.mxu0 %v3547_v17  ;;  %772 = vmatpush1.bf16.msra.mxu1 %v3548_v18  ;;  %v3604_v46 = vld [vmem:[%s4205_s20 + $0x8] sm:$0xff]   ;;  %v3594_v49 = vld [vmem:[%s5222_s4 + $0x84] ss:$16 sps:$4 sm:$0xff]   ;;  %v3592_v51 = vld [vmem:[%s5222_s4 + $0x80] ss:$16 sps:$4 sm:$0xff]  }
  0x48   : > { %720 = vmatprep.subr.bf16.mxu0 %v3549_v19  ;;  %773 = vmatprep.subr.bf16.mxu1 %v3551_v20  ;;  %v3589_v48 = vld [vmem:[%s5222_s4 + $0xa8] ss:$16 sps:$4 sm:$0xff]   ;;  %v3597_v50 = vld [vmem:[%s5222_s4 + $0x8c] ss:$16 sps:$4 sm:$0xff]   ;;  %v3600_v53 = vld [vmem:[%s5222_s4 + $0x64] ss:$16 sps:$4 sm:$0xff]  }
  0x49   : > { %v3595_v52 = vld [vmem:[%s5222_s4 + $0x88] ss:$16 sps:$4 sm:$0xff]   ;;  %v3603_v54 = vld [vmem:[%s5222_s4 + $0x6c] ss:$16 sps:$4 sm:$0xff]   ;;  %v3598_v55 = vld [vmem:[%s5222_s4 + $0x60] ss:$16 sps:$4 sm:$0xff]  }
  0x4a   : > { %v3601_v56 = vld [vmem:[%s5222_s4 + $0x68] ss:$16 sps:$4 sm:$0xff]   ;;  %v3607_v57 = vld [vmem:[%s5222_s4 + $0x44] ss:$16 sps:$4 sm:$0xff]   ;;  %v3610_v58 = vld [vmem:[%s5222_s4 + $0x4c] ss:$16 sps:$4 sm:$0xff]  }
  0x4b   : > { %721 = vmatpush1.bf16.msra.mxu0 %v3553_v21  ;;  %774 = vmatpush1.bf16.msra.mxu1 %v3554_v22  ;;  %v3605_v59 = vld [vmem:[%s5222_s4 + $0x40] ss:$16 sps:$4 sm:$0xff]   ;;  %v3608_v60 = vld [vmem:[%s5222_s4 + $0x48] ss:$16 sps:$4 sm:$0xff]   ;;  %v3613_v61 = vld [vmem:[%s5222_s4 + $0x24] ss:$16 sps:$4 sm:$0xff]  }
  0x4c   : > { %722 = vmatprep.subr.bf16.mxu0 %v3555_v23  ;;  %775 = vmatprep.subr.bf16.mxu1 %v3557_v24  ;;  %v3616_v62 = vld [vmem:[%s5222_s4 + $0x2c] ss:$16 sps:$4 sm:$0xff]   ;;  %v3611_v63 = vld [vmem:[%s5222_s4 + $0x20] ss:$16 sps:$4 sm:$0xff]   ;;  %v3614_v0 = vld [vmem:[%s5222_s4 + $0x28] ss:$16 sps:$4 sm:$0xff]  }
  0x4d   : > { %v3619_v1 = vld [vmem:[%s5222_s4 + $0x4] ss:$16 sps:$4 sm:$0xff]   ;;  %v3622_v2 = vld [vmem:[%s5222_s4 + $0xc] ss:$16 sps:$4 sm:$0xff]   ;;  %v3617_v3 = vld [vmem:[%s5222_s4] ss:$16 sps:$4 sm:$0xff]  }
  0x4e   : > { %v3620_v5 = vld [vmem:[%s5222_s4 + $0x8] ss:$16 sps:$4 sm:$0xff]   ;;  %v3626_v6 = vld [vmem:[%s5223_s5 + $0x1e4] ss:$16 sps:$4 sm:$0xff]   ;;  %v3629_v7 = vld [vmem:[%s5223_s5 + $0x1ec] ss:$16 sps:$4 sm:$0xff]  }
  0x4f   : > { %723 = vmatpush1.bf16.msra.mxu0 %v3559_v25  ;;  %776 = vmatpush1.bf16.msra.mxu1 %v3560_v26  ;;  %v3623_v8 = vld [vmem:[%s4200_s17] sm:$0xff]   ;;  %v3627_v10 = vld [vmem:[%s5223_s5 + $0x1e8] ss:$16 sps:$4 sm:$0xff]   ;;  %v3635_v12 = vld [vmem:[%s5223_s5 + $0x1cc] ss:$16 sps:$4 sm:$0xff]  }
  0x50   : > { %724 = vmatprep.subr.bf16.mxu0 %v3561_v27  ;;  %777 = vmatprep.subr.bf16.mxu1 %v3563_v28  ;;  %v3624_v9 = vld [vmem:[%s5223_s5 + $0x1e0] ss:$16 sps:$4 sm:$0xff]   ;;  %v3632_v11 = vld [vmem:[%s5223_s5 + $0x1c4] ss:$16 sps:$4 sm:$0xff]   ;;  %v3633_v14 = vld [vmem:[%s5223_s5 + $0x1c8] ss:$16 sps:$4 sm:$0xff]  }
  0x51   : > { %v3630_v13 = vld [vmem:[%s5223_s5 + $0x1c0] ss:$16 sps:$4 sm:$0xff]   ;;  %v3639_v15 = vld [vmem:[%s5223_s5 + $0x1a4] ss:$16 sps:$4 sm:$0xff]   ;;  %v3642_v16 = vld [vmem:[%s5223_s5 + $0x1ac] ss:$16 sps:$4 sm:$0xff]  }
  0x52   : > { %v3636_v17 = vld [vmem:[%s4200_s17 + $0x8] sm:$0xff]   ;;  %v3637_v18 = vld [vmem:[%s5223_s5 + $0x1a0] ss:$16 sps:$4 sm:$0xff]   ;;  %v3645_v20 = vld [vmem:[%s5223_s5 + $0x184] ss:$16 sps:$4 sm:$0xff]  }
  0x53   : > { %725 = vmatpush1.bf16.msra.mxu0 %v3565_v29  ;;  %778 = vmatpush1.bf16.msra.mxu1 %v3566_v30  ;;  %v3640_v19 = vld [vmem:[%s5223_s5 + $0x1a8] ss:$16 sps:$4 sm:$0xff]   ;;  %v3648_v21 = vld [vmem:[%s5223_s5 + $0x18c] ss:$16 sps:$4 sm:$0xff]   ;;  %v3643_v22 = vld [vmem:[%s5223_s5 + $0x180] ss:$16 sps:$4 sm:$0xff]  }
  0x54   : > { %726 = vmatprep.subr.bf16.mxu0 %v3567_v31  ;;  %779 = vmatprep.subr.bf16.mxu1 %v3569_v32  ;;  %v3646_v23 = vld [vmem:[%s5223_s5 + $0x188] ss:$16 sps:$4 sm:$0xff]   ;;  %v3651_v24 = vld [vmem:[%s5223_s5 + $0x164] ss:$16 sps:$4 sm:$0xff]   ;;  %v3654_v25 = vld [vmem:[%s5223_s5 + $0x16c] ss:$16 sps:$4 sm:$0xff]  }
  0x55   : > { %v3649_v26 = vld [vmem:[%s5223_s5 + $0x160] ss:$16 sps:$4 sm:$0xff]   ;;  %v3652_v27 = vld [vmem:[%s5223_s5 + $0x168] ss:$16 sps:$4 sm:$0xff]   ;;  %v3657_v28 = vld [vmem:[%s5223_s5 + $0x144] ss:$16 sps:$4 sm:$0xff]  }
  0x56   : > { %v3660_v29 = vld [vmem:[%s5223_s5 + $0x14c] ss:$16 sps:$4 sm:$0xff]   ;;  %v3655_v30 = vld [vmem:[%s5223_s5 + $0x140] ss:$16 sps:$4 sm:$0xff]   ;;  %v3658_v31 = vld [vmem:[%s5223_s5 + $0x148] ss:$16 sps:$4 sm:$0xff]  }
  0x57   : > { %727 = vmatpush1.bf16.msra.mxu0 %v3571_v33  ;;  %780 = vmatpush1.bf16.msra.mxu1 %v3572_v34  ;;  %v3663_v32 = vld [vmem:[%s5223_s5 + $0x124] ss:$16 sps:$4 sm:$0xff]   ;;  %v3666_v33 = vld [vmem:[%s5223_s5 + $0x12c] ss:$16 sps:$4 sm:$0xff]   ;;  %v3661_v34 = vld [vmem:[%s5223_s5 + $0x120] ss:$16 sps:$4 sm:$0xff]  }
  0x58   : > { %990 = vmatprep.subr.bf16.mxu0 %v3576_v35  ;;  %1043 = vmatprep.subr.bf16.mxu1 %v3579_v36  ;;  %v3664_v35 = vld [vmem:[%s5223_s5 + $0x128] ss:$16 sps:$4 sm:$0xff]   ;;  %v3669_v36 = vld [vmem:[%s5223_s5 + $0x104] ss:$16 sps:$4 sm:$0xff]  }
  0x5a   : > { %745 = vmatmul.mubr.bf16.vlgmr.msra.gmra.mxu0 %v3573_v37  ;;  %798 = vmatmul.mubr.bf16.vlgmr.msra.gmra.mxu1 %v3573_v37  ;;  %v3672_v37 = vld [vmem:[%s5223_s5 + $0x10c] ss:$16 sps:$4 sm:$0xff]  }
  0x5b   : > { %991 = vmatpush1.bf16.msra.mxu0 %v3574_v38  ;;  %1044 = vmatpush1.bf16.msra.mxu1 %v3577_v39  ;;  %v3667_v38 = vld [vmem:[%s5223_s5 + $0x100] ss:$16 sps:$4 sm:$0xff]   ;;  %v3670_v39 = vld [vmem:[%s5223_s5 + $0x108] ss:$16 sps:$4 sm:$0xff]  }
  0x5c   : > { %992 = vmatprep.subr.bf16.mxu0 %v3582_v40  ;;  %1045 = vmatprep.subr.bf16.mxu1 %v3585_v41  ;;  %v3676_v40 = vld [vmem:[%s5223_s5 + $0xe4] ss:$16 sps:$4 sm:$0xff]   ;;  %v3679_v41 = vld [vmem:[%s5223_s5 + $0xec] ss:$16 sps:$4 sm:$0xff]  }
  0x5d   : > { %754 = vmatprep.mubr.bf16.mxu0 %v5229_v4  ;;  %807 = vmatprep.mubr.bf16.mxu1 %v5229_v4 }
  0x5f   : > { %993 = vmatpush1.bf16.msra.mxu0 %v3580_v42  ;;  %1046 = vmatpush1.bf16.msra.mxu1 %v3583_v43  ;;  %v3673_v42 = vld [vmem:[%s4215_s27] sm:$0xff]  }
  0x60   : > { %994 = vmatprep.subr.bf16.mxu0 %v3588_v44  ;;  %1047 = vmatprep.subr.bf16.mxu1 %v3591_v45  ;;  %v3674_v43 = vld [vmem:[%s5223_s5 + $0xe0] ss:$16 sps:$4 sm:$0xff]   ;;  %v3677_v44 = vld [vmem:[%s5223_s5 + $0xe8] ss:$16 sps:$4 sm:$0xff]   ;;  %v3682_v45 = vld [vmem:[%s5223_s5 + $0xc4] ss:$16 sps:$4 sm:$0xff]  }
  0x62   : > { %755 = vmatmul.mubr.bf16.gmra.mxu0 %v3604_v46  ;;  %808 = vmatmul.mubr.bf16.gmra.mxu1 %v3604_v46  ;;  %v3685_v46 = vld [vmem:[%s5223_s5 + $0xcc] ss:$16 sps:$4 sm:$0xff]  }
  0x63   : > { %995 = vmatpush1.bf16.msra.mxu0 %v3586_v47  ;;  %1048 = vmatpush1.bf16.msra.mxu1 %v3589_v48  ;;  %v3680_v47 = vld [vmem:[%s5223_s5 + $0xc0] ss:$16 sps:$4 sm:$0xff]   ;;  %v3683_v48 = vld [vmem:[%s5223_s5 + $0xc8] ss:$16 sps:$4 sm:$0xff]  }
  0x64   : > { %996 = vmatprep.subr.bf16.mxu0 %v3594_v49  ;;  %1049 = vmatprep.subr.bf16.mxu1 %v3597_v50  ;;  %v3688_v49 = vld [vmem:[%s5223_s5 + $0xa4] ss:$16 sps:$4 sm:$0xff]   ;;  %v3691_v50 = vld [vmem:[%s5223_s5 + $0xac] ss:$16 sps:$4 sm:$0xff]  }
  0x65   : > { %1022 = vmatprep.mubr.bf16.mxu0 %v5229_v4  ;;  %1075 = vmatprep.mubr.bf16.mxu1 %v5229_v4 }
  0x67   : > { %997 = vmatpush1.bf16.msra.mxu0 %v3592_v51  ;;  %1050 = vmatpush1.bf16.msra.mxu1 %v3595_v52  ;;  %v3686_v51 = vld [vmem:[%s5223_s5 + $0xa0] ss:$16 sps:$4 sm:$0xff]   ;;  %v3689_v52 = vld [vmem:[%s5223_s5 + $0xa8] ss:$16 sps:$4 sm:$0xff]  }
  0x68   : > { %998 = vmatprep.subr.bf16.mxu0 %v3600_v53  ;;  %1051 = vmatprep.subr.bf16.mxu1 %v3603_v54  ;;  %v3704_v53 = vld [vmem:[%s4215_s27 + $0x8] sm:$0xff]   ;;  %v3694_v54 = vld [vmem:[%s5223_s5 + $0x84] ss:$16 sps:$4 sm:$0xff]  }
  0x6b   : > { %999 = vmatpush1.bf16.msra.mxu0 %v3598_v55  ;;  %1052 = vmatpush1.bf16.msra.mxu1 %v3601_v56  ;;  %v3697_v55 = vld [vmem:[%s5223_s5 + $0x8c] ss:$16 sps:$4 sm:$0xff]   ;;  %v3692_v56 = vld [vmem:[%s5223_s5 + $0x80] ss:$16 sps:$4 sm:$0xff]  }
  0x6c   : > { %1000 = vmatprep.subr.bf16.mxu0 %v3607_v57  ;;  %1053 = vmatprep.subr.bf16.mxu1 %v3610_v58  ;;  %v3695_v57 = vld [vmem:[%s5223_s5 + $0x88] ss:$16 sps:$4 sm:$0xff]   ;;  %v3700_v58 = vld [vmem:[%s5223_s5 + $0x64] ss:$16 sps:$4 sm:$0xff]  }
  0x6f   : > { %1001 = vmatpush1.bf16.msra.mxu0 %v3605_v59  ;;  %1054 = vmatpush1.bf16.msra.mxu1 %v3608_v60  ;;  %v3703_v59 = vld [vmem:[%s5223_s5 + $0x6c] ss:$16 sps:$4 sm:$0xff]   ;;  %v3698_v60 = vld [vmem:[%s5223_s5 + $0x60] ss:$16 sps:$4 sm:$0xff]  }
  0x70   : > { %1002 = vmatprep.subr.bf16.mxu0 %v3613_v61  ;;  %1055 = vmatprep.subr.bf16.mxu1 %v3616_v62  ;;  %v3701_v61 = vld [vmem:[%s5223_s5 + $0x68] ss:$16 sps:$4 sm:$0xff]   ;;  %v3707_v62 = vld [vmem:[%s5223_s5 + $0x44] ss:$16 sps:$4 sm:$0xff]  }
  0x73   : > { %1003 = vmatpush1.bf16.msra.mxu0 %v3611_v63  ;;  %1056 = vmatpush1.bf16.msra.mxu1 %v3614_v0  ;;  %v3710_v63 = vld [vmem:[%s5223_s5 + $0x4c] ss:$16 sps:$4 sm:$0xff]   ;;  %v3705_v0 = vld [vmem:[%s5223_s5 + $0x40] ss:$16 sps:$4 sm:$0xff]  }
  0x74   : > { %1004 = vmatprep.subr.bf16.mxu0 %v3619_v1  ;;  %1057 = vmatprep.subr.bf16.mxu1 %v3622_v2  ;;  %v3708_v1 = vld [vmem:[%s5223_s5 + $0x48] ss:$16 sps:$4 sm:$0xff]   ;;  %v3713_v2 = vld [vmem:[%s5223_s5 + $0x24] ss:$16 sps:$4 sm:$0xff]  }
  0x77   : > { %1005 = vmatpush1.bf16.msra.mxu0 %v3617_v3  ;;  %1058 = vmatpush1.bf16.msra.mxu1 %v3620_v5  ;;  %v3716_v3 = vld [vmem:[%s5223_s5 + $0x2c] ss:$16 sps:$4 sm:$0xff]   ;;  %v3711_v5 = vld [vmem:[%s5223_s5 + $0x20] ss:$16 sps:$4 sm:$0xff]  }
  0x78   : > { %1394 = vmatprep.subr.bf16.mxu0 %v3626_v6  ;;  %1447 = vmatprep.subr.bf16.mxu1 %v3629_v7  ;;  %v3714_v6 = vld [vmem:[%s5223_s5 + $0x28] ss:$16 sps:$4 sm:$0xff]   ;;  %v3719_v7 = vld [vmem:[%s5223_s5 + $0x4] ss:$16 sps:$4 sm:$0xff]  }
  0x7a   : > { %1023 = vmatmul.mubr.bf16.vlgmr.msra.gmra.mxu0 %v3623_v8  ;;  %1076 = vmatmul.mubr.bf16.vlgmr.msra.gmra.mxu1 %v3623_v8  ;;  %v3722_v8 = vld [vmem:[%s5223_s5 + $0xc] ss:$16 sps:$4 sm:$0xff]  }
  0x7b   : > { %1395 = vmatpush1.bf16.msra.mxu0 %v3624_v9  ;;  %1448 = vmatpush1.bf16.msra.mxu1 %v3627_v10  ;;  %v3717_v9 = vld [vmem:[%s5223_s5] ss:$16 sps:$4 sm:$0xff]   ;;  %v3720_v10 = vld [vmem:[%s5223_s5 + $0x8] ss:$16 sps:$4 sm:$0xff]  }
  0x7c   : > { %1396 = vmatprep.subr.bf16.mxu0 %v3632_v11  ;;  %1449 = vmatprep.subr.bf16.mxu1 %v3635_v12  ;;  %v4629_v11 = vld [vmem:[#allocation8 + $0xe4] ss:$16 sps:$4 sm:$0xff]   ;;  %v4631_v12 = vld [vmem:[#allocation8 + $0xec] ss:$16 sps:$4 sm:$0xff]  }
  0x7d   : > { %1032 = vmatprep.mubr.bf16.mxu0 %v5229_v4  ;;  %1085 = vmatprep.mubr.bf16.mxu1 %v5229_v4  ;;  %5296 = vst [vmem:[#allocation14_spill] sm:$0xff] %v4629_v11  ;;  %5297 = vst [vmem:[#allocation15_spill] sm:$0xff] %v4631_v12 }
  0x7f   : > { %1397 = vmatpush1.bf16.msra.mxu0 %v3630_v13  ;;  %1450 = vmatpush1.bf16.msra.mxu1 %v3633_v14  ;;  %v3723_v13 = vld [vmem:[%s4210_s24] sm:$0xff]  }
  0x80   : > { %1398 = vmatprep.subr.bf16.mxu0 %v3639_v15  ;;  %1451 = vmatprep.subr.bf16.mxu1 %v3642_v16  ;;  %v4634_v14 = vld [vmem:[#allocation8 + $0xe0] ss:$16 sps:$4 sm:$0xff]   ;;  %v4636_v15 = vld [vmem:[#allocation8 + $0xe8] ss:$16 sps:$4 sm:$0xff]   ;;  %v4638_v16 = vld [vmem:[#allocation8 + $0xc4] ss:$16 sps:$4 sm:$0xff]  }
  0x81   : > { %5298 = vst [vmem:[#allocation16_spill] sm:$0xff] %v4634_v14  ;;  %5299 = vst [vmem:[#allocation17_spill] sm:$0xff] %v4636_v15 }
  0x82   : > { %1033 = vmatmul.mubr.bf16.gmra.mxu0 %v3636_v17  ;;  %1086 = vmatmul.mubr.bf16.gmra.mxu1 %v3636_v17  ;;  %5300 = vst [vmem:[#allocation18_spill] sm:$0xff] %v4638_v16  ;;  %v4642_v17 = vld [vmem:[#allocation8 + $0xcc] ss:$16 sps:$4 sm:$0xff]  }
  0x83   : > { %1399 = vmatpush1.bf16.msra.mxu0 %v3637_v18  ;;  %1452 = vmatpush1.bf16.msra.mxu1 %v3640_v19  ;;  %5301 = vst [vmem:[#allocation19_spill] sm:$0xff] %v4642_v17  ;;  %v4644_v18 = vld [vmem:[#allocation8 + $0xc0] ss:$16 sps:$4 sm:$0xff]   ;;  %v4648_v19 = vld [vmem:[#allocation8 + $0xc8] ss:$16 sps:$4 sm:$0xff]  }
  0x84   : > { %1400 = vmatprep.subr.bf16.mxu0 %v3645_v20  ;;  %1453 = vmatprep.subr.bf16.mxu1 %v3648_v21  ;;  %5302 = vst [vmem:[#allocation20_spill] sm:$0xff] %v4644_v18  ;;  %5303 = vst [vmem:[#allocation21_spill] sm:$0xff] %v4648_v19  ;;  %v4652_v20 = vld [vmem:[#allocation8 + $0xa4] ss:$16 sps:$4 sm:$0xff]   ;;  %v4654_v21 = vld [vmem:[#allocation8 + $0xac] ss:$16 sps:$4 sm:$0xff]  }
  0x85   : > { %1426 = vmatprep.mubr.bf16.mxu0 %v5229_v4  ;;  %1479 = vmatprep.mubr.bf16.mxu1 %v5229_v4  ;;  %5304 = vst [vmem:[#allocation22_spill] sm:$0xff] %v4652_v20  ;;  %5305 = vst [vmem:[#allocation23_spill] sm:$0xff] %v4654_v21 }
  0x87   : > { %1401 = vmatpush1.bf16.msra.mxu0 %v3643_v22  ;;  %1454 = vmatpush1.bf16.msra.mxu1 %v3646_v23  ;;  %v3736_v22 = vld [vmem:[%s4210_s24 + $0x8] sm:$0xff]   ;;  %v4661_v23 = vld [vmem:[#allocation8 + $0xa0] ss:$16 sps:$4 sm:$0xff]  }
  0x88   : > { %1402 = vmatprep.subr.bf16.mxu0 %v3651_v24  ;;  %1455 = vmatprep.subr.bf16.mxu1 %v3654_v25  ;;  %5306 = vst [vmem:[#allocation24_spill] sm:$0xff] %v4661_v23  ;;  %v4663_v24 = vld [vmem:[#allocation8 + $0xa8] ss:$16 sps:$4 sm:$0xff]   ;;  %v4667_v25 = vld [vmem:[#allocation8 + $0x84] ss:$16 sps:$4 sm:$0xff]  }
  0x89   : > { %5307 = vst [vmem:[#allocation25_spill] sm:$0xff] %v4663_v24  ;;  %5308 = vst [vmem:[#allocation26_spill] sm:$0xff] %v4667_v25 }
  0x8b   : > { %1403 = vmatpush1.bf16.msra.mxu0 %v3649_v26  ;;  %1456 = vmatpush1.bf16.msra.mxu1 %v3652_v27  ;;  %v4669_v26 = vld [vmem:[#allocation8 + $0x8c] ss:$16 sps:$4 sm:$0xff]   ;;  %v4673_v27 = vld [vmem:[#allocation8 + $0x80] ss:$16 sps:$4 sm:$0xff]  }
  0x8c   : > { %1404 = vmatprep.subr.bf16.mxu0 %v3657_v28  ;;  %1457 = vmatprep.subr.bf16.mxu1 %v3660_v29  ;;  %5309 = vst [vmem:[#allocation27_spill] sm:$0xff] %v4669_v26  ;;  %5310 = vst [vmem:[#allocation28_spill] sm:$0xff] %v4673_v27  ;;  %v4675_v28 = vld [vmem:[#allocation8 + $0x88] ss:$16 sps:$4 sm:$0xff]   ;;  %v4679_v29 = vld [vmem:[#allocation8 + $0x64] ss:$16 sps:$4 sm:$0xff]  }
  0x8d   : > { %5311 = vst [vmem:[#allocation29_spill] sm:$0xff] %v4675_v28  ;;  %5312 = vst [vmem:[#allocation30_spill] sm:$0xff] %v4679_v29 }
  0x8f   : > { %1405 = vmatpush1.bf16.msra.mxu0 %v3655_v30  ;;  %1458 = vmatpush1.bf16.msra.mxu1 %v3658_v31  ;;  %v4681_v30 = vld [vmem:[#allocation8 + $0x6c] ss:$16 sps:$4 sm:$0xff]   ;;  %v4687_v31 = vld [vmem:[#allocation8 + $0x60] ss:$16 sps:$4 sm:$0xff]  }
  0x90   : > { %1406 = vmatprep.subr.bf16.mxu0 %v3663_v32  ;;  %1459 = vmatprep.subr.bf16.mxu1 %v3666_v33  ;;  %5313 = vst [vmem:[#allocation31_spill] sm:$0xff] %v4681_v30  ;;  %5314 = vst [vmem:[#allocation32_spill] sm:$0xff] %v4687_v31  ;;  %v4689_v32 = vld [vmem:[#allocation8 + $0x68] ss:$16 sps:$4 sm:$0xff]   ;;  %v4693_v33 = vld [vmem:[#allocation8 + $0x44] ss:$16 sps:$4 sm:$0xff]  }
  0x91   : > { %5315 = vst [vmem:[#allocation33_spill] sm:$0xff] %v4689_v32  ;;  %5316 = vst [vmem:[#allocation34_spill] sm:$0xff] %v4693_v33 }
  0x93   : > { %1407 = vmatpush1.bf16.msra.mxu0 %v3661_v34  ;;  %1460 = vmatpush1.bf16.msra.mxu1 %v3664_v35  ;;  %v4695_v34 = vld [vmem:[#allocation8 + $0x4c] ss:$16 sps:$4 sm:$0xff]   ;;  %v4699_v35 = vld [vmem:[#allocation8 + $0x40] ss:$16 sps:$4 sm:$0xff]  }
  0x94   : > { %1408 = vmatprep.subr.bf16.mxu0 %v3669_v36  ;;  %1461 = vmatprep.subr.bf16.mxu1 %v3672_v37  ;;  %5317 = vst [vmem:[#allocation35_spill] sm:$0xff] %v4695_v34  ;;  %5318 = vst [vmem:[#allocation36_spill] sm:$0xff] %v4699_v35  ;;  %v4701_v36 = vld [vmem:[#allocation8 + $0x48] ss:$16 sps:$4 sm:$0xff]   ;;  %v4705_v37 = vld [vmem:[#allocation8 + $0x24] ss:$16 sps:$4 sm:$0xff]  }
  0x95   : > { %5319 = vst [vmem:[#allocation37_spill] sm:$0xff] %v4701_v36  ;;  %5320 = vst [vmem:[#allocation38_spill] sm:$0xff] %v4705_v37 }
  0x97   : > { %1409 = vmatpush1.bf16.msra.mxu0 %v3667_v38  ;;  %1462 = vmatpush1.bf16.msra.mxu1 %v3670_v39  ;;  %v4707_v38 = vld [vmem:[#allocation8 + $0x2c] ss:$16 sps:$4 sm:$0xff]   ;;  %v4711_v39 = vld [vmem:[#allocation8 + $0x20] ss:$16 sps:$4 sm:$0xff]  }
  0x98   : > { %1672 = vmatprep.subr.bf16.mxu0 %v3676_v40  ;;  %1725 = vmatprep.subr.bf16.mxu1 %v3679_v41  ;;  %5321 = vst [vmem:[#allocation39_spill] sm:$0xff] %v4707_v38  ;;  %5322 = vst [vmem:[#allocation40_spill] sm:$0xff] %v4711_v39  ;;  %v4713_v40 = vld [vmem:[#allocation8 + $0x28] ss:$16 sps:$4 sm:$0xff]   ;;  %v4717_v41 = vld [vmem:[#allocation8 + $0x4] ss:$16 sps:$4 sm:$0xff]  }
  0x99   : > { %5323 = vst [vmem:[#allocation41_spill] sm:$0xff] %v4713_v40  ;;  %5324 = vst [vmem:[#allocation42_spill] sm:$0xff] %v4717_v41 }
  0x9a   : > { %1427 = vmatmul.mubr.bf16.vlgmr.msra.gmra.mxu0 %v3673_v42  ;;  %1480 = vmatmul.mubr.bf16.vlgmr.msra.gmra.mxu1 %v3673_v42  ;;  %v4719_v42 = vld [vmem:[#allocation8 + $0xc] ss:$16 sps:$4 sm:$0xff]  }
  0x9b   : > { %1673 = vmatpush1.bf16.msra.mxu0 %v3674_v43  ;;  %1726 = vmatpush1.bf16.msra.mxu1 %v3677_v44  ;;  %5325 = vst [vmem:[#allocation43_spill] sm:$0xff] %v4719_v42  ;;  %v4723_v43 = vld [vmem:[#allocation8] ss:$16 sps:$4 sm:$0xff]   ;;  %v4725_v44 = vld [vmem:[#allocation8 + $0x8] ss:$16 sps:$4 sm:$0xff]  }
  0x9c   : > { %1674 = vmatprep.subr.bf16.mxu0 %v3682_v45  ;;  %1727 = vmatprep.subr.bf16.mxu1 %v3685_v46  ;;  %5326 = vst [vmem:[#allocation44_spill] sm:$0xff] %v4723_v43  ;;  %5327 = vst [vmem:[#allocation45_spill] sm:$0xff] %v4725_v44  ;;  %v1896_v45 = vld [vmem:[#allocation2] sm:$0xff] }
  0x9d   : > { %1436 = vmatprep.mubr.bf16.mxu0 %v5229_v4  ;;  %1489 = vmatprep.mubr.bf16.mxu1 %v5229_v4  ;;  %v4729_v46 = vld [vmem:[#allocation10 + $0xe4] ss:$16 sps:$4 sm:$0xff]  }
  0x9e   : > { %5328 = vst [vmem:[#allocation46_spill] sm:$0xff] %v4729_v46 }
  0x9f   : > { %1675 = vmatpush1.bf16.msra.mxu0 %v3680_v47  ;;  %1728 = vmatpush1.bf16.msra.mxu1 %v3683_v48  ;;  %v4731_v47 = vld [vmem:[#allocation10 + $0xec] ss:$16 sps:$4 sm:$0xff]   ;;  %v1904_v48 = vpack.c.bf16 %v1896_v45, %v1896_v45 }
  0xa0   : > { %1676 = vmatprep.subr.bf16.mxu0 %v3688_v49  ;;  %1729 = vmatprep.subr.bf16.mxu1 %v3691_v50  ;;  %5329 = vst [vmem:[#allocation47_spill] sm:$0xff] %v4731_v47  ;;  %v4735_v49 = vld [vmem:[#allocation10 + $0xe0] ss:$16 sps:$4 sm:$0xff]   ;;  %v4737_v50 = vld [vmem:[#allocation10 + $0xe8] ss:$16 sps:$4 sm:$0xff]  }
  0xa1   : > { %v4817_v45 = vld [vmem:[#allocation10 + $0xc] ss:$16 sps:$4 sm:$0xff]  }
  0xa2   : > { %1437 = vmatmul.mubr.bf16.gmra.mxu0 %v3704_v53  ;;  %1490 = vmatmul.mubr.bf16.gmra.mxu1 %v3704_v53  ;;  %v4747_v53 = vld [vmem:[#allocation10 + $0xc0] ss:$16 sps:$4 sm:$0xff]   ;;  %5339 = vst [vmem:[#allocation57_spill] sm:$0xff] %v4817_v45 }
  0xa3   : > { %1677 = vmatpush1.bf16.msra.mxu0 %v3686_v51  ;;  %1730 = vmatpush1.bf16.msra.mxu1 %v3689_v52  ;;  %v4741_v51 = vld [vmem:[#allocation10 + $0xc4] ss:$16 sps:$4 sm:$0xff]   ;;  %v4743_v52 = vld [vmem:[#allocation10 + $0xcc] ss:$16 sps:$4 sm:$0xff]  }
  0xa4   : > { %1678 = vmatprep.subr.bf16.mxu0 %v3694_v54  ;;  %1731 = vmatprep.subr.bf16.mxu1 %v3697_v55  ;;  %v4749_v54 = vld [vmem:[#allocation10 + $0xc8] ss:$16 sps:$4 sm:$0xff]   ;;  %v4753_v55 = vld [vmem:[#allocation10 + $0xa4] ss:$16 sps:$4 sm:$0xff]  }
  0xa5   : > { %1704 = vmatprep.mubr.bf16.mxu0 %v5229_v4  ;;  %1757 = vmatprep.mubr.bf16.mxu1 %v5229_v4 }
  0xa7   : > { %1679 = vmatpush1.bf16.msra.mxu0 %v3692_v56  ;;  %1732 = vmatpush1.bf16.msra.mxu1 %v3695_v57  ;;  %v4755_v56 = vld [vmem:[#allocation10 + $0xac] ss:$16 sps:$4 sm:$0xff]   ;;  %v4761_v57 = vld [vmem:[#allocation10 + $0xa0] ss:$16 sps:$4 sm:$0xff]  }
  0xa8   : > { %1680 = vmatprep.subr.bf16.mxu0 %v3700_v58  ;;  %1733 = vmatprep.subr.bf16.mxu1 %v3703_v59  ;;  %v4763_v58 = vld [vmem:[#allocation10 + $0xa8] ss:$16 sps:$4 sm:$0xff]   ;;  %v4767_v59 = vld [vmem:[#allocation10 + $0x84] ss:$16 sps:$4 sm:$0xff]  }
  0xab   : > { %1681 = vmatpush1.bf16.msra.mxu0 %v3698_v60  ;;  %1734 = vmatpush1.bf16.msra.mxu1 %v3701_v61  ;;  %v4769_v60 = vld [vmem:[#allocation10 + $0x8c] ss:$16 sps:$4 sm:$0xff]   ;;  %v4773_v61 = vld [vmem:[#allocation10 + $0x80] ss:$16 sps:$4 sm:$0xff]  }
  0xac   : > { %1682 = vmatprep.subr.bf16.mxu0 %v3707_v62  ;;  %1735 = vmatprep.subr.bf16.mxu1 %v3710_v63  ;;  %v4775_v62 = vld [vmem:[#allocation10 + $0x88] ss:$16 sps:$4 sm:$0xff]   ;;  %v4779_v63 = vld [vmem:[#allocation10 + $0x64] ss:$16 sps:$4 sm:$0xff]  }
  0xaf   : > { %1683 = vmatpush1.bf16.msra.mxu0 %v3705_v0  ;;  %1736 = vmatpush1.bf16.msra.mxu1 %v3708_v1  ;;  %v4781_v0 = vld [vmem:[#allocation10 + $0x6c] ss:$16 sps:$4 sm:$0xff]   ;;  %v4785_v1 = vld [vmem:[#allocation10 + $0x60] ss:$16 sps:$4 sm:$0xff]  }
  0xb0   : > { %1684 = vmatprep.subr.bf16.mxu0 %v3713_v2  ;;  %1737 = vmatprep.subr.bf16.mxu1 %v3716_v3  ;;  %v4787_v2 = vld [vmem:[#allocation10 + $0x68] ss:$16 sps:$4 sm:$0xff]   ;;  %v4791_v3 = vld [vmem:[#allocation10 + $0x44] ss:$16 sps:$4 sm:$0xff]  }
  0xb1   : > { %5330 = vst [vmem:[#allocation48_spill] sm:$0xff] %v4791_v3 }
  0xb3   : > { %1685 = vmatpush1.bf16.msra.mxu0 %v3711_v5  ;;  %1738 = vmatpush1.bf16.msra.mxu1 %v3714_v6  ;;  %v4793_v5 = vld [vmem:[#allocation10 + $0x4c] ss:$16 sps:$4 sm:$0xff]   ;;  %v4797_v6 = vld [vmem:[#allocation10 + $0x40] ss:$16 sps:$4 sm:$0xff]  }
  0xb4   : > { %1686 = vmatprep.subr.bf16.mxu0 %v3719_v7  ;;  %1739 = vmatprep.subr.bf16.mxu1 %v3722_v8  ;;  %5331 = vst [vmem:[#allocation49_spill] sm:$0xff] %v4793_v5  ;;  %5332 = vst [vmem:[#allocation50_spill] sm:$0xff] %v4797_v6  ;;  %v4799_v7 = vld [vmem:[#allocation10 + $0x48] ss:$16 sps:$4 sm:$0xff]   ;;  %v4803_v8 = vld [vmem:[#allocation10 + $0x24] ss:$16 sps:$4 sm:$0xff]  }
  0xb5   : > { %5333 = vst [vmem:[#allocation51_spill] sm:$0xff] %v4799_v7  ;;  %5334 = vst [vmem:[#allocation52_spill] sm:$0xff] %v4803_v8 }
  0xb7   : > { %1687 = vmatpush1.bf16.msra.mxu0 %v3717_v9  ;;  %1740 = vmatpush1.bf16.msra.mxu1 %v3720_v10  ;;  %v4805_v9 = vld [vmem:[#allocation10 + $0x2c] ss:$16 sps:$4 sm:$0xff]   ;;  %v4809_v10 = vld [vmem:[#allocation10 + $0x20] ss:$16 sps:$4 sm:$0xff]  }
  0xb8   : > { %2065 = vmatprep.subr.bf16.mxu0 %v4629_v11  ;;  %2106 = vmatprep.subr.bf16.mxu1 %v4631_v12  ;;  %5335 = vst [vmem:[#allocation53_spill] sm:$0xff] %v4805_v9  ;;  %5336 = vst [vmem:[#allocation54_spill] sm:$0xff] %v4809_v10 }
  0xba   : > { %1705 = vmatmul.mubr.bf16.vlgmr.msra.gmra.mxu0 %v3723_v13  ;;  %1758 = vmatmul.mubr.bf16.vlgmr.msra.gmra.mxu1 %v3723_v13  ;;  %v4811_v13 = vld [vmem:[#allocation10 + $0x28] ss:$16 sps:$4 sm:$0xff]  }
  0xbb   : > { %2066 = vmatpush1.bf16.msra.mxu0 %v4634_v14  ;;  %2107 = vmatpush1.bf16.msra.mxu1 %v4636_v15  ;;  %5337 = vst [vmem:[#allocation55_spill] sm:$0xff] %v4811_v13 }
  0xbc   : > { %2067 = vmatprep.subr.bf16.mxu0 %v4638_v16  ;;  %2108 = vmatprep.subr.bf16.mxu1 %v4642_v17 }
  0xbd   : > { %1714 = vmatprep.mubr.bf16.mxu0 %v5229_v4  ;;  %1767 = vmatprep.mubr.bf16.mxu1 %v5229_v4 }
  0xbf   : > { %2068 = vmatpush1.bf16.msra.mxu0 %v4644_v18  ;;  %2109 = vmatpush1.bf16.msra.mxu1 %v4648_v19 }
  0xc0   : > { %2069 = vmatprep.subr.bf16.mxu0 %v4652_v20  ;;  %2110 = vmatprep.subr.bf16.mxu1 %v4654_v21 }
  0xc2   : > { %1715 = vmatmul.mubr.bf16.gmra.mxu0 %v3736_v22  ;;  %1768 = vmatmul.mubr.bf16.gmra.mxu1 %v3736_v22  ;;  %v4815_v22 = vld [vmem:[#allocation10 + $0x4] ss:$16 sps:$4 sm:$0xff]  }
  0xc3   : > { %2070 = vmatpush1.bf16.msra.mxu0 %v4661_v23  ;;  %2111 = vmatpush1.bf16.msra.mxu1 %v4663_v24  ;;  %5338 = vst [vmem:[#allocation56_spill] sm:$0xff] %v4815_v22 }
  0xc4   : > { %2071 = vmatprep.subr.bf16.mxu0 %v4667_v25  ;;  %2112 = vmatprep.subr.bf16.mxu1 %v4669_v26 }
  0xc5   : > { %2097 = vmatprep.mubr.bf16.mxu0 %v5229_v4  ;;  %2138 = vmatprep.mubr.bf16.mxu1 %v5229_v4 }
  0xc7   : > { %2072 = vmatpush1.bf16.msra.mxu0 %v4673_v27  ;;  %2113 = vmatpush1.bf16.msra.mxu1 %v4675_v28 }
  0xc8   : > { %2073 = vmatprep.subr.bf16.mxu0 %v4679_v29  ;;  %2114 = vmatprep.subr.bf16.mxu1 %v4681_v30 }
  0xcb   : > { %2074 = vmatpush1.bf16.msra.mxu0 %v4687_v31  ;;  %2115 = vmatpush1.bf16.msra.mxu1 %v4689_v32 }
  0xcc   : > { %2075 = vmatprep.subr.bf16.mxu0 %v4693_v33  ;;  %2116 = vmatprep.subr.bf16.mxu1 %v4695_v34 }
  0xcf   : > { %2076 = vmatpush1.bf16.msra.mxu0 %v4699_v35  ;;  %2117 = vmatpush1.bf16.msra.mxu1 %v4701_v36 }
  0xd0   : > { %2077 = vmatprep.subr.bf16.mxu0 %v4705_v37  ;;  %2118 = vmatprep.subr.bf16.mxu1 %v4707_v38 }
  0xd3   : > { %2078 = vmatpush1.bf16.msra.mxu0 %v4711_v39  ;;  %2119 = vmatpush1.bf16.msra.mxu1 %v4713_v40 }
  0xd4   : > { %2079 = vmatprep.subr.bf16.mxu0 %v4717_v41  ;;  %2120 = vmatprep.subr.bf16.mxu1 %v4719_v42 }
  0xd7   : > { %2080 = vmatpush1.bf16.msra.mxu0 %v4723_v43  ;;  %2121 = vmatpush1.bf16.msra.mxu1 %v4725_v44 }
  0xd8   : > { %2341 = vmatprep.subr.bf16.mxu0 %v4729_v46  ;;  %2382 = vmatprep.subr.bf16.mxu1 %v4731_v47 }
  0xda   : > { %2098 = vmatmul.mubr.bf16.vlgmr.msra.gmra.mxu0 %v1904_v48  ;;  %2139 = vmatmul.mubr.bf16.vlgmr.msra.gmra.mxu1 %v1904_v48  ;;  %v4821_v48 = vld [vmem:[#allocation10] ss:$16 sps:$4 sm:$0xff]  }
  0xdb   : > { %2342 = vmatpush1.bf16.msra.mxu0 %v4735_v49  ;;  %2383 = vmatpush1.bf16.msra.mxu1 %v4737_v50  ;;  %5340 = vst [vmem:[#allocation58_spill] sm:$0xff] %v4821_v48 }
  0xdc   : > { %2343 = vmatprep.subr.bf16.mxu0 %v4741_v51  ;;  %2384 = vmatprep.subr.bf16.mxu1 %v4743_v52 }
  0xdd   : > { %2373 = vmatprep.mubr.bf16.mxu0 %v5229_v4  ;;  %2414 = vmatprep.mubr.bf16.mxu1 %v5229_v4  ;;  %v4823_v4 = vld [vmem:[#allocation10 + $0x8] ss:$16 sps:$4 sm:$0xff]  }
  0xde   : > { %5341 = vst [vmem:[#allocation59_spill] sm:$0xff] %v4823_v4 }
  0xdf   : > { %2344 = vmatpush1.bf16.msra.mxu0 %v4747_v53  ;;  %2385 = vmatpush1.bf16.msra.mxu1 %v4749_v54 }
  0xe0   : > { %2345 = vmatprep.subr.bf16.mxu0 %v4753_v55  ;;  %2386 = vmatprep.subr.bf16.mxu1 %v4755_v56 }
  0xe3   : > { %2346 = vmatpush1.bf16.msra.mxu0 %v4761_v57  ;;  %2387 = vmatpush1.bf16.msra.mxu1 %v4763_v58 }
  0xe4   : > { %2347 = vmatprep.subr.bf16.mxu0 %v4767_v59  ;;  %2388 = vmatprep.subr.bf16.mxu1 %v4769_v60 }
  0xe7   : > { %2348 = vmatpush1.bf16.msra.mxu0 %v4773_v61  ;;  %2389 = vmatpush1.bf16.msra.mxu1 %v4775_v62 }
  0xe8   : > { %2349 = vmatprep.subr.bf16.mxu0 %v4779_v63  ;;  %2390 = vmatprep.subr.bf16.mxu1 %v4781_v0 }
  0xeb   : > { %2350 = vmatpush1.bf16.msra.mxu0 %v4785_v1  ;;  %2391 = vmatpush1.bf16.msra.mxu1 %v4787_v2 }
  0xec   : > { %2351 = vmatprep.subr.bf16.mxu0 %v4791_v3  ;;  %2392 = vmatprep.subr.bf16.mxu1 %v4793_v5 }
  0xef   : > { %2352 = vmatpush1.bf16.msra.mxu0 %v4797_v6  ;;  %2393 = vmatpush1.bf16.msra.mxu1 %v4799_v7  ;;  %v1898_v7 = vld [vmem:[#allocation4] sm:$0xff] }
  0xf0   : > { %2353 = vmatprep.subr.bf16.mxu0 %v4803_v8  ;;  %2394 = vmatprep.subr.bf16.mxu1 %v4805_v9  ;;  %v2180_v8 = vpack.c.bf16 %v1898_v7, %v1898_v7 }
  0xf3   : > { %2354 = vmatpush1.bf16.msra.mxu0 %v4809_v10  ;;  %2395 = vmatpush1.bf16.msra.mxu1 %v4811_v13 }
  0xf4   : > { %2355 = vmatprep.subr.bf16.mxu0 %v4815_v22  ;;  %2396 = vmatprep.subr.bf16.mxu1 %v4817_v45  ;;  %v5342_v45 = vmov 0  }
  0xf7   : > { %2356 = vmatpush1.bf16.msra.mxu0 %v4821_v48  ;;  %2397 = vmatpush1.bf16.msra.mxu1 %v4823_v4 }
  0xf8   : > { %2457 = vmatprep.subr.bf16.mxu0 %v4629_v11  ;;  %2498 = vmatprep.subr.bf16.mxu1 %v4631_v12 }
  0xfa   : > { %2374 = vmatmul.mubr.bf16.vlgmr.msra.gmra.mxu0 %v2180_v8  ;;  %2415 = vmatmul.mubr.bf16.vlgmr.msra.gmra.mxu1 %v2180_v8 }
  0xfb   : > { %2458 = vmatpush1.bf16.msra.mxu0 %v4634_v14  ;;  %2499 = vmatpush1.bf16.msra.mxu1 %v4636_v15 }
  0xfc   : > { %2459 = vmatprep.subr.bf16.mxu0 %v4638_v16  ;;  %2500 = vmatprep.subr.bf16.mxu1 %v4642_v17 }
  0xfd   : > { %2489 = vmatprep.mubr.bf16.mxu0 %v5342_v45  ;;  %2530 = vmatprep.mubr.bf16.mxu1 %v5342_v45 }
  0xff   : > { %2460 = vmatpush1.bf16.msra.mxu0 %v4644_v18  ;;  %2501 = vmatpush1.bf16.msra.mxu1 %v4648_v19 }
 0x100   : > { %2461 = vmatprep.subr.bf16.mxu0 %v4652_v20  ;;  %2502 = vmatprep.subr.bf16.mxu1 %v4654_v21 }
 0x103   : > { %2462 = vmatpush1.bf16.msra.mxu0 %v4661_v23  ;;  %2503 = vmatpush1.bf16.msra.mxu1 %v4663_v24  ;;  %v1096_v23 = vld [vmem:[%s5226_s8] sm:$0xf] }
 0x104   : > { %2463 = vmatprep.subr.bf16.mxu0 %v4667_v25  ;;  %2504 = vmatprep.subr.bf16.mxu1 %v4669_v26 }
 0x107   : > { %2464 = vmatpush1.bf16.msra.mxu0 %v4673_v27  ;;  %2505 = vmatpush1.bf16.msra.mxu1 %v4675_v28 }
 0x108   : > { %2465 = vmatprep.subr.bf16.mxu0 %v4679_v29  ;;  %2506 = vmatprep.subr.bf16.mxu1 %v4681_v30 }
 0x10b   : > { %2466 = vmatpush1.bf16.msra.mxu0 %v4687_v31  ;;  %2507 = vmatpush1.bf16.msra.mxu1 %v4689_v32 }
 0x10c   : > { %2467 = vmatprep.subr.bf16.mxu0 %v4693_v33  ;;  %2508 = vmatprep.subr.bf16.mxu1 %v4695_v34  ;;  %v1098_v33 = vlaneseq }
 0x10f   : > { %2468 = vmatpush1.bf16.msra.mxu0 %v4699_v35  ;;  %2509 = vmatpush1.bf16.msra.mxu1 %v4701_v36 }
 0x110   : > { %2469 = vmatprep.subr.bf16.mxu0 %v4705_v37  ;;  %2510 = vmatprep.subr.bf16.mxu1 %v4707_v38 }
 0x113   : > { %2470 = vmatpush1.bf16.msra.mxu0 %v4711_v39  ;;  %2511 = vmatpush1.bf16.msra.mxu1 %v4713_v40 }
 0x114   : > { %2471 = vmatprep.subr.bf16.mxu0 %v4717_v41  ;;  %2512 = vmatprep.subr.bf16.mxu1 %v4719_v42 }
 0x117   : > { %2472 = vmatpush1.bf16.msra.mxu0 %v4723_v43  ;;  %2513 = vmatpush1.bf16.msra.mxu1 %v4725_v44 }
 0x118   : > { %2573 = vmatprep.subr.bf16.mxu0 %v4729_v46  ;;  %2614 = vmatprep.subr.bf16.mxu1 %v4731_v47  ;;  %v4871_v47 = vshrl.u32 %v1098_v33, 7 }
 0x11a   : > { %v799_v7 = vpop.f32.mrf.mxu1  ;;  %v4865_v8 = vpop.f32.mrf.mxu0  ;;  %v5271_v27 = vsub.s32 0, %v4871_v47  ;;  %v5270_v26 = vsub.s32 2, %v4871_v47  ;;  %v5277_v33 = vsub.s32 1, %v4871_v47  ;;  %v5278_v21 = vsub.s32 3, %v4871_v47 }
 0x11b   : > { %v5358_v13 = vsub.s32 3, %v4871_v47 }
 0x11c   : > { %v4867_v38 = vpop.f32.mrf.mxu1  ;;  %v4869_v39 = vpop.f32.mrf.mxu0  ;;  %v4890_v18 = vrot.slane %v1096_v23, %v5271_v27  ;;  %v4894_v17 = vrot.slane %v1096_v23, %v5270_v26  ;;  %v4898_v14 = vrot.slane %v1096_v23, %v5277_v33  ;;  %v4902_v12 = vrot.slane %v1096_v23, %v5278_v21 }
 0x11e   : > { %v803_v40 = vpop.f32.mrf.mxu1  ;;  %v750_v37 = vpop.f32.mrf.mxu0 }
 0x120   : > { %v805_v41 = vpop.f32.mrf.mxu1  ;;  %v752_v36 = vpop.f32.mrf.mxu0 }
 0x122   : > { %v809_v42 = vpop.f32.mrf.mxu1  ;;  %v756_v35 = vpop.f32.mrf.mxu0 }
 0x124   : > { %v811_v43 = vpop.f32.mrf.mxu1  ;;  %v758_v34 = vpop.f32.mrf.mxu0 }
 0x126   : > { %v813_v44 = vpop.f32.mrf.mxu1  ;;  %v760_v46 = vpop.f32.mrf.mxu0 }
 0x128   : > { %v815_v32 = vpop.f32.mrf.mxu1  ;;  %v762_v31 = vpop.f32.mrf.mxu0 }
 0x13a   : > { %v4873_v30 = vpop.f32.mrf.mxu0  ;;  %v1077_v29 = vpop.f32.mrf.mxu1 }
 0x13b   : > { %v4875_v28 = vadd.f32 %v1077_v29, %v799_v7 }
 0x13c   : > { %v4879_v25 = vpop.f32.mrf.mxu0  ;;  %v4881_v24 = vpop.f32.mrf.mxu1 }
 0x13e   : > { %v1028_v20 = vpop.f32.mrf.mxu0  ;;  %v1081_v19 = vpop.f32.mrf.mxu1 }
 0x13f   : > { %v1029_v29 = vadd.f32 %v1028_v20, %v750_v37  ;;  %v1082_v7 = vadd.f32 %v1081_v19, %v803_v40 }
 0x140   : > { %v1030_v16 = vpop.f32.mrf.mxu0  ;;  %v1083_v15 = vpop.f32.mrf.mxu1 }
 0x141   : > { %v1031_v20 = vadd.f32 %v1030_v16, %v752_v36  ;;  %v1084_v19 = vadd.f32 %v1083_v15, %v805_v41  ;;  %v4905_v37 = vadd.f32 %v4890_v18, %v1029_v29  ;;  %v4908_v40 = vadd.f32 %v4894_v17, %v1082_v7 }
 0x142   : > { %v1034_v26 = vpop.f32.mrf.mxu0  ;;  %v1087_v27 = vpop.f32.mrf.mxu1 }
 0x143   : > { %5343 = vst [vmem:[#allocation60_spill] sm:$0xff] %v4905_v37  ;;  %5344 = vst [vmem:[#allocation61_spill] sm:$0xff] %v4908_v40  ;;  %v1035_v11 = vadd.f32 %v1034_v26, %v756_v35  ;;  %v1088_v4 = vadd.f32 %v1087_v27, %v809_v42  ;;  %v4911_v48 = vadd.f32 %v4898_v14, %v1031_v20  ;;  %v5357_v37 = vsub.s32 1, %v4871_v47 }
 0x144   : > { %v4914_v33 = vadd.f32 %v4902_v12, %v1084_v19  ;;  %v1036_v23 = vpop.f32.mrf.mxu0  ;;  %v1089_v21 = vpop.f32.mrf.mxu1 }
 0x145   : > { %5345 = vst [vmem:[#allocation62_spill] sm:$0xff] %v4911_v48  ;;  %v1037_v16 = vadd.f32 %v1036_v23, %v758_v34  ;;  %v1090_v15 = vadd.f32 %v1089_v21, %v811_v43  ;;  %v4917_v36 = vadd.f32 %v4890_v18, %v1035_v11  ;;  %v4920_v41 = vadd.f32 %v4894_v17, %v1088_v4 }
 0x146   : > { %5346 = vst [vmem:[#allocation63_spill] sm:$0xff] %v4914_v33  ;;  %v1038_v29 = vpop.f32.mrf.mxu0  ;;  %v1091_v7 = vpop.f32.mrf.mxu1 }
 0x147   : > { %5347 = vst [vmem:[#allocation64_spill] sm:$0xff] %v4917_v36  ;;  %5348 = vst [vmem:[#allocation65_spill] sm:$0xff] %v4920_v41  ;;  %v1039_v26 = vadd.f32 %v1038_v29, %v760_v46  ;;  %v1092_v27 = vadd.f32 %v1091_v7, %v813_v44  ;;  %v4923_v35 = vadd.f32 %v4898_v14, %v1037_v16 }
 0x148   : > { %v4926_v42 = vadd.f32 %v4902_v12, %v1090_v15  ;;  %v1040_v20 = vpop.f32.mrf.mxu0  ;;  %v1093_v19 = vpop.f32.mrf.mxu1 }
 0x149   : > { %5349 = vst [vmem:[#allocation66_spill] sm:$0xff] %v4923_v35  ;;  %v1041_v34 = vadd.f32 %v1040_v20, %v762_v31  ;;  %v1094_v21 = vadd.f32 %v1093_v19, %v815_v32  ;;  %v4929_v11 = vadd.f32 %v4890_v18, %v1039_v26  ;;  %v4932_v4 = vadd.f32 %v4894_v17, %v1092_v27 }
 0x14a   : > { %5350 = vst [vmem:[#allocation67_spill] sm:$0xff] %v4926_v42  ;;  %v5356_v42 = vsub.s32 2, %v4871_v47 }
 0x14b   : > { %5351 = vst [vmem:[#allocation68_spill] sm:$0xff] %v4929_v11  ;;  %5352 = vst [vmem:[#allocation69_spill] sm:$0xff] %v4932_v4  ;;  %v4935_v43 = vadd.f32 %v4898_v14, %v1041_v34  ;;  %v4938_v44 = vadd.f32 %v4902_v12, %v1094_v21  ;;  %v1778_v21 = vld [vmem:[%s5227_s9] sm:$0xf] }
 0x14c   : > { %v4957_v35 = vrot.slane %v1778_v21, %v5356_v42  ;;  %v4961_v22 = vrot.slane %v1778_v21, %v5357_v37  ;;  %v4965_v10 = vrot.slane %v1778_v21, %v5358_v13 }
 0x14d   : > { %5353 = vst [vmem:[#allocation70_spill] sm:$0xff] %v4935_v43  ;;  %5354 = vst [vmem:[#allocation71_spill] sm:$0xff] %v4938_v44  ;;  %v5355_v43 = vsub.s32 0, %v4871_v47 }
 0x14f   : > { %v4953_v41 = vrot.slane %v1778_v21, %v5355_v43 }
 0x15a   : > { %v1481_v46 = vpop.f32.mrf.mxu1  ;;  %v1428_v23 = vpop.f32.mrf.mxu0 }
 0x15c   : > { %v1483_v16 = vpop.f32.mrf.mxu1  ;;  %v1430_v15 = vpop.f32.mrf.mxu0 }
 0x15e   : > { %v1485_v29 = vpop.f32.mrf.mxu1  ;;  %v1432_v7 = vpop.f32.mrf.mxu0 }
 0x160   : > { %v1487_v31 = vpop.f32.mrf.mxu1  ;;  %v1434_v32 = vpop.f32.mrf.mxu0 }
 0x162   : > { %v1491_v20 = vpop.f32.mrf.mxu1  ;;  %v1438_v26 = vpop.f32.mrf.mxu0 }
 0x164   : > { %v1493_v19 = vpop.f32.mrf.mxu1  ;;  %v1440_v11 = vpop.f32.mrf.mxu0 }
 0x166   : > { %v4940_v27 = vpop.f32.mrf.mxu1  ;;  %v4942_v4 = vpop.f32.mrf.mxu0 }
 0x168   : > { %v4944_v34 = vpop.f32.mrf.mxu1  ;;  %v4949_v44 = vpop.f32.mrf.mxu0 }
 0x17a   : > { %v1706_v36 = vpop.f32.mrf.mxu0  ;;  %v1759_v40 = vpop.f32.mrf.mxu1 }
 0x17b   : > { %v1707_v33 = vadd.f32 %v1706_v36, %v1428_v23  ;;  %v1760_v48 = vadd.f32 %v1759_v40, %v1481_v46 }
 0x17c   : > { %v1708_v9 = vpop.f32.mrf.mxu0  ;;  %v1761_v6 = vpop.f32.mrf.mxu1 }
 0x17d   : > { %v1709_v43 = vadd.f32 %v1708_v9, %v1430_v15  ;;  %v1762_v5 = vadd.f32 %v1761_v6, %v1483_v16  ;;  %v4968_v3 = vadd.f32 %v4953_v41, %v1707_v33  ;;  %v4971_v42 = vadd.f32 %v4957_v35, %v1760_v48 }
 0x17e   : > { %v1710_v36 = vpop.f32.mrf.mxu0  ;;  %v1763_v40 = vpop.f32.mrf.mxu1 }
 0x17f   : > { %5359 = vst [vmem:[#allocation72_spill] sm:$0xff] %v4968_v3  ;;  %5360 = vst [vmem:[#allocation73_spill] sm:$0xff] %v4971_v42  ;;  %v1711_v46 = vadd.f32 %v1710_v36, %v1432_v7  ;;  %v1764_v23 = vadd.f32 %v1763_v40, %v1485_v29  ;;  %v4974_v37 = vadd.f32 %v4961_v22, %v1709_v43 }
 0x180   : > { %v4977_v47 = vadd.f32 %v4965_v10, %v1762_v5  ;;  %v1712_v13 = vpop.f32.mrf.mxu0  ;;  %v1765_v21 = vpop.f32.mrf.mxu1 }
 0x181   : > { %5361 = vst [vmem:[#allocation74_spill] sm:$0xff] %v4974_v37  ;;  %v1713_v9 = vadd.f32 %v1712_v13, %v1434_v32  ;;  %v1766_v6 = vadd.f32 %v1765_v21, %v1487_v31  ;;  %v4980_v33 = vadd.f32 %v4953_v41, %v1711_v46  ;;  %v4983_v48 = vadd.f32 %v4957_v35, %v1764_v23 }
 0x182   : > { %5362 = vst [vmem:[#allocation75_spill] sm:$0xff] %v4977_v47  ;;  %v1716_v16 = vpop.f32.mrf.mxu0  ;;  %v1769_v15 = vpop.f32.mrf.mxu1 }
 0x183   : > { %v1717_v7 = vadd.f32 %v1716_v16, %v1438_v26  ;;  %v1770_v29 = vadd.f32 %v1769_v15, %v1491_v20  ;;  %v4986_v43 = vadd.f32 %v4961_v22, %v1713_v9  ;;  %v4989_v5 = vadd.f32 %v4965_v10, %v1766_v6 }
 0x184   : > { %v1718_v36 = vpop.f32.mrf.mxu0  ;;  %v1771_v40 = vpop.f32.mrf.mxu1  ;;  %v1025_v9 = vadd.f32 %v4873_v30, %v4865_v8 }
 0x185   : > { %v1719_v32 = vadd.f32 %v1718_v36, %v1440_v11  ;;  %v1772_v31 = vadd.f32 %v1771_v40, %v1493_v19  ;;  %v4992_v46 = vadd.f32 %v4953_v41, %v1717_v7  ;;  %v4995_v23 = vadd.f32 %v4957_v35, %v1770_v29 }
 0x186   : > { %v1720_v26 = vpop.f32.mrf.mxu0  ;;  %v5003_v21 = vpop.f32.mrf.mxu1  ;;  %v1027_v11 = vadd.f32 %v4879_v25, %v4869_v39  ;;  %v1118_v16 = vadd.f32 %v4890_v18, %v1025_v9  ;;  %v1080_v25 = vadd.f32 %v4881_v24, %v4867_v38 }
 0x187   : > { %v4998_v13 = vadd.f32 %v4961_v22, %v1719_v32  ;;  %v5001_v20 = vadd.f32 %v4965_v10, %v1772_v31  ;;  %v1721_v24 = vadd.f32 %v1720_v26, %v4942_v4 }
 0x188   : > { %v1722_v19 = vpop.f32.mrf.mxu0  ;;  %v1775_v6 = vpop.f32.mrf.mxu1  ;;  %v1119_v36 = vadd.f32 %v4898_v14, %v1027_v11  ;;  %v1121_v18 = vadd.f32 %v4902_v12, %v1080_v25  ;;  %v1120_v14 = vadd.f32 %v4894_v17, %v4875_v28 }
 0x189   : > { %v1723_v38 = vadd.f32 %v1722_v19, %v4949_v44  ;;  %v1812_v12 = vadd.f32 %v4953_v41, %v1721_v24 }
 0x18b   : > { %v1813_v28 = vadd.f32 %v4961_v22, %v1723_v38 }
 0x19a   : > { %v2099_v15 = vpop.f32.mrf.mxu0  ;;  %v2140_v7 = vpop.f32.mrf.mxu1 }
 0x19b   : > { %v2147_v29 = vadd.f32 %v2099_v15, %v1118_v16  ;;  %v2149_v15 = vadd.f32 %v2140_v7, %v1120_v14  ;;  %v1776_v14 = vadd.f32 %v1775_v6, %v4944_v34 }
 0x19c   : > { %v2101_v40 = vpop.f32.mrf.mxu0  ;;  %v2142_v32 = vpop.f32.mrf.mxu1 }
 0x19d   : > { %v3433_v31 = vmul.f32 -1.442695, %v2147_v29  ;;  %v2148_v42 = vadd.f32 %v2101_v40, %v1119_v36  ;;  %v2150_v9 = vadd.f32 %v2142_v32, %v1121_v18  ;;  %v1897_v32 = vld [vmem:[#allocation3] sm:$0xff] }
 0x19e   : > { %v2103_v47 = vpop.f32.mrf.mxu0  ;;  %v2144_v37 = vpop.f32.mrf.mxu1 }
 0x19f   : > { %3821 = vpow2.f32 %v3433_v31  ;;  %v3434_v30 = vmul.f32 -1.442695, %v2148_v42  ;;  %v3435_v11 = vmul.f32 -1.442695, %v2150_v9 }
 0x1a0   : > { %v2104_v39 = vpop.f32.mrf.mxu0  ;;  %v2145_v8 = vpop.f32.mrf.mxu1 }
 0x1a1   : > { %3823 = vpow2.f32 %v3434_v30 }
 0x1a2   : > { %3825 = vpow2.f32 %v3435_v11 }
 0x1ac   : > { %v3822_v16 = vpop.eup %3821 }
 0x1ad   : > { %v2154_v29 = vadd.f32 1.0, %v3822_v16 }
 0x1ae   : > { %v3824_v47 = vpop.eup %3823 }
 0x1af   : > { %3827 = vrcp.f32 %v2154_v29  ;;  %v2160_v42 = vadd.f32 1.0, %v3824_v47  ;;  %v3826_v40 = vpop.eup %3825  ;;  %v1774_v29 = vadd.f32 %v5003_v21, %v4940_v27  ;;  %v1899_v21 = vld [vmem:[#allocation5] sm:$0xff] }
 0x1b0   : > { %3829 = vtanh.f32 %v2149_v15  ;;  %v2167_v9 = vadd.f32 1.0, %v3826_v40  ;;  %v1815_v15 = vadd.f32 %v4965_v10, %v1776_v14  ;;  %v5371_v14 = vld [vmem:[#allocation56_spill] sm:$0xff] }
 0x1b1   : > { %3831 = vrcp.f32 %v2160_v42  ;;  %v1814_v42 = vadd.f32 %v4957_v35, %v1774_v29  ;;  %v5373_v29 = vld [vmem:[#allocation58_spill] sm:$0xff] }
 0x1ba   : > { %v2375_v37 = vpop.f32.mrf.mxu0  ;;  %v2416_v36 = vpop.f32.mrf.mxu1 }
 0x1bb   : > { %v2423_v17 = vadd.f32 %v2375_v37, %v1812_v12  ;;  %v2425_v12 = vadd.f32 %v2416_v36, %v1814_v42 }
 0x1bc   : > { %v3828_v7 = vpop.eup %3827  ;;  %v2377_v31 = vpop.f32.mrf.mxu0 }
 0x1bd   : > { %v2418_v30 = vpop.f32.mrf.mxu1  ;;  %v3830_v25 = vpop.eup %3829  ;;  %v3468_v39 = vmul.f32 -1.442695, %v2423_v17  ;;  %v2424_v8 = vadd.f32 %v2377_v31, %v1813_v28 }
 0x1be   : > { %v3832_v18 = vpop.eup %3831  ;;  %v2379_v4 = vpop.f32.mrf.mxu0  ;;  %v2171_v44 = vmul.f32 %v3830_v25, %v3828_v7  ;;  %v2426_v47 = vadd.f32 %v2418_v30, %v1815_v15 }
 0x1bf   : > { %v2420_v26 = vpop.f32.mrf.mxu1  ;;  %v2170_v19 = vmul.f32 %v3832_v18, %v1897_v32  ;;  %3833 = vpow2.f32 %v3468_v39  ;;  %v3469_v41 = vmul.f32 -1.442695, %v2424_v8  ;;  %v5363_v39 = vld [vmem:[#allocation48_spill] sm:$0xff]  ;;  %v5364_v8 = vld [vmem:[#allocation49_spill] sm:$0xff]  ;;  %v5365_v18 = vld [vmem:[#allocation50_spill] sm:$0xff] }
 0x1c0   : > { %v2380_v11 = vpop.f32.mrf.mxu0  ;;  %v3470_v24 = vmul.f32 -1.442695, %v2426_v47  ;;  %v5367_v4 = vld [vmem:[#allocation52_spill] sm:$0xff]  ;;  %v5368_v26 = vld [vmem:[#allocation53_spill] sm:$0xff]  ;;  %v5374_v47 = vld [vmem:[#allocation59_spill] sm:$0xff] }
 0x1c1   : > { %v2421_v16 = vpop.f32.mrf.mxu1  ;;  %v5021_v22 = vadd.f32 %v2171_v44, %v2170_v19  ;;  %3835 = vpow2.f32 %v3469_v41  ;;  %v5369_v44 = vld [vmem:[#allocation54_spill] sm:$0xff]  ;;  %v5370_v19 = vld [vmem:[#allocation55_spill] sm:$0xff]  ;;  %v5372_v11 = vld [vmem:[#allocation57_spill] sm:$0xff] }
 0x1c2   : > { %3837 = vrcp.f32 %v2167_v9  ;;  %v5366_v9 = vld [vmem:[#allocation51_spill] sm:$0xff] }
 0x1c3   : > { %3839 = vtanh.f32 %v5021_v22 }
 0x1c4   : > { %3841 = vpow2.f32 %v3470_v24  ;;  %v5375_v24 = vld [vmem:[#allocation14_spill] sm:$0xff] }
 0x1cc   : > { %v3834_v38 = vpop.eup %3833 }
 0x1cd   : > { %v2430_v34 = vadd.f32 1.0, %v3834_v38  ;;  %v5376_v38 = vld [vmem:[#allocation15_spill] sm:$0xff] }
 0x1ce   : > { %v3836_v6 = vpop.eup %3835 }
 0x1cf   : > { %v3838_v37 = vpop.eup %3837  ;;  %3843 = vrcp.f32 %v2430_v34  ;;  %v2436_v40 = vadd.f32 1.0, %v3836_v6  ;;  %v5378_v34 = vld [vmem:[#allocation17_spill] sm:$0xff]  ;;  %v5379_v6 = vld [vmem:[#allocation18_spill] sm:$0xff] }
 0x1d0   : > { %v3840_v17 = vpop.eup %3839  ;;  %3845 = vtanh.f32 %v2425_v12  ;;  %v5377_v12 = vld [vmem:[#allocation16_spill] sm:$0xff] }
 0x1d1   : > { %3847 = vrcp.f32 %v2436_v40  ;;  %v5028_v28 = vmul.f32 %v3840_v17, %v3838_v37  ;;  %v3842_v35 = vpop.eup %3841  ;;  %v5380_v37 = vld [vmem:[#allocation19_spill] sm:$0xff]  ;;  %v5381_v40 = vld [vmem:[#allocation20_spill] sm:$0xff]  ;;  %v5382_v17 = vld [vmem:[#allocation21_spill] sm:$0xff] }
 0x1d2   : > { %v2443_v32 = vadd.f32 1.0, %v3842_v35  ;;  %v5384_v35 = vld [vmem:[#allocation23_spill] sm:$0xff] }
 0x1d3   : > { %v2456_v10 = vpack.c.bf16 %v5028_v28, %v5028_v28 }
 0x1d4   : > { %3849 = vrcp.f32 %v2443_v32  ;;  %v5389_v32 = vld [vmem:[#allocation28_spill] sm:$0xff] }
 0x1d5   : > { %2490 = vmatmul.mubr.bf16.vlgmr.msra.gmra.mxu0 %v2456_v10  ;;  %2531 = vmatmul.mubr.bf16.vlgmr.msra.gmra.mxu1 %v2456_v10  ;;  %v5383_v10 = vld [vmem:[#allocation22_spill] sm:$0xff] }
 0x1d6   : > { %2574 = vmatpush1.bf16.msra.mxu0 %v4735_v49  ;;  %2615 = vmatpush1.bf16.msra.mxu1 %v4737_v50 }
 0x1d7   : > { %2575 = vmatprep.subr.bf16.mxu0 %v4741_v51  ;;  %2616 = vmatprep.subr.bf16.mxu1 %v4743_v52 }
 0x1d8   : > { %2605 = vmatprep.mubr.bf16.mxu0 %v5342_v45  ;;  %2646 = vmatprep.mubr.bf16.mxu1 %v5342_v45 }
 0x1da   : > { %2576 = vmatpush1.bf16.msra.mxu0 %v4747_v53  ;;  %2617 = vmatpush1.bf16.msra.mxu1 %v4749_v54 }
 0x1db   : > { %2577 = vmatprep.subr.bf16.mxu0 %v4753_v55  ;;  %2618 = vmatprep.subr.bf16.mxu1 %v4755_v56 }
 0x1dc   : > { %v3844_v27 = vpop.eup %3843 }
 0x1dd   : > { %v3846_v36 = vpop.eup %3845 }
 0x1de   : > { %v3848_v7 = vpop.eup %3847  ;;  %2578 = vmatpush1.bf16.msra.mxu0 %v4761_v57  ;;  %2619 = vmatpush1.bf16.msra.mxu1 %v4763_v58  ;;  %v2447_v31 = vmul.f32 %v3846_v36, %v3844_v27  ;;  %v5385_v27 = vld [vmem:[#allocation24_spill] sm:$0xff]  ;;  %v5387_v36 = vld [vmem:[#allocation26_spill] sm:$0xff] }
 0x1df   : > { %v2446_v30 = vmul.f32 %v3848_v7, %v1899_v21  ;;  %2579 = vmatprep.subr.bf16.mxu0 %v4767_v59  ;;  %2620 = vmatprep.subr.bf16.mxu1 %v4769_v60  ;;  %v5386_v21 = vld [vmem:[#allocation25_spill] sm:$0xff]  ;;  %v5388_v7 = vld [vmem:[#allocation27_spill] sm:$0xff] }
 0x1e1   : > { %v5046_v25 = vadd.f32 %v2447_v31, %v2446_v30  ;;  %v3850_v41 = vpop.eup %3849  ;;  %v5390_v31 = vld [vmem:[#allocation29_spill] sm:$0xff]  ;;  %v5391_v30 = vld [vmem:[#allocation30_spill] sm:$0xff] }
 0x1e2   : > { %2580 = vmatpush1.bf16.msra.mxu0 %v4773_v61  ;;  %2621 = vmatpush1.bf16.msra.mxu1 %v4775_v62 }
 0x1e3   : > { %2581 = vmatprep.subr.bf16.mxu0 %v4779_v63  ;;  %2622 = vmatprep.subr.bf16.mxu1 %v4781_v0  ;;  %3851 = vtanh.f32 %v5046_v25 }
 0x1e6   : > { %2582 = vmatpush1.bf16.msra.mxu0 %v4785_v1  ;;  %2623 = vmatpush1.bf16.msra.mxu1 %v4787_v2 }
 0x1e7   : > { %2583 = vmatprep.subr.bf16.mxu0 %v5363_v39  ;;  %2624 = vmatprep.subr.bf16.mxu1 %v5364_v8 }
 0x1ea   : > { %2584 = vmatpush1.bf16.msra.mxu0 %v5365_v18  ;;  %2625 = vmatpush1.bf16.msra.mxu1 %v5366_v9 }
 0x1eb   : > { %2585 = vmatprep.subr.bf16.mxu0 %v5367_v4  ;;  %2626 = vmatprep.subr.bf16.mxu1 %v5368_v26 }
 0x1ee   : > { %2586 = vmatpush1.bf16.msra.mxu0 %v5369_v44  ;;  %2627 = vmatpush1.bf16.msra.mxu1 %v5370_v19 }
 0x1ef   : > { %2587 = vmatprep.subr.bf16.mxu0 %v5371_v14  ;;  %2628 = vmatprep.subr.bf16.mxu1 %v5372_v11 }
 0x1f0   : > { %v3852_v16 = vpop.eup %3851 }
 0x1f1   : > { %v5065_v15 = vmul.f32 %v3852_v16, %v3850_v41  ;;  %v5392_v41 = vld [vmem:[#allocation31_spill] sm:$0xff]  ;;  %v5393_v16 = vld [vmem:[#allocation32_spill] sm:$0xff] }
 0x1f2   : > { %2588 = vmatpush1.bf16.msra.mxu0 %v5373_v29  ;;  %2629 = vmatpush1.bf16.msra.mxu1 %v5374_v47 }
 0x1f3   : > { %v2572_v42 = vpack.c.bf16 %v5065_v15, %v5065_v15  ;;  %2691 = vmatprep.subr.bf16.mxu0 %v5375_v24  ;;  %2732 = vmatprep.subr.bf16.mxu1 %v5376_v38  ;;  %v5395_v24 = vld [vmem:[#allocation34_spill] sm:$0xff]  ;;  %v5396_v38 = vld [vmem:[#allocation35_spill] sm:$0xff] }
 0x1f5   : > { %2606 = vmatmul.mubr.bf16.vlgmr.msra.gmra.mxu0 %v2572_v42  ;;  %2647 = vmatmul.mubr.bf16.vlgmr.msra.gmra.mxu1 %v2572_v42  ;;  %v5394_v42 = vld [vmem:[#allocation33_spill] sm:$0xff] }
 0x1f6   : > { %2692 = vmatpush1.bf16.msra.mxu0 %v5377_v12  ;;  %2733 = vmatpush1.bf16.msra.mxu1 %v5378_v34  ;;  %v5397_v12 = vld [vmem:[#allocation36_spill] sm:$0xff]  ;;  %v5398_v34 = vld [vmem:[#allocation37_spill] sm:$0xff] }
 0x1f7   : > { %2693 = vmatprep.subr.bf16.mxu0 %v5379_v6  ;;  %2734 = vmatprep.subr.bf16.mxu1 %v5380_v37  ;;  %v5399_v6 = vld [vmem:[#allocation38_spill] sm:$0xff]  ;;  %v5400_v37 = vld [vmem:[#allocation39_spill] sm:$0xff] }
 0x1f8   : > { %2723 = vmatprep.mubr.bf16.mxu0 %v5342_v45  ;;  %2764 = vmatprep.mubr.bf16.mxu1 %v5342_v45 }
 0x1fa   : > { %2694 = vmatpush1.bf16.msra.mxu0 %v5381_v40  ;;  %2735 = vmatpush1.bf16.msra.mxu1 %v5382_v17  ;;  %v5401_v40 = vld [vmem:[#allocation40_spill] sm:$0xff]  ;;  %v5402_v17 = vld [vmem:[#allocation41_spill] sm:$0xff] }
 0x1fb   : > { %2695 = vmatprep.subr.bf16.mxu0 %v5383_v10  ;;  %2736 = vmatprep.subr.bf16.mxu1 %v5384_v35  ;;  %v5403_v10 = vld [vmem:[#allocation42_spill] sm:$0xff]  ;;  %v5404_v35 = vld [vmem:[#allocation43_spill] sm:$0xff] }
 0x1fe   : > { %2696 = vmatpush1.bf16.msra.mxu0 %v5385_v27  ;;  %2737 = vmatpush1.bf16.msra.mxu1 %v5386_v21  ;;  %v5405_v27 = vld [vmem:[#allocation44_spill] sm:$0xff]  ;;  %v5406_v21 = vld [vmem:[#allocation45_spill] sm:$0xff] }
 0x1ff   : > { %2697 = vmatprep.subr.bf16.mxu0 %v5387_v36  ;;  %2738 = vmatprep.subr.bf16.mxu1 %v5388_v7  ;;  %v5407_v36 = vld [vmem:[#allocation46_spill] sm:$0xff]  ;;  %v5408_v7 = vld [vmem:[#allocation47_spill] sm:$0xff] }
 0x202   : > { %2698 = vmatpush1.bf16.msra.mxu0 %v5389_v32  ;;  %2739 = vmatpush1.bf16.msra.mxu1 %v5390_v31 }
 0x203   : > { %2699 = vmatprep.subr.bf16.mxu0 %v5391_v30  ;;  %2740 = vmatprep.subr.bf16.mxu1 %v5392_v41  ;;  %v5409_v30 = vld [vmem:[#allocation60_spill] sm:$0xff] }
 0x206   : > { %2700 = vmatpush1.bf16.msra.mxu0 %v5393_v16  ;;  %2741 = vmatpush1.bf16.msra.mxu1 %v5394_v42 }
 0x207   : > { %2701 = vmatprep.subr.bf16.mxu0 %v5395_v24  ;;  %2742 = vmatprep.subr.bf16.mxu1 %v5396_v38  ;;  %v5410_v38 = vld [vmem:[#allocation62_spill] sm:$0xff] }
 0x20a   : > { %2702 = vmatpush1.bf16.msra.mxu0 %v5397_v12  ;;  %2743 = vmatpush1.bf16.msra.mxu1 %v5398_v34 }
 0x20b   : > { %2703 = vmatprep.subr.bf16.mxu0 %v5399_v6  ;;  %2744 = vmatprep.subr.bf16.mxu1 %v5400_v37 }
 0x20e   : > { %2704 = vmatpush1.bf16.msra.mxu0 %v5401_v40  ;;  %2745 = vmatpush1.bf16.msra.mxu1 %v5402_v17 }
 0x20f   : > { %2705 = vmatprep.subr.bf16.mxu0 %v5403_v10  ;;  %2746 = vmatprep.subr.bf16.mxu1 %v5404_v35  ;;  %v5411_v10 = vld [vmem:[#allocation63_spill] sm:$0xff] }
 0x212   : > { %2706 = vmatpush1.bf16.msra.mxu0 %v5405_v27  ;;  %2747 = vmatpush1.bf16.msra.mxu1 %v5406_v21  ;;  %v5412_v27 = vld [vmem:[#allocation61_spill] sm:$0xff] }
 0x213   : > { %2807 = vmatprep.subr.bf16.mxu0 %v5407_v36  ;;  %2848 = vmatprep.subr.bf16.mxu1 %v5408_v7 }
 0x295   : > { %v2491_v32 = vpop.f32.mrf.mxu0  ;;  %v2532_v31 = vpop.f32.mrf.mxu1 }
 0x296   : > { %v2539_v41 = vadd.f32 %v2491_v32, %v5409_v30  ;;  %v2541_v21 = vadd.f32 %v2532_v31, %v5412_v27 }
 0x297   : > { %v2493_v16 = vpop.f32.mrf.mxu0  ;;  %v2534_v42 = vpop.f32.mrf.mxu1 }
 0x298   : > { %v3471_v24 = vmul.f32 -1.442695, %v2539_v41  ;;  %v2540_v12 = vadd.f32 %v2493_v16, %v5410_v38  ;;  %v2542_v35 = vadd.f32 %v2534_v42, %v5411_v10 }
 0x299   : > { %v2495_v34 = vpop.f32.mrf.mxu0  ;;  %v2536_v6 = vpop.f32.mrf.mxu1 }
 0x29a   : > { %3853 = vpow2.f32 %v3471_v24  ;;  %v3472_v37 = vmul.f32 -1.442695, %v2540_v12  ;;  %v3473_v36 = vmul.f32 -1.442695, %v2542_v35 }
 0x29b   : > { %v2496_v40 = vpop.f32.mrf.mxu0  ;;  %v2537_v17 = vpop.f32.mrf.mxu1 }
 0x29c   : > { %3855 = vpow2.f32 %v3472_v37 }
 0x29d   : > { %3857 = vtanh.f32 %v2541_v21 }
 0x29e   : > { %3859 = vpow2.f32 %v3473_v36 }
 0x2a7   : > { %v3854_v7 = vpop.eup %3853 }
 0x2a8   : > { %v2546_v3 = vadd.f32 1.0, %v3854_v7 }
 0x2a9   : > { %v3856_v32 = vpop.eup %3855 }
 0x2aa   : > { %3861 = vrcp.f32 %v2546_v3  ;;  %v2552_v30 = vadd.f32 1.0, %v3856_v32  ;;  %v3858_v41 = vpop.eup %3857 }
 0x2ab   : > { %v3860_v38 = vpop.eup %3859 }
 0x2ac   : > { %3863 = vrcp.f32 %v2552_v30  ;;  %v2559_v10 = vadd.f32 1.0, %v3860_v38 }
 0x2b5   : > { %v2607_v16 = vpop.f32.mrf.mxu0  ;;  %v2648_v24 = vpop.f32.mrf.mxu1 }
 0x2b6   : > { %v2655_v12 = vadd.f32 %v2607_v16, %v4992_v46 }
 0x2b7   : > { %v3862_v34 = vpop.eup %3861  ;;  %v2609_v6 = vpop.f32.mrf.mxu0 }
 0x2b8   : > { %v2650_v42 = vpop.f32.mrf.mxu1  ;;  %v2563_v37 = vmul.f32 %v3862_v34, %v3858_v41  ;;  %v3474_v31 = vmul.f32 -1.442695, %v2655_v12  ;;  %v2656_v40 = vadd.f32 %v2609_v6, %v4998_v13  ;;  %v2657_v13 = vadd.f32 %v2648_v24, %v4995_v23 }
 0x2b9   : > { %v3864_v17 = vpop.eup %3863  ;;  %v2611_v35 = vpop.f32.mrf.mxu0  ;;  %v2658_v46 = vadd.f32 %v2650_v42, %v5001_v20  ;;  %v3971_v42 = vld [vmem:[#allocation8 + $0x40] ss:$16 sps:$4 sm:$0xff]  }
 0x2ba   : > { %v2652_v27 = vpop.f32.mrf.mxu1  ;;  %v2562_v3 = vmul.f32 %v3864_v17, %v5021_v22  ;;  %3865 = vpow2.f32 %v3474_v31  ;;  %v3475_v21 = vmul.f32 -1.442695, %v2656_v40  ;;  %v3972_v31 = vld [vmem:[#allocation8 + $0x48] ss:$16 sps:$4 sm:$0xff]   ;;  %v3973_v40 = vld [vmem:[#allocation8 + $0x24] ss:$16 sps:$4 sm:$0xff]  }
 0x2bb   : > { %v2612_v36 = vpop.f32.mrf.mxu0  ;;  %v3476_v30 = vmul.f32 -1.442695, %v2658_v46  ;;  %v3974_v17 = vld [vmem:[#allocation8 + $0x2c] ss:$16 sps:$4 sm:$0xff]   ;;  %v3976_v35 = vld [vmem:[#allocation8 + $0x28] ss:$16 sps:$4 sm:$0xff]  }
 0x2bc   : > { %v2653_v7 = vpop.f32.mrf.mxu1  ;;  %v5114_v32 = vadd.f32 %v2563_v37, %v2562_v3  ;;  %3867 = vpow2.f32 %v3475_v21  ;;  %v3977_v27 = vld [vmem:[#allocation8 + $0x4] ss:$16 sps:$4 sm:$0xff]   ;;  %v3978_v3 = vld [vmem:[#allocation8 + $0xc] ss:$16 sps:$4 sm:$0xff]   ;;  %v3979_v21 = vld [vmem:[#allocation8] ss:$16 sps:$4 sm:$0xff]  }
 0x2bd   : > { %3869 = vrcp.f32 %v2559_v10  ;;  %v3975_v10 = vld [vmem:[#allocation8 + $0x20] ss:$16 sps:$4 sm:$0xff]   ;;  %v3980_v36 = vld [vmem:[#allocation8 + $0x8] ss:$16 sps:$4 sm:$0xff]   ;;  %v3981_v7 = vld [vmem:[#allocation10 + $0xe4] ss:$16 sps:$4 sm:$0xff]  }
 0x2be   : > { %3871 = vtanh.f32 %v5114_v32  ;;  %v3982_v46 = vld [vmem:[#allocation10 + $0xec] ss:$16 sps:$4 sm:$0xff]  }
 0x2bf   : > { %3873 = vtanh.f32 %v2657_v13 }
 0x2c0   : > { %3875 = vpow2.f32 %v3476_v30 }
 0x2c7   : > { %v3866_v41 = vpop.eup %3865 }
 0x2c8   : > { %v2662_v16 = vadd.f32 1.0, %v3866_v41  ;;  %v5413_v41 = vld [vmem:[#allocation64_spill] sm:$0xff] }
 0x2c9   : > { %v3868_v38 = vpop.eup %3867 }
 0x2ca   : > { %v3870_v22 = vpop.eup %3869  ;;  %3877 = vrcp.f32 %v2662_v16  ;;  %v2668_v12 = vadd.f32 1.0, %v3868_v38 }
 0x2cb   : > { %v3872_v34 = vpop.eup %3871 }
 0x2cc   : > { %3879 = vrcp.f32 %v2668_v12  ;;  %v5119_v6 = vmul.f32 %v3872_v34, %v3870_v22  ;;  %v3874_v23 = vpop.eup %3873  ;;  %v5414_v34 = vld [vmem:[#allocation66_spill] sm:$0xff] }
 0x2cd   : > { %v3876_v20 = vpop.eup %3875 }
 0x2ce   : > { %v2690_v37 = vpack.c.bf16 %v5119_v6, %v5119_v6 }
 0x2d0   : > { %2724 = vmatmul.mubr.bf16.vlgmr.msra.gmra.mxu0 %v2690_v37  ;;  %2765 = vmatmul.mubr.bf16.vlgmr.msra.gmra.mxu1 %v2690_v37 }
 0x2d1   : > { %2808 = vmatpush1.bf16.msra.mxu0 %v4735_v49  ;;  %2849 = vmatpush1.bf16.msra.mxu1 %v4737_v50 }
 0x2d2   : > { %2809 = vmatprep.subr.bf16.mxu0 %v4741_v51  ;;  %2850 = vmatprep.subr.bf16.mxu1 %v4743_v52  ;;  %v2675_v51 = vadd.f32 1.0, %v3876_v20 }
 0x2d3   : > { %2839 = vmatprep.mubr.bf16.mxu0 %v5342_v45  ;;  %2880 = vmatprep.mubr.bf16.mxu1 %v5342_v45 }
 0x2d4   : > { %3881 = vrcp.f32 %v2675_v51  ;;  %v5415_v51 = vld [vmem:[#allocation67_spill] sm:$0xff] }
 0x2d5   : > { %2810 = vmatpush1.bf16.msra.mxu0 %v4747_v53  ;;  %2851 = vmatpush1.bf16.msra.mxu1 %v4749_v54 }
 0x2d6   : > { %2811 = vmatprep.subr.bf16.mxu0 %v4753_v55  ;;  %2852 = vmatprep.subr.bf16.mxu1 %v4755_v56 }
 0x2d7   : > { %v3878_v49 = vpop.eup %3877 }
 0x2d8   : > { %v2679_v50 = vmul.f32 %v3878_v49, %v3874_v23 }
 0x2d9   : > { %v3880_v24 = vpop.eup %3879  ;;  %2812 = vmatpush1.bf16.msra.mxu0 %v4761_v57  ;;  %2853 = vmatpush1.bf16.msra.mxu1 %v4763_v58  ;;  %v3949_v58 = vld [vmem:[#allocation8 + $0xe4] ss:$16 sps:$4 sm:$0xff]  }
 0x2da   : > { %v2678_v52 = vmul.f32 %v3880_v24, %v5046_v25  ;;  %2813 = vmatprep.subr.bf16.mxu0 %v4767_v59  ;;  %2854 = vmatprep.subr.bf16.mxu1 %v4769_v60  ;;  %v3950_v59 = vld [vmem:[#allocation8 + $0xec] ss:$16 sps:$4 sm:$0xff]   ;;  %v3951_v60 = vld [vmem:[#allocation8 + $0xe0] ss:$16 sps:$4 sm:$0xff]  }
 0x2db   : > { %v3958_v25 = vld [vmem:[#allocation8 + $0xac] ss:$16 sps:$4 sm:$0xff]  }
 0x2dc   : > { %v5138_v53 = vadd.f32 %v2679_v50, %v2678_v52 }
 0x2dd   : > { %2814 = vmatpush1.bf16.msra.mxu0 %v4773_v61  ;;  %2855 = vmatpush1.bf16.msra.mxu1 %v4775_v62  ;;  %v3952_v61 = vld [vmem:[#allocation8 + $0xe8] ss:$16 sps:$4 sm:$0xff]   ;;  %v3953_v62 = vld [vmem:[#allocation8 + $0xc4] ss:$16 sps:$4 sm:$0xff]  }
 0x2de   : > { %2815 = vmatprep.subr.bf16.mxu0 %v4779_v63  ;;  %2856 = vmatprep.subr.bf16.mxu1 %v4781_v0  ;;  %3883 = vtanh.f32 %v5138_v53  ;;  %v3954_v63 = vld [vmem:[#allocation8 + $0xcc] ss:$16 sps:$4 sm:$0xff]   ;;  %v3955_v0 = vld [vmem:[#allocation8 + $0xc0] ss:$16 sps:$4 sm:$0xff]  }
 0x2e1   : > { %2816 = vmatpush1.bf16.msra.mxu0 %v4785_v1  ;;  %2857 = vmatpush1.bf16.msra.mxu1 %v4787_v2  ;;  %v3882_v54 = vpop.eup %3881  ;;  %v3956_v1 = vld [vmem:[#allocation8 + $0xc8] ss:$16 sps:$4 sm:$0xff]   ;;  %v3957_v2 = vld [vmem:[#allocation8 + $0xa4] ss:$16 sps:$4 sm:$0xff]  }
 0x2e2   : > { %2817 = vmatprep.subr.bf16.mxu0 %v5363_v39  ;;  %2858 = vmatprep.subr.bf16.mxu1 %v5364_v8  ;;  %v3959_v39 = vld [vmem:[#allocation8 + $0xa0] ss:$16 sps:$4 sm:$0xff]   ;;  %v3960_v8 = vld [vmem:[#allocation8 + $0xa8] ss:$16 sps:$4 sm:$0xff]  }
 0x2e5   : > { %2818 = vmatpush1.bf16.msra.mxu0 %v5365_v18  ;;  %2859 = vmatpush1.bf16.msra.mxu1 %v5366_v9  ;;  %v3961_v18 = vld [vmem:[#allocation8 + $0x84] ss:$16 sps:$4 sm:$0xff]   ;;  %v3962_v9 = vld [vmem:[#allocation8 + $0x8c] ss:$16 sps:$4 sm:$0xff]  }
 0x2e6   : > { %2819 = vmatprep.subr.bf16.mxu0 %v5367_v4  ;;  %2860 = vmatprep.subr.bf16.mxu1 %v5368_v26  ;;  %v3963_v4 = vld [vmem:[#allocation8 + $0x80] ss:$16 sps:$4 sm:$0xff]   ;;  %v3964_v26 = vld [vmem:[#allocation8 + $0x88] ss:$16 sps:$4 sm:$0xff]  }
 0x2e9   : > { %2820 = vmatpush1.bf16.msra.mxu0 %v5369_v44  ;;  %2861 = vmatpush1.bf16.msra.mxu1 %v5370_v19  ;;  %v3965_v44 = vld [vmem:[#allocation8 + $0x64] ss:$16 sps:$4 sm:$0xff]   ;;  %v3966_v19 = vld [vmem:[#allocation8 + $0x6c] ss:$16 sps:$4 sm:$0xff]  }
 0x2ea   : > { %2821 = vmatprep.subr.bf16.mxu0 %v5371_v14  ;;  %2862 = vmatprep.subr.bf16.mxu1 %v5372_v11  ;;  %v3967_v14 = vld [vmem:[#allocation8 + $0x60] ss:$16 sps:$4 sm:$0xff]   ;;  %v3968_v11 = vld [vmem:[#allocation8 + $0x68] ss:$16 sps:$4 sm:$0xff]  }
 0x2eb   : > { %v3884_v55 = vpop.eup %3883 }
 0x2ec   : > { %v5157_v56 = vmul.f32 %v3884_v55, %v3882_v54  ;;  %v5416_v54 = vld [vmem:[#allocation65_spill] sm:$0xff] }
 0x2ed   : > { %2822 = vmatpush1.bf16.msra.mxu0 %v5373_v29  ;;  %2863 = vmatpush1.bf16.msra.mxu1 %v5374_v47  ;;  %v3969_v29 = vld [vmem:[#allocation8 + $0x44] ss:$16 sps:$4 sm:$0xff]   ;;  %v3970_v47 = vld [vmem:[#allocation8 + $0x4c] ss:$16 sps:$4 sm:$0xff]  }
 0x2ee   : > { %v2806_v57 = vpack.c.bf16 %v5157_v56, %v5157_v56  ;;  %2925 = vmatprep.subr.bf16.mxu0 %v3949_v58  ;;  %2966 = vmatprep.subr.bf16.mxu1 %v3950_v59 }
 0x2f0   : > { %2840 = vmatmul.mubr.bf16.vlgmr.msra.gmra.mxu0 %v2806_v57  ;;  %2881 = vmatmul.mubr.bf16.vlgmr.msra.gmra.mxu1 %v2806_v57 }
 0x2f1   : > { %2926 = vmatpush1.bf16.msra.mxu0 %v3951_v60  ;;  %2967 = vmatpush1.bf16.msra.mxu1 %v3952_v61 }
 0x2f2   : > { %2927 = vmatprep.subr.bf16.mxu0 %v3953_v62  ;;  %2968 = vmatprep.subr.bf16.mxu1 %v3954_v63 }
 0x2f3   : > { %2957 = vmatprep.mubr.bf16.mxu0 %v5342_v45  ;;  %2998 = vmatprep.mubr.bf16.mxu1 %v5342_v45 }
 0x2f5   : > { %2928 = vmatpush1.bf16.msra.mxu0 %v3955_v0  ;;  %2969 = vmatpush1.bf16.msra.mxu1 %v3956_v1 }
 0x2f6   : > { %2929 = vmatprep.subr.bf16.mxu0 %v3957_v2  ;;  %2970 = vmatprep.subr.bf16.mxu1 %v3958_v25 }
 0x2f9   : > { %2930 = vmatpush1.bf16.msra.mxu0 %v3959_v39  ;;  %2971 = vmatpush1.bf16.msra.mxu1 %v3960_v8 }
 0x2fa   : > { %2931 = vmatprep.subr.bf16.mxu0 %v3961_v18  ;;  %2972 = vmatprep.subr.bf16.mxu1 %v3962_v9 }
 0x2fd   : > { %2932 = vmatpush1.bf16.msra.mxu0 %v3963_v4  ;;  %2973 = vmatpush1.bf16.msra.mxu1 %v3964_v26 }
 0x2fe   : > { %2933 = vmatprep.subr.bf16.mxu0 %v3965_v44  ;;  %2974 = vmatprep.subr.bf16.mxu1 %v3966_v19 }
 0x301   : > { %2934 = vmatpush1.bf16.msra.mxu0 %v3967_v14  ;;  %2975 = vmatpush1.bf16.msra.mxu1 %v3968_v11 }
 0x302   : > { %2935 = vmatprep.subr.bf16.mxu0 %v3969_v29  ;;  %2976 = vmatprep.subr.bf16.mxu1 %v3970_v47 }
 0x305   : > { %2936 = vmatpush1.bf16.msra.mxu0 %v3971_v42  ;;  %2977 = vmatpush1.bf16.msra.mxu1 %v3972_v31 }
 0x306   : > { %2937 = vmatprep.subr.bf16.mxu0 %v3973_v40  ;;  %2978 = vmatprep.subr.bf16.mxu1 %v3974_v17 }
 0x309   : > { %2938 = vmatpush1.bf16.msra.mxu0 %v3975_v10  ;;  %2979 = vmatpush1.bf16.msra.mxu1 %v3976_v35 }
 0x30a   : > { %2939 = vmatprep.subr.bf16.mxu0 %v3977_v27  ;;  %2980 = vmatprep.subr.bf16.mxu1 %v3978_v3 }
 0x30d   : > { %2940 = vmatpush1.bf16.msra.mxu0 %v3979_v21  ;;  %2981 = vmatpush1.bf16.msra.mxu1 %v3980_v36  ;;  %v2683_v21 = vmax.f32 %v5028_v28, %v5119_v6  ;;  %v3987_v6 = vld [vmem:[#allocation10 + $0xc0] ss:$16 sps:$4 sm:$0xff]  }
 0x30e   : > { %3040 = vmatprep.subr.bf16.mxu0 %v3981_v7  ;;  %3081 = vmatprep.subr.bf16.mxu1 %v3982_v46  ;;  %v3984_v46 = vld [vmem:[#allocation10 + $0xe8] ss:$16 sps:$4 sm:$0xff]  }
 0x390   : > { %v2725_v13 = vpop.f32.mrf.mxu0  ;;  %v2766_v30 = vpop.f32.mrf.mxu1 }
 0x391   : > { %v2773_v16 = vadd.f32 %v2725_v13, %v5413_v41  ;;  %v2775_v55 = vadd.f32 %v2766_v30, %v5416_v54  ;;  %v3985_v13 = vld [vmem:[#allocation10 + $0xc4] ss:$16 sps:$4 sm:$0xff]   ;;  %v3986_v30 = vld [vmem:[#allocation10 + $0xcc] ss:$16 sps:$4 sm:$0xff]   ;;  %v3988_v41 = vld [vmem:[#allocation10 + $0xc8] ss:$16 sps:$4 sm:$0xff]  }
 0x392   : > { %v2727_v38 = vpop.f32.mrf.mxu0  ;;  %v2768_v22 = vpop.f32.mrf.mxu1  ;;  %v3996_v54 = vld [vmem:[#allocation10 + $0x88] ss:$16 sps:$4 sm:$0xff]  }
 0x393   : > { %v3477_v12 = vmul.f32 -1.442695, %v2773_v16  ;;  %v2774_v37 = vadd.f32 %v2727_v38, %v5414_v34  ;;  %v2776_v52 = vadd.f32 %v2768_v22, %v5415_v51  ;;  %v3989_v38 = vld [vmem:[#allocation10 + $0xa4] ss:$16 sps:$4 sm:$0xff]   ;;  %v3990_v22 = vld [vmem:[#allocation10 + $0xac] ss:$16 sps:$4 sm:$0xff]  }
 0x394   : > { %v2729_v23 = vpop.f32.mrf.mxu0  ;;  %v2770_v20 = vpop.f32.mrf.mxu1 }
 0x395   : > { %3885 = vpow2.f32 %v3477_v12  ;;  %v3478_v49 = vmul.f32 -1.442695, %v2774_v37  ;;  %v3479_v57 = vmul.f32 -1.442695, %v2776_v52  ;;  %v3991_v20 = vld [vmem:[#allocation10 + $0xa0] ss:$16 sps:$4 sm:$0xff]  }
 0x396   : > { %v2730_v50 = vpop.f32.mrf.mxu0  ;;  %v2771_v24 = vpop.f32.mrf.mxu1  ;;  %v3995_v52 = vld [vmem:[#allocation10 + $0x80] ss:$16 sps:$4 sm:$0xff]  }
 0x397   : > { %3887 = vpow2.f32 %v3478_v49  ;;  %v3992_v49 = vld [vmem:[#allocation10 + $0xa8] ss:$16 sps:$4 sm:$0xff]   ;;  %v3993_v50 = vld [vmem:[#allocation10 + $0x84] ss:$16 sps:$4 sm:$0xff]   ;;  %v3994_v24 = vld [vmem:[#allocation10 + $0x8c] ss:$16 sps:$4 sm:$0xff]  }
 0x398   : > { %3889 = vtanh.f32 %v2775_v55  ;;  %v3997_v55 = vld [vmem:[#allocation10 + $0x64] ss:$16 sps:$4 sm:$0xff]  }
 0x399   : > { %3891 = vpow2.f32 %v3479_v57  ;;  %v3998_v57 = vld [vmem:[#allocation10 + $0x6c] ss:$16 sps:$4 sm:$0xff]  }
 0x3a2   : > { %v3886_v58 = vpop.eup %3885 }
 0x3a3   : > { %v2780_v59 = vadd.f32 1.0, %v3886_v58  ;;  %v3999_v58 = vld [vmem:[#allocation10 + $0x60] ss:$16 sps:$4 sm:$0xff]  }
 0x3a4   : > { %v3888_v60 = vpop.eup %3887 }
 0x3a5   : > { %3893 = vrcp.f32 %v2780_v59  ;;  %v2786_v61 = vadd.f32 1.0, %v3888_v60  ;;  %v3890_v62 = vpop.eup %3889  ;;  %v4001_v59 = vld [vmem:[#allocation10 + $0x44] ss:$16 sps:$4 sm:$0xff]   ;;  %v4002_v60 = vld [vmem:[#allocation10 + $0x4c] ss:$16 sps:$4 sm:$0xff]  }
 0x3a6   : > { %v3892_v1 = vpop.eup %3891 }
 0x3a7   : > { %3895 = vrcp.f32 %v2786_v61  ;;  %v2793_v44 = vadd.f32 1.0, %v3892_v1  ;;  %v4003_v61 = vld [vmem:[#allocation10 + $0x40] ss:$16 sps:$4 sm:$0xff]  }
 0x3a8   : > { %v4007_v1 = vld [vmem:[#allocation10 + $0x20] ss:$16 sps:$4 sm:$0xff]  }
 0x3b0   : > { %v2841_v63 = vpop.f32.mrf.mxu0  ;;  %v2882_v0 = vpop.f32.mrf.mxu1 }
 0x3b1   : > { %v2889_v2 = vadd.f32 %v2841_v63, %v4980_v33  ;;  %v4005_v63 = vld [vmem:[#allocation10 + $0x24] ss:$16 sps:$4 sm:$0xff]  }
 0x3b2   : > { %v3894_v25 = vpop.eup %3893  ;;  %v2843_v39 = vpop.f32.mrf.mxu0 }
 0x3b3   : > { %v2884_v8 = vpop.f32.mrf.mxu1  ;;  %v2797_v18 = vmul.f32 %v3894_v25, %v3890_v62  ;;  %v3480_v9 = vmul.f32 -1.442695, %v2889_v2  ;;  %v2890_v4 = vadd.f32 %v2843_v39, %v4986_v43  ;;  %v2891_v43 = vadd.f32 %v2882_v0, %v4983_v48  ;;  %v3983_v48 = vld [vmem:[#allocation10 + $0xe0] ss:$16 sps:$4 sm:$0xff]   ;;  %v4004_v62 = vld [vmem:[#allocation10 + $0x48] ss:$16 sps:$4 sm:$0xff]  }
 0x3b4   : > { %v3896_v26 = vpop.eup %3895  ;;  %v2845_v19 = vpop.f32.mrf.mxu0  ;;  %v2892_v33 = vadd.f32 %v2884_v8, %v4989_v5  ;;  %v4006_v0 = vld [vmem:[#allocation10 + $0x2c] ss:$16 sps:$4 sm:$0xff]   ;;  %v4008_v2 = vld [vmem:[#allocation10 + $0x28] ss:$16 sps:$4 sm:$0xff]   ;;  %v4009_v39 = vld [vmem:[#allocation10 + $0x4] ss:$16 sps:$4 sm:$0xff]  }
 0x3b5   : > { %v2886_v14 = vpop.f32.mrf.mxu1  ;;  %v2796_v11 = vmul.f32 %v3896_v26, %v5114_v32  ;;  %3897 = vpow2.f32 %v3480_v9  ;;  %v3481_v29 = vmul.f32 -1.442695, %v2890_v4  ;;  %v4010_v8 = vld [vmem:[#allocation10 + $0xc] ss:$16 sps:$4 sm:$0xff]   ;;  %v2684_v9 = vmax.f32 %v5065_v15, %v5157_v56  ;;  %v4011_v26 = vld [vmem:[#allocation10] ss:$16 sps:$4 sm:$0xff]  }
 0x3b6   : > { %v2846_v47 = vpop.f32.mrf.mxu0  ;;  %v3482_v40 = vmul.f32 -1.442695, %v2892_v33 }
 0x3b7   : > { %v2887_v42 = vpop.f32.mrf.mxu1  ;;  %v5172_v31 = vadd.f32 %v2797_v18, %v2796_v11  ;;  %3899 = vpow2.f32 %v3481_v29  ;;  %v5417_v47 = vld [vmem:[#allocation68_spill] sm:$0xff] }
 0x3b8   : > { %3901 = vrcp.f32 %v2793_v44  ;;  %v4012_v44 = vld [vmem:[#allocation10 + $0x8] ss:$16 sps:$4 sm:$0xff]  }
 0x3b9   : > { %3903 = vtanh.f32 %v5172_v31 }
 0x3ba   : > { %3905 = vtanh.f32 %v2891_v43 }
 0x3bb   : > { %3907 = vpow2.f32 %v3482_v40 }
 0x3c2   : > { %v3898_v17 = vpop.eup %3897 }
 0x3c3   : > { %v2896_v10 = vadd.f32 1.0, %v3898_v17  ;;  %v5418_v17 = vld [vmem:[#allocation70_spill] sm:$0xff] }
 0x3c4   : > { %v3900_v35 = vpop.eup %3899 }
 0x3c5   : > { %v3902_v32 = vpop.eup %3901  ;;  %3909 = vrcp.f32 %v2896_v10  ;;  %v2902_v27 = vadd.f32 1.0, %v3900_v35 }
 0x3c6   : > { %v3904_v3 = vpop.eup %3903 }
 0x3c7   : > { %3911 = vrcp.f32 %v2902_v27  ;;  %v2800_v36 = vmul.f32 %v3904_v3, %v3902_v32  ;;  %v3906_v28 = vpop.eup %3905  ;;  %v5419_v3 = vld [vmem:[#allocation71_spill] sm:$0xff] }
 0x3c8   : > { %v3908_v16 = vpop.eup %3907 }
 0x3c9   : > { %v5179_v7 = vmax.f32 %v2683_v21, %v2800_v36  ;;  %v2924_v5 = vpack.c.bf16 %v2800_v36, %v2800_v36  ;;  %v2909_v23 = vadd.f32 1.0, %v3908_v16  ;;  %v5420_v36 = vld [vmem:[#allocation69_spill] sm:$0xff] }
 0x3cb   : > { %2958 = vmatmul.mubr.bf16.vlgmr.msra.gmra.mxu0 %v2924_v5  ;;  %2999 = vmatmul.mubr.bf16.vlgmr.msra.gmra.mxu1 %v2924_v5  ;;  %3913 = vrcp.f32 %v2909_v23 }
 0x3cc   : > { %3041 = vmatpush1.bf16.msra.mxu0 %v3983_v48  ;;  %3082 = vmatpush1.bf16.msra.mxu1 %v3984_v46 }
 0x3cd   : > { %3042 = vmatprep.subr.bf16.mxu0 %v3985_v13  ;;  %3083 = vmatprep.subr.bf16.mxu1 %v3986_v30 }
 0x3ce   : > { %3072 = vmatprep.mubr.bf16.mxu0 %v5342_v45  ;;  %3113 = vmatprep.mubr.bf16.mxu1 %v5342_v45 }
 0x3d0   : > { %3043 = vmatpush1.bf16.msra.mxu0 %v3987_v6  ;;  %3084 = vmatpush1.bf16.msra.mxu1 %v3988_v41 }
 0x3d1   : > { %3044 = vmatprep.subr.bf16.mxu0 %v3989_v38  ;;  %3085 = vmatprep.subr.bf16.mxu1 %v3990_v22  ;;  %v5421_v22 = vld [vmem:[#allocation72_spill] sm:$0xff] }
 0x3d2   : > { %v3910_v12 = vpop.eup %3909 }
 0x3d3   : > { %v2913_v34 = vmul.f32 %v3910_v12, %v3906_v28 }
 0x3d4   : > { %v3912_v37 = vpop.eup %3911  ;;  %3045 = vmatpush1.bf16.msra.mxu0 %v3991_v20  ;;  %3086 = vmatpush1.bf16.msra.mxu1 %v3992_v49 }
 0x3d5   : > { %v2912_v45 = vmul.f32 %v3912_v37, %v5138_v53  ;;  %3046 = vmatprep.subr.bf16.mxu0 %v3993_v50  ;;  %3087 = vmatprep.subr.bf16.mxu1 %v3994_v24  ;;  %v4000_v53 = vld [vmem:[#allocation10 + $0x68] ss:$16 sps:$4 sm:$0xff]  }
 0x3d7   : > { %v5184_v51 = vadd.f32 %v2913_v34, %v2912_v45  ;;  %v5422_v45 = vld [vmem:[#allocation74_spill] sm:$0xff] }
 0x3d8   : > { %3047 = vmatpush1.bf16.msra.mxu0 %v3995_v52  ;;  %3088 = vmatpush1.bf16.msra.mxu1 %v3996_v54  ;;  %v3914_v25 = vpop.eup %3913 }
 0x3d9   : > { %3048 = vmatprep.subr.bf16.mxu0 %v3997_v55  ;;  %3089 = vmatprep.subr.bf16.mxu1 %v3998_v57  ;;  %3915 = vtanh.f32 %v5184_v51 }
 0x3dc   : > { %3049 = vmatpush1.bf16.msra.mxu0 %v3999_v58  ;;  %3090 = vmatpush1.bf16.msra.mxu1 %v4000_v53 }
 0x3dd   : > { %3050 = vmatprep.subr.bf16.mxu0 %v4001_v59  ;;  %3091 = vmatprep.subr.bf16.mxu1 %v4002_v60 }
 0x3e0   : > { %3051 = vmatpush1.bf16.msra.mxu0 %v4003_v61  ;;  %3092 = vmatpush1.bf16.msra.mxu1 %v4004_v62  ;;  %v5423_v61 = vld [vmem:[#allocation75_spill] sm:$0xff] }
 0x3e1   : > { %3052 = vmatprep.subr.bf16.mxu0 %v4005_v63  ;;  %3093 = vmatprep.subr.bf16.mxu1 %v4006_v0  ;;  %v5424_v63 = vld [vmem:[#allocation73_spill] sm:$0xff] }
 0x3e4   : > { %3053 = vmatpush1.bf16.msra.mxu0 %v4007_v1  ;;  %3094 = vmatpush1.bf16.msra.mxu1 %v4008_v2 }
 0x3e5   : > { %3054 = vmatprep.subr.bf16.mxu0 %v4009_v39  ;;  %3095 = vmatprep.subr.bf16.mxu1 %v4010_v8 }
 0x3e6   : > { %v3916_v18 = vpop.eup %3915 }
 0x3e7   : > { %v2916_v4 = vmul.f32 %v3916_v18, %v3914_v25 }
 0x3e8   : > { %3055 = vmatpush1.bf16.msra.mxu0 %v4011_v26  ;;  %3096 = vmatpush1.bf16.msra.mxu1 %v4012_v44 }
 0x3e9   : > { %v5189_v19 = vmax.f32 %v2684_v9, %v2916_v4  ;;  %v3039_v14 = vpack.c.bf16 %v2916_v4, %v2916_v4  ;;  %v3156_v4 = vld [vmem:[%s5228_s10] sm:$0xff] }
 0x3eb   : > { %3073 = vmatmul.mubr.bf16.vlgmr.msra.gmra.mxu0 %v3039_v14  ;;  %3114 = vmatmul.mubr.bf16.vlgmr.msra.gmra.mxu1 %v3039_v14 }
 0x48b   : > { %v2959_v11 = vpop.f32.mrf.mxu0  ;;  %v3000_v29 = vpop.f32.mrf.mxu1 }
 0x48c   : > { %v3007_v42 = vadd.f32 %v2959_v11, %v5417_v47  ;;  %v3009_v5 = vadd.f32 %v3000_v29, %v5420_v36 }
 0x48d   : > { %v2961_v33 = vpop.f32.mrf.mxu0  ;;  %v3002_v43 = vpop.f32.mrf.mxu1 }
 0x48e   : > { %v3483_v40 = vmul.f32 -1.442695, %v3007_v42  ;;  %v3008_v10 = vadd.f32 %v2961_v33, %v5418_v17  ;;  %v3010_v21 = vadd.f32 %v3002_v43, %v5419_v3 }
 0x48f   : > { %v2963_v15 = vpop.f32.mrf.mxu0  ;;  %v3004_v56 = vpop.f32.mrf.mxu1 }
 0x490   : > { %3917 = vpow2.f32 %v3483_v40  ;;  %v3484_v35 = vmul.f32 -1.442695, %v3008_v10  ;;  %v3485_v48 = vmul.f32 -1.442695, %v3010_v21  ;;  %v3159_v15 = vld [vmem:[%s5228_s10 + $0x8] sm:$0xff] }
 0x491   : > { %v2964_v32 = vpop.f32.mrf.mxu0  ;;  %v3005_v27 = vpop.f32.mrf.mxu1 }
 0x492   : > { %3919 = vpow2.f32 %v3484_v35 }
 0x493   : > { %3921 = vtanh.f32 %v3009_v5 }
 0x494   : > { %3923 = vpow2.f32 %v3485_v48 }
 0x49d   : > { %v3918_v46 = vpop.eup %3917 }
 0x49e   : > { %v3014_v13 = vadd.f32 1.0, %v3918_v46 }
 0x49f   : > { %v3920_v30 = vpop.eup %3919 }
 0x4a0   : > { %3925 = vrcp.f32 %v3014_v13  ;;  %v3020_v28 = vadd.f32 1.0, %v3920_v30  ;;  %v3922_v6 = vpop.eup %3921 }
 0x4a1   : > { %v3924_v38 = vpop.eup %3923 }
 0x4a2   : > { %3927 = vrcp.f32 %v3020_v28  ;;  %v3027_v52 = vadd.f32 1.0, %v3924_v38 }
 0x4ab   : > { %v3074_v41 = vpop.f32.mrf.mxu0  ;;  %v3115_v16 = vpop.f32.mrf.mxu1 }
 0x4ac   : > { %v3122_v12 = vadd.f32 %v3074_v41, %v5421_v22  ;;  %v3124_v0 = vadd.f32 %v3115_v16, %v5424_v63 }
 0x4ad   : > { %v3926_v34 = vpop.eup %3925  ;;  %v3076_v37 = vpop.f32.mrf.mxu0 }
 0x4ae   : > { %v3117_v23 = vpop.f32.mrf.mxu1  ;;  %v3031_v20 = vmul.f32 %v3926_v34, %v3922_v6  ;;  %v3486_v49 = vmul.f32 -1.442695, %v3122_v12  ;;  %v3123_v50 = vadd.f32 %v3076_v37, %v5422_v45 }
 0x4af   : > { %v3928_v24 = vpop.eup %3927  ;;  %v3078_v54 = vpop.f32.mrf.mxu0  ;;  %v3125_v62 = vadd.f32 %v3117_v23, %v5423_v61 }
 0x4b0   : > { %v3119_v55 = vpop.f32.mrf.mxu1  ;;  %v3030_v57 = vmul.f32 %v3928_v24, %v5172_v31  ;;  %3929 = vpow2.f32 %v3486_v49  ;;  %v3487_v58 = vmul.f32 -1.442695, %v3123_v50 }
 0x4b1   : > { %v3079_v53 = vpop.f32.mrf.mxu0  ;;  %v3488_v1 = vmul.f32 -1.442695, %v3125_v62 }
 0x4b2   : > { %v3120_v59 = vpop.f32.mrf.mxu1  ;;  %v3032_v60 = vadd.f32 %v3031_v20, %v3030_v57  ;;  %3931 = vpow2.f32 %v3487_v58 }
 0x4b3   : > { %3933 = vrcp.f32 %v3027_v52 }
 0x4b4   : > { %3935 = vtanh.f32 %v3032_v60  ;;  %3153 = vst [vmem:[#allocation3] sm:$0xff] %v3032_v60 }
 0x4b5   : > { %3937 = vtanh.f32 %v3124_v0 }
 0x4b6   : > { %3939 = vpow2.f32 %v3488_v1 }
 0x4bd   : > { %v3930_v2 = vpop.eup %3929 }
 0x4be   : > { %v3129_v25 = vadd.f32 1.0, %v3930_v2 }
 0x4bf   : > { %v3932_v39 = vpop.eup %3931 }
 0x4c0   : > { %v3934_v31 = vpop.eup %3933  ;;  %3941 = vrcp.f32 %v3129_v25  ;;  %v3135_v8 = vadd.f32 1.0, %v3932_v39 }
 0x4c1   : > { %v3936_v18 = vpop.eup %3935 }
 0x4c2   : > { %v3034_v9 = vmul.f32 %v3936_v18, %v3934_v31  ;;  %3943 = vrcp.f32 %v3135_v8  ;;  %v3938_v14 = vpop.eup %3937 }
 0x4c3   : > { %v3940_v11 = vpop.eup %3939 }
 0x4c4   : > { %v3150_v26 = vmax.f32 %v5179_v7, %v3034_v9  ;;  %3152 = vst [vmem:[#allocation2] sm:$0xff] %v3034_v9  ;;  %v3142_v33 = vadd.f32 1.0, %v3940_v11 }
 0x4c6   : > { %v3157_v44 = vmax.f32 %v3156_v4, %v3150_v26  ;;  %3945 = vrcp.f32 %v3142_v33 }
 0x4c8   : > { %3158 = vst [vmem:[%s5228_s10] sm:$0xff] %v3157_v44 }
 0x4cd   : > { %v3942_v29 = vpop.eup %3941 }
 0x4ce   : > { %v3146_v47 = vmul.f32 %v3942_v29, %v3938_v14 }
 0x4cf   : > { %v3944_v42 = vpop.eup %3943 }
 0x4d0   : > { %v3145_v43 = vmul.f32 %v3944_v42, %v5184_v51 }
 0x4d2   : > { %v3147_v40 = vadd.f32 %v3146_v47, %v3145_v43 }
 0x4d3   : > { %v3946_v17 = vpop.eup %3945 }
 0x4d4   : > { %3947 = vtanh.f32 %v3147_v40  ;;  %3155 = vst [vmem:[#allocation5] sm:$0xff] %v3147_v40 }
 0x4e1   : > { %v3948_v7 = vpop.eup %3947 }
 0x4e2   : > { %v3149_v10 = vmul.f32 %v3948_v7, %v3946_v17 }
 0x4e4   : > { %v3151_v56 = vmax.f32 %v5189_v19, %v3149_v10  ;;  %3154 = vst [vmem:[#allocation4] sm:$0xff] %v3149_v10 }
 0x4e6   : > { %v3160_v35 = vmax.f32 %v3159_v15, %v3151_v56 }
 0x4e8   : > { %3161 = vst [vmem:[%s5228_s10 + $0x8] sm:$0xff] %v3160_v35 }
 0x4e9 PF: > { %s22_s13 = sadd.s32 1, %s4079_s13  }
 0x4ea   : > { %p19_p4 = scmp.ge.s32.totalorder %s22_s13, 4  }
 0x4ec   :  { %21 = sbr.rel (!%p19_p4) target bundleno = 2 (0x2), region = 114 }
 0x4f1   :  { %3173 = vsyncpa [#allocation9], 1 }
 0x4f2   :  { %3175 = vsyncpa [#allocation9 + $0x1], 1 }
 0x4f3   :  { %3176 = vsyncpa [#allocation11], 1 }

</bundles_post_ra>
